<compile_context>
chip_gen: v7x
topology: tpu7x:2x2x1
jax: 0.10.0
libtpu: 0.0.40
codegen_flags: <defaults>
</compile_context>

<pallas_src>
import functools

import jax
import jax.numpy as jnp
import numpy as np
from jax import lax
from jax.experimental import pallas as pl
from jax.experimental.pallas import tpu as pltpu


def _block_kernel(x_ref, w1_ref, b1_ref, w2_ref, b2_ref, sel_ref,
                  ftr_ref, pool_ref, *, wn, hout, wout, lg):
    # x_ref : (1, L0, Cin)        flat same-width input (L0 = Hin*wn, no trim)
    # w*_ref: (9, Cin, Cout) bf16 per-tap weights, tap index = 3*dy + dx
    # b*_ref: (1, Cout) f32
    # sel_ref: (hp*wp, lg) f32    0/1 matrix selecting 2x2 pool-window bases
    # ftr_ref: (1, hout*wout, Cout) f32   skip tensor (valid columns only)
    # pool_ref: (1, hp*wp, Cout) bf16     pooled next-block input

    def conv3x3_relu(inp, w_ref, b_ref):
        # Same-width flat conv: output length = input length - 2*wn - 2, so all
        # nine tap slices stay in bounds with zero padding. 9 accumulated
        # per-tap dots (no materialized im2col); the f32 accumulator is tiny
        # here -- at production channel counts it would target a VMEM scratch.
        l_out = inp.shape[0] - 2 * wn - 2
        cout = w_ref.shape[2]
        acc = jnp.zeros((l_out, cout), jnp.float32)
        for dy in range(3):
            for dx in range(3):
                s = dy * wn + dx
                acc = acc + jnp.dot(inp[s:s + l_out, :], w_ref[3 * dy + dx],
                                    preferred_element_type=jnp.float32)
        return jnp.maximum(acc + b_ref[...], 0.0)               # f32

    x = x_ref[0].astype(jnp.bfloat16)                           # (L0, Cin)
    h = conv3x3_relu(x, w1_ref, b1_ref).astype(jnp.bfloat16)    # (L1, Cmid)
    f = conv3x3_relu(h, w2_ref, b2_ref)                         # (L2, Cmid) f32

    # ---- skip output: drop the garbage columns (>= wout) in-kernel ----------
    # TODO(synk): at production sizes replace the per-row unroll with a padded
    # reshape / lane-dense (H, W*C) store.
    ftr = jnp.concatenate(
        [f[y * wn: y * wn + wout, :] for y in range(hout)], axis=0)
    ftr_ref[0] = ftr.astype(ftr_ref.dtype)

    # ---- fused 2x2 max-pool --------------------------------------------------
    # gm[m] = max of the 2x2 window whose top-left flat index is m; only bases
    # at valid even rows/cols are gathered, so garbage columns never leak in.
    gm = f[0:lg, :]
    for s in (1, wn, wn + 1):
        gm = jnp.maximum(gm, f[s:s + lg, :])
    # Gather the hp*wp window bases with a tiny constant 0/1 selection matrix
    # on the MXU (robust, lane-friendly at these shapes).
    # TODO(synk): at production sizes use strided VMEM reads
    # (ref[pl.ds(start, size, stride=2)]) instead of the selection matmul.
    pooled = jnp.dot(sel_ref[...], gm, preferred_element_type=jnp.float32)
    pool_ref[0] = pooled.astype(pool_ref.dtype)


def block_forward(x_flat, hin, win, w1, b1, w2, b2):
    """One fused Block + pool. x_flat: (N, hin*win, Cin) flat channels-minor."""
    n, l0, cin = x_flat.shape
    assert l0 == hin * win
    assert hin >= 5 and win >= 5, "same-width trick requires >=5x5 input"
    cout = w1.shape[-1]
    hout, wout = hin - 4, win - 4            # block (skip) output spatial size
    hp, wp = hout // 2, wout // 2            # pooled spatial size
    assert hp >= 1 and wp >= 1
    lg = 2 * (hp - 1) * win + 2 * (wp - 1) + 1

    # Constant 0/1 matrix selecting the flat top-left index of every 2x2 pool
    # window (host-built, a few KB, single-buffered in VMEM).
    sel = np.zeros((hp * wp, lg), np.float32)
    r = np.arange(hp * wp)
    sel[r, (r // wp) * 2 * win + (r % wp) * 2] = 1.0
    sel = jnp.asarray(sel)

    # bf16 weights (MXU-peak dtype on v6e/v7x, half the weight DMA); f32 bias.
    w1m = w1.reshape(9, cin, cout).astype(jnp.bfloat16)   # tap-major (dy, dx)
    w2m = w2.reshape(9, cout, cout).astype(jnp.bfloat16)
    b1m = b1.reshape(1, cout).astype(jnp.float32)
    b2m = b2.reshape(1, cout).astype(jnp.float32)

    kern = functools.partial(_block_kernel, wn=win, hout=hout, wout=wout, lg=lg)

    def const_spec(shape):
        # Constant-index operands: single-buffered, no duplicated VMEM.
        return pl.BlockSpec(shape, lambda i: (0,) * len(shape),
                            pipeline_mode=pl.Buffered(1))

    # TODO(synk): for production UNet image sizes, tile rows into bands with a
    # 4-row halo (grid=(N, n_bands), both "parallel"), sized <=~48 MiB on v7x /
    # ~100 MiB on v5e-v6e, and tile Cout to the MXU width (256 v6e/v7x, 128 v5e).
    ftr_flat, pooled = pl.pallas_call(
        kern,
        out_shape=(
            jax.ShapeDtypeStruct((n, hout * wout, cout), jnp.float32),
            jax.ShapeDtypeStruct((n, hp * wp, cout), jnp.bfloat16),
        ),
        grid=(n,),
        in_specs=[
            pl.BlockSpec((1, l0, cin), lambda i: (i, 0, 0)),
            const_spec((9, cin, cout)),
            const_spec((1, cout)),
            const_spec((9, cout, cout)),
            const_spec((1, cout)),
            const_spec((hp * wp, lg)),
        ],
        out_specs=(
            pl.BlockSpec((1, hout * wout, cout), lambda i: (i, 0, 0)),
            pl.BlockSpec((1, hp * wp, cout), lambda i: (i, 0, 0)),
        ),
        compiler_params=pltpu.CompilerParams(
            dimension_semantics=("parallel",),
            vmem_limit_bytes=32 * 1024 * 1024),
    )(x_flat, w1m, b1m, w2m, b2m, sel)

    # Skip tensor back to torch's NCHW (reshape is free; one small transpose).
    # TODO(synk): keep NHWC (or do a lane-dense NCHW epilogue store in-kernel)
    # if the consumer does not strictly require torch's NCHW layout.
    ftr = jnp.transpose(ftr_flat.reshape(n, hout, wout, cout), (0, 3, 1, 2))
    return ftr, pooled, (hp, wp)


def encoder_forward(x_nchw, params):
    """Mirrors Encoder.forward: returns the list of per-block outputs (NCHW)."""
    n, c0, h, w = x_nchw.shape
    # NCHW -> flat channels-minor once at the input; after that the pooled bf16
    # activation flows pallas_call -> pallas_call with no glue ops in between.
    x_flat = jnp.transpose(x_nchw, (0, 2, 3, 1)).reshape(n, h * w, c0)
    ftrs = []
    # TODO(synk): for small-batch inference at these tiny shapes, fuse all
    # blocks into one pallas_call (all weights resident in VMEM, only the skip
    # tensors written to HBM) to remove the remaining per-call fixed cost.
    for (w1, b1), (w2, b2) in params:
        ftr, pooled, (h, w) = block_forward(x_flat, h, w, w1, b1, w2, b2)
        ftrs.append(ftr)
        x_flat = pooled   # like torch, the last pooled tensor is simply unused
    return ftrs


def init_params(key, chs):
    """Deterministic Conv2d-style init. Weights stored HWIO: (3,3,Cin,Cout)."""
    params = []
    for i in range(len(chs) - 1):
        in_ch, out_ch = chs[i], chs[i + 1]
        block = []
        for (ci, co) in ((in_ch, out_ch), (out_ch, out_ch)):
            key, kw, kb = jax.random.split(key, 3)
            bound = 1.0 / (ci * 9) ** 0.5
            w = jax.random.uniform(kw, (3, 3, ci, co), jnp.float32, -bound, bound)
            b = jax.random.uniform(kb, (co,), jnp.float32, -bound, bound)
            block.append((w, b))
        params.append(block)
    return params


# ---------------------------- pure-JAX reference ----------------------------
# Mirrors the kernel's mixed precision: bf16 conv inputs, f32 accumulation.

def _ref_conv3x3_relu(x, w, b):
    y = lax.conv_general_dilated(
        x.astype(jnp.bfloat16), w.astype(jnp.bfloat16),
        window_strides=(1, 1), padding="VALID",
        dimension_numbers=("NHWC", "HWIO", "NHWC"),
        preferred_element_type=jnp.float32)
    return jnp.maximum(y + b[None, None, None, :], 0.0)


def _ref_maxpool2x2(x):
    n, h, w, c = x.shape
    x = x[:, :(h // 2) * 2, :(w // 2) * 2, :]
    return x.reshape(n, h // 2, 2, w // 2, 2, c).max(axis=(2, 4))


def _ref_encoder(x_nchw, params):
    x = jnp.transpose(x_nchw, (0, 2, 3, 1))
    ftrs = []
    for i, block in enumerate(params):
        for (w, b) in block:
            x = _ref_conv3x3_relu(x, w, b)
        ftrs.append(jnp.transpose(x, (0, 3, 1, 2)))
        if i < len(params) - 1:
            x = _ref_maxpool2x2(x)
    return ftrs


if __name__ == "__main__":
    key = jax.random.PRNGKey(0)
    kx, kp = jax.random.split(key)

    chs = (4, 8, 16)                                          # Encoder(chs)
    x = jax.random.normal(kx, (2, 4, 16, 16), jnp.float32)    # NCHW, like torch
    params = init_params(kp, chs)

    fwd = jax.jit(encoder_forward)
    ftrs = fwd(x, params)
    ftrs = [jax.block_until_ready(f) for f in ftrs]

    # Sanity check vs. a pure-JAX reference with matching mixed precision;
    # tolerance covers bf16 input rounding and accumulation-order differences.
    ref = _ref_encoder(x, params)
    for got, want in zip(ftrs, ref):
        assert got.shape == want.shape, (got.shape, want.shape)
        err = float(jnp.max(jnp.abs(got - want)))
        assert jnp.allclose(got, want, rtol=2e-2, atol=2e-2), f"mismatch: {err}"

    print("KERNEL_OK")
</pallas_src>

<mosaic_0001>
module attributes {stable_mosaic.version = 11 : i64} {
  func.func @_block_kernel(%arg0: i32, %arg1: memref<1x256x4xf32, #tpu.memory_space<vmem>>, %arg2: memref<9x4x8xbf16, #tpu.memory_space<vmem>>, %arg3: memref<1x8xf32, #tpu.memory_space<vmem>>, %arg4: memref<9x8x8xbf16, #tpu.memory_space<vmem>>, %arg5: memref<1x8xf32, #tpu.memory_space<vmem>>, %arg6: memref<36x171xf32, #tpu.memory_space<vmem>>, %arg7: memref<1x144x8xf32, #tpu.memory_space<vmem>>, %arg8: memref<1x36x8xbf16, #tpu.memory_space<vmem>>) attributes {dimension_semantics = [#tpu.dimension_semantics<parallel>], iteration_bounds = array<i64: 2>, scalar_prefetch = 0 : i64, scratch_operands = 0 : i64, tpu.core_type = #tpu.core_type<tc>, window_params = [{transform_indices = @transform_0, window_bounds = array<i64: 1, 256, 4>}, {pipeline_mode = #tpu.pipeline_mode<synchronous>, transform_indices = @transform_1, window_bounds = array<i64: 9, 4, 8>}, {pipeline_mode = #tpu.pipeline_mode<synchronous>, transform_indices = @transform_2, window_bounds = array<i64: 1, 8>}, {pipeline_mode = #tpu.pipeline_mode<synchronous>, transform_indices = @transform_3, window_bounds = array<i64: 9, 8, 8>}, {pipeline_mode = #tpu.pipeline_mode<synchronous>, transform_indices = @transform_4, window_bounds = array<i64: 1, 8>}, {pipeline_mode = #tpu.pipeline_mode<synchronous>, transform_indices = @transform_5, window_bounds = array<i64: 36, 171>}, {transform_indices = @transform_6, window_bounds = array<i64: 1, 144, 8>}, {transform_indices = @transform_7, window_bounds = array<i64: 1, 36, 8>}]} {
    %c0 = arith.constant 0 : index
    %c0_0 = arith.constant 0 : index
    %c0_1 = arith.constant 0 : index
    %0 = vector.load %arg1[%c0, %c0_0, %c0_1] : memref<1x256x4xf32, #tpu.memory_space<vmem>>, vector<1x256x4xf32>
    %1 = vector.shape_cast %0 : vector<1x256x4xf32> to vector<256x4xf32>
    %2 = arith.truncf %1 : vector<256x4xf32> to vector<256x4xbf16>
    %cst = arith.constant 0.000000e+00 : f32
    %3 = vector.broadcast %cst : f32 to vector<222x8xf32>
    %4 = vector.extract_strided_slice %2 {offsets = [0, 0], sizes = [222, 4], strides = [1, 1]} : vector<256x4xbf16> to vector<222x4xbf16>
    %c0_2 = arith.constant 0 : index
    %c0_3 = arith.constant 0 : index
    %c0_4 = arith.constant 0 : index
    %5 = vector.load %arg2[%c0_2, %c0_3, %c0_4] : memref<9x4x8xbf16, #tpu.memory_space<vmem>>, vector<1x4x8xbf16>
    %6 = vector.shape_cast %5 : vector<1x4x8xbf16> to vector<4x8xbf16>
    %cst_5 = arith.constant dense<0.000000e+00> : vector<222x8xf32>
    %7 = tpu.matmul %4, %6, %cst_5 {dimension_numbers = #tpu.dot_dimension_numbers<[1], [0], [0], [1], [0, 0, 1, 1], [], []>} : vector<222x4xbf16>, vector<4x8xbf16>, vector<222x8xf32> -> vector<222x8xf32>
    %8 = arith.addf %3, %7 : vector<222x8xf32>
    %9 = vector.extract_strided_slice %2 {offsets = [1, 0], sizes = [222, 4], strides = [1, 1]} : vector<256x4xbf16> to vector<222x4xbf16>
    %c1 = arith.constant 1 : index
    %c0_6 = arith.constant 0 : index
    %c0_7 = arith.constant 0 : index
    %10 = vector.load %arg2[%c1, %c0_6, %c0_7] : memref<9x4x8xbf16, #tpu.memory_space<vmem>>, vector<1x4x8xbf16>
    %11 = vector.shape_cast %10 : vector<1x4x8xbf16> to vector<4x8xbf16>
    %cst_8 = arith.constant dense<0.000000e+00> : vector<222x8xf32>
    %12 = tpu.matmul %9, %11, %cst_8 {dimension_numbers = #tpu.dot_dimension_numbers<[1], [0], [0], [1], [0, 0, 1, 1], [], []>} : vector<222x4xbf16>, vector<4x8xbf16>, vector<222x8xf32> -> vector<222x8xf32>
    %13 = arith.addf %8, %12 : vector<222x8xf32>
    %14 = vector.extract_strided_slice %2 {offsets = [2, 0], sizes = [222, 4], strides = [1, 1]} : vector<256x4xbf16> to vector<222x4xbf16>
    %c2 = arith.constant 2 : index
    %c0_9 = arith.constant 0 : index
    %c0_10 = arith.constant 0 : index
    %15 = vector.load %arg2[%c2, %c0_9, %c0_10] : memref<9x4x8xbf16, #tpu.memory_space<vmem>>, vector<1x4x8xbf16>
    %16 = vector.shape_cast %15 : vector<1x4x8xbf16> to vector<4x8xbf16>
    %cst_11 = arith.constant dense<0.000000e+00> : vector<222x8xf32>
    %17 = tpu.matmul %14, %16, %cst_11 {dimension_numbers = #tpu.dot_dimension_numbers<[1], [0], [0], [1], [0, 0, 1, 1], [], []>} : vector<222x4xbf16>, vector<4x8xbf16>, vector<222x8xf32> -> vector<222x8xf32>
    %18 = arith.addf %13, %17 : vector<222x8xf32>
    %19 = vector.extract_strided_slice %2 {offsets = [16, 0], sizes = [222, 4], strides = [1, 1]} : vector<256x4xbf16> to vector<222x4xbf16>
    %c3 = arith.constant 3 : index
    %c0_12 = arith.constant 0 : index
    %c0_13 = arith.constant 0 : index
    %20 = vector.load %arg2[%c3, %c0_12, %c0_13] : memref<9x4x8xbf16, #tpu.memory_space<vmem>>, vector<1x4x8xbf16>
    %21 = vector.shape_cast %20 : vector<1x4x8xbf16> to vector<4x8xbf16>
    %cst_14 = arith.constant dense<0.000000e+00> : vector<222x8xf32>
    %22 = tpu.matmul %19, %21, %cst_14 {dimension_numbers = #tpu.dot_dimension_numbers<[1], [0], [0], [1], [0, 0, 1, 1], [], []>} : vector<222x4xbf16>, vector<4x8xbf16>, vector<222x8xf32> -> vector<222x8xf32>
    %23 = arith.addf %18, %22 : vector<222x8xf32>
    %24 = vector.extract_strided_slice %2 {offsets = [17, 0], sizes = [222, 4], strides = [1, 1]} : vector<256x4xbf16> to vector<222x4xbf16>
    %c4 = arith.constant 4 : index
    %c0_15 = arith.constant 0 : index
    %c0_16 = arith.constant 0 : index
    %25 = vector.load %arg2[%c4, %c0_15, %c0_16] : memref<9x4x8xbf16, #tpu.memory_space<vmem>>, vector<1x4x8xbf16>
    %26 = vector.shape_cast %25 : vector<1x4x8xbf16> to vector<4x8xbf16>
    %cst_17 = arith.constant dense<0.000000e+00> : vector<222x8xf32>
    %27 = tpu.matmul %24, %26, %cst_17 {dimension_numbers = #tpu.dot_dimension_numbers<[1], [0], [0], [1], [0, 0, 1, 1], [], []>} : vector<222x4xbf16>, vector<4x8xbf16>, vector<222x8xf32> -> vector<222x8xf32>
    %28 = arith.addf %23, %27 : vector<222x8xf32>
    %29 = vector.extract_strided_slice %2 {offsets = [18, 0], sizes = [222, 4], strides = [1, 1]} : vector<256x4xbf16> to vector<222x4xbf16>
    %c5 = arith.constant 5 : index
    %c0_18 = arith.constant 0 : index
    %c0_19 = arith.constant 0 : index
    %30 = vector.load %arg2[%c5, %c0_18, %c0_19] : memref<9x4x8xbf16, #tpu.memory_space<vmem>>, vector<1x4x8xbf16>
    %31 = vector.shape_cast %30 : vector<1x4x8xbf16> to vector<4x8xbf16>
    %cst_20 = arith.constant dense<0.000000e+00> : vector<222x8xf32>
    %32 = tpu.matmul %29, %31, %cst_20 {dimension_numbers = #tpu.dot_dimension_numbers<[1], [0], [0], [1], [0, 0, 1, 1], [], []>} : vector<222x4xbf16>, vector<4x8xbf16>, vector<222x8xf32> -> vector<222x8xf32>
    %33 = arith.addf %28, %32 : vector<222x8xf32>
    %34 = vector.extract_strided_slice %2 {offsets = [32, 0], sizes = [222, 4], strides = [1, 1]} : vector<256x4xbf16> to vector<222x4xbf16>
    %c6 = arith.constant 6 : index
    %c0_21 = arith.constant 0 : index
    %c0_22 = arith.constant 0 : index
    %35 = vector.load %arg2[%c6, %c0_21, %c0_22] : memref<9x4x8xbf16, #tpu.memory_space<vmem>>, vector<1x4x8xbf16>
    %36 = vector.shape_cast %35 : vector<1x4x8xbf16> to vector<4x8xbf16>
    %cst_23 = arith.constant dense<0.000000e+00> : vector<222x8xf32>
    %37 = tpu.matmul %34, %36, %cst_23 {dimension_numbers = #tpu.dot_dimension_numbers<[1], [0], [0], [1], [0, 0, 1, 1], [], []>} : vector<222x4xbf16>, vector<4x8xbf16>, vector<222x8xf32> -> vector<222x8xf32>
    %38 = arith.addf %33, %37 : vector<222x8xf32>
    %39 = vector.extract_strided_slice %2 {offsets = [33, 0], sizes = [222, 4], strides = [1, 1]} : vector<256x4xbf16> to vector<222x4xbf16>
    %c7 = arith.constant 7 : index
    %c0_24 = arith.constant 0 : index
    %c0_25 = arith.constant 0 : index
    %40 = vector.load %arg2[%c7, %c0_24, %c0_25] : memref<9x4x8xbf16, #tpu.memory_space<vmem>>, vector<1x4x8xbf16>
    %41 = vector.shape_cast %40 : vector<1x4x8xbf16> to vector<4x8xbf16>
    %cst_26 = arith.constant dense<0.000000e+00> : vector<222x8xf32>
    %42 = tpu.matmul %39, %41, %cst_26 {dimension_numbers = #tpu.dot_dimension_numbers<[1], [0], [0], [1], [0, 0, 1, 1], [], []>} : vector<222x4xbf16>, vector<4x8xbf16>, vector<222x8xf32> -> vector<222x8xf32>
    %43 = arith.addf %38, %42 : vector<222x8xf32>
    %44 = vector.extract_strided_slice %2 {offsets = [34, 0], sizes = [222, 4], strides = [1, 1]} : vector<256x4xbf16> to vector<222x4xbf16>
    %c8 = arith.constant 8 : index
    %c0_27 = arith.constant 0 : index
    %c0_28 = arith.constant 0 : index
    %45 = vector.load %arg2[%c8, %c0_27, %c0_28] : memref<9x4x8xbf16, #tpu.memory_space<vmem>>, vector<1x4x8xbf16>
    %46 = vector.shape_cast %45 : vector<1x4x8xbf16> to vector<4x8xbf16>
    %cst_29 = arith.constant dense<0.000000e+00> : vector<222x8xf32>
    %47 = tpu.matmul %44, %46, %cst_29 {dimension_numbers = #tpu.dot_dimension_numbers<[1], [0], [0], [1], [0, 0, 1, 1], [], []>} : vector<222x4xbf16>, vector<4x8xbf16>, vector<222x8xf32> -> vector<222x8xf32>
    %48 = arith.addf %43, %47 : vector<222x8xf32>
    %c0_30 = arith.constant 0 : index
    %c0_31 = arith.constant 0 : index
    %49 = vector.load %arg3[%c0_30, %c0_31] : memref<1x8xf32, #tpu.memory_space<vmem>>, vector<1x8xf32>
    %50 = vector.broadcast %49 : vector<1x8xf32> to vector<222x8xf32>
    %51 = arith.addf %48, %50 : vector<222x8xf32>
    %cst_32 = arith.constant 0.000000e+00 : f32
    %52 = vector.broadcast %cst_32 : f32 to vector<222x8xf32>
    %53 = arith.maximumf %51, %52 : vector<222x8xf32>
    %54 = arith.truncf %53 : vector<222x8xf32> to vector<222x8xbf16>
    %cst_33 = arith.constant 0.000000e+00 : f32
    %55 = vector.broadcast %cst_33 : f32 to vector<188x8xf32>
    %56 = vector.extract_strided_slice %54 {offsets = [0, 0], sizes = [188, 8], strides = [1, 1]} : vector<222x8xbf16> to vector<188x8xbf16>
    %c0_34 = arith.constant 0 : index
    %c0_35 = arith.constant 0 : index
    %c0_36 = arith.constant 0 : index
    %57 = vector.load %arg4[%c0_34, %c0_35, %c0_36] : memref<9x8x8xbf16, #tpu.memory_space<vmem>>, vector<1x8x8xbf16>
    %58 = vector.shape_cast %57 : vector<1x8x8xbf16> to vector<8x8xbf16>
    %cst_37 = arith.constant dense<0.000000e+00> : vector<188x8xf32>
    %59 = tpu.matmul %56, %58, %cst_37 {dimension_numbers = #tpu.dot_dimension_numbers<[1], [0], [0], [1], [0, 0, 1, 1], [], []>} : vector<188x8xbf16>, vector<8x8xbf16>, vector<188x8xf32> -> vector<188x8xf32>
    %60 = arith.addf %55, %59 : vector<188x8xf32>
    %61 = vector.extract_strided_slice %54 {offsets = [1, 0], sizes = [188, 8], strides = [1, 1]} : vector<222x8xbf16> to vector<188x8xbf16>
    %c1_38 = arith.constant 1 : index
    %c0_39 = arith.constant 0 : index
    %c0_40 = arith.constant 0 : index
    %62 = vector.load %arg4[%c1_38, %c0_39, %c0_40] : memref<9x8x8xbf16, #tpu.memory_space<vmem>>, vector<1x8x8xbf16>
    %63 = vector.shape_cast %62 : vector<1x8x8xbf16> to vector<8x8xbf16>
    %cst_41 = arith.constant dense<0.000000e+00> : vector<188x8xf32>
    %64 = tpu.matmul %61, %63, %cst_41 {dimension_numbers = #tpu.dot_dimension_numbers<[1], [0], [0], [1], [0, 0, 1, 1], [], []>} : vector<188x8xbf16>, vector<8x8xbf16>, vector<188x8xf32> -> vector<188x8xf32>
    %65 = arith.addf %60, %64 : vector<188x8xf32>
    %66 = vector.extract_strided_slice %54 {offsets = [2, 0], sizes = [188, 8], strides = [1, 1]} : vector<222x8xbf16> to vector<188x8xbf16>
    %c2_42 = arith.constant 2 : index
    %c0_43 = arith.constant 0 : index
    %c0_44 = arith.constant 0 : index
    %67 = vector.load %arg4[%c2_42, %c0_43, %c0_44] : memref<9x8x8xbf16, #tpu.memory_space<vmem>>, vector<1x8x8xbf16>
    %68 = vector.shape_cast %67 : vector<1x8x8xbf16> to vector<8x8xbf16>
    %cst_45 = arith.constant dense<0.000000e+00> : vector<188x8xf32>
    %69 = tpu.matmul %66, %68, %cst_45 {dimension_numbers = #tpu.dot_dimension_numbers<[1], [0], [0], [1], [0, 0, 1, 1], [], []>} : vector<188x8xbf16>, vector<8x8xbf16>, vector<188x8xf32> -> vector<188x8xf32>
    %70 = arith.addf %65, %69 : vector<188x8xf32>
    %71 = vector.extract_strided_slice %54 {offsets = [16, 0], sizes = [188, 8], strides = [1, 1]} : vector<222x8xbf16> to vector<188x8xbf16>
    %c3_46 = arith.constant 3 : index
    %c0_47 = arith.constant 0 : index
    %c0_48 = arith.constant 0 : index
    %72 = vector.load %arg4[%c3_46, %c0_47, %c0_48] : memref<9x8x8xbf16, #tpu.memory_space<vmem>>, vector<1x8x8xbf16>
    %73 = vector.shape_cast %72 : vector<1x8x8xbf16> to vector<8x8xbf16>
    %cst_49 = arith.constant dense<0.000000e+00> : vector<188x8xf32>
    %74 = tpu.matmul %71, %73, %cst_49 {dimension_numbers = #tpu.dot_dimension_numbers<[1], [0], [0], [1], [0, 0, 1, 1], [], []>} : vector<188x8xbf16>, vector<8x8xbf16>, vector<188x8xf32> -> vector<188x8xf32>
    %75 = arith.addf %70, %74 : vector<188x8xf32>
    %76 = vector.extract_strided_slice %54 {offsets = [17, 0], sizes = [188, 8], strides = [1, 1]} : vector<222x8xbf16> to vector<188x8xbf16>
    %c4_50 = arith.constant 4 : index
    %c0_51 = arith.constant 0 : index
    %c0_52 = arith.constant 0 : index
    %77 = vector.load %arg4[%c4_50, %c0_51, %c0_52] : memref<9x8x8xbf16, #tpu.memory_space<vmem>>, vector<1x8x8xbf16>
    %78 = vector.shape_cast %77 : vector<1x8x8xbf16> to vector<8x8xbf16>
    %cst_53 = arith.constant dense<0.000000e+00> : vector<188x8xf32>
    %79 = tpu.matmul %76, %78, %cst_53 {dimension_numbers = #tpu.dot_dimension_numbers<[1], [0], [0], [1], [0, 0, 1, 1], [], []>} : vector<188x8xbf16>, vector<8x8xbf16>, vector<188x8xf32> -> vector<188x8xf32>
    %80 = arith.addf %75, %79 : vector<188x8xf32>
    %81 = vector.extract_strided_slice %54 {offsets = [18, 0], sizes = [188, 8], strides = [1, 1]} : vector<222x8xbf16> to vector<188x8xbf16>
    %c5_54 = arith.constant 5 : index
    %c0_55 = arith.constant 0 : index
    %c0_56 = arith.constant 0 : index
    %82 = vector.load %arg4[%c5_54, %c0_55, %c0_56] : memref<9x8x8xbf16, #tpu.memory_space<vmem>>, vector<1x8x8xbf16>
    %83 = vector.shape_cast %82 : vector<1x8x8xbf16> to vector<8x8xbf16>
    %cst_57 = arith.constant dense<0.000000e+00> : vector<188x8xf32>
    %84 = tpu.matmul %81, %83, %cst_57 {dimension_numbers = #tpu.dot_dimension_numbers<[1], [0], [0], [1], [0, 0, 1, 1], [], []>} : vector<188x8xbf16>, vector<8x8xbf16>, vector<188x8xf32> -> vector<188x8xf32>
    %85 = arith.addf %80, %84 : vector<188x8xf32>
    %86 = vector.extract_strided_slice %54 {offsets = [32, 0], sizes = [188, 8], strides = [1, 1]} : vector<222x8xbf16> to vector<188x8xbf16>
    %c6_58 = arith.constant 6 : index
    %c0_59 = arith.constant 0 : index
    %c0_60 = arith.constant 0 : index
    %87 = vector.load %arg4[%c6_58, %c0_59, %c0_60] : memref<9x8x8xbf16, #tpu.memory_space<vmem>>, vector<1x8x8xbf16>
    %88 = vector.shape_cast %87 : vector<1x8x8xbf16> to vector<8x8xbf16>
    %cst_61 = arith.constant dense<0.000000e+00> : vector<188x8xf32>
    %89 = tpu.matmul %86, %88, %cst_61 {dimension_numbers = #tpu.dot_dimension_numbers<[1], [0], [0], [1], [0, 0, 1, 1], [], []>} : vector<188x8xbf16>, vector<8x8xbf16>, vector<188x8xf32> -> vector<188x8xf32>
    %90 = arith.addf %85, %89 : vector<188x8xf32>
    %91 = vector.extract_strided_slice %54 {offsets = [33, 0], sizes = [188, 8], strides = [1, 1]} : vector<222x8xbf16> to vector<188x8xbf16>
    %c7_62 = arith.constant 7 : index
    %c0_63 = arith.constant 0 : index
    %c0_64 = arith.constant 0 : index
    %92 = vector.load %arg4[%c7_62, %c0_63, %c0_64] : memref<9x8x8xbf16, #tpu.memory_space<vmem>>, vector<1x8x8xbf16>
    %93 = vector.shape_cast %92 : vector<1x8x8xbf16> to vector<8x8xbf16>
    %cst_65 = arith.constant dense<0.000000e+00> : vector<188x8xf32>
    %94 = tpu.matmul %91, %93, %cst_65 {dimension_numbers = #tpu.dot_dimension_numbers<[1], [0], [0], [1], [0, 0, 1, 1], [], []>} : vector<188x8xbf16>, vector<8x8xbf16>, vector<188x8xf32> -> vector<188x8xf32>
    %95 = arith.addf %90, %94 : vector<188x8xf32>
    %96 = vector.extract_strided_slice %54 {offsets = [34, 0], sizes = [188, 8], strides = [1, 1]} : vector<222x8xbf16> to vector<188x8xbf16>
    %c8_66 = arith.constant 8 : index
    %c0_67 = arith.constant 0 : index
    %c0_68 = arith.constant 0 : index
    %97 = vector.load %arg4[%c8_66, %c0_67, %c0_68] : memref<9x8x8xbf16, #tpu.memory_space<vmem>>, vector<1x8x8xbf16>
    %98 = vector.shape_cast %97 : vector<1x8x8xbf16> to vector<8x8xbf16>
    %cst_69 = arith.constant dense<0.000000e+00> : vector<188x8xf32>
    %99 = tpu.matmul %96, %98, %cst_69 {dimension_numbers = #tpu.dot_dimension_numbers<[1], [0], [0], [1], [0, 0, 1, 1], [], []>} : vector<188x8xbf16>, vector<8x8xbf16>, vector<188x8xf32> -> vector<188x8xf32>
    %100 = arith.addf %95, %99 : vector<188x8xf32>
    %c0_70 = arith.constant 0 : index
    %c0_71 = arith.constant 0 : index
    %101 = vector.load %arg5[%c0_70, %c0_71] : memref<1x8xf32, #tpu.memory_space<vmem>>, vector<1x8xf32>
    %102 = vector.broadcast %101 : vector<1x8xf32> to vector<188x8xf32>
    %103 = arith.addf %100, %102 : vector<188x8xf32>
    %cst_72 = arith.constant 0.000000e+00 : f32
    %104 = vector.broadcast %cst_72 : f32 to vector<188x8xf32>
    %105 = arith.maximumf %103, %104 : vector<188x8xf32>
    %106 = vector.extract_strided_slice %105 {offsets = [0, 0], sizes = [12, 8], strides = [1, 1]} : vector<188x8xf32> to vector<12x8xf32>
    %107 = vector.extract_strided_slice %105 {offsets = [16, 0], sizes = [12, 8], strides = [1, 1]} : vector<188x8xf32> to vector<12x8xf32>
    %108 = vector.extract_strided_slice %105 {offsets = [32, 0], sizes = [12, 8], strides = [1, 1]} : vector<188x8xf32> to vector<12x8xf32>
    %109 = vector.extract_strided_slice %105 {offsets = [48, 0], sizes = [12, 8], strides = [1, 1]} : vector<188x8xf32> to vector<12x8xf32>
    %110 = vector.extract_strided_slice %105 {offsets = [64, 0], sizes = [12, 8], strides = [1, 1]} : vector<188x8xf32> to vector<12x8xf32>
    %111 = vector.extract_strided_slice %105 {offsets = [80, 0], sizes = [12, 8], strides = [1, 1]} : vector<188x8xf32> to vector<12x8xf32>
    %112 = vector.extract_strided_slice %105 {offsets = [96, 0], sizes = [12, 8], strides = [1, 1]} : vector<188x8xf32> to vector<12x8xf32>
    %113 = vector.extract_strided_slice %105 {offsets = [112, 0], sizes = [12, 8], strides = [1, 1]} : vector<188x8xf32> to vector<12x8xf32>
    %114 = vector.extract_strided_slice %105 {offsets = [128, 0], sizes = [12, 8], strides = [1, 1]} : vector<188x8xf32> to vector<12x8xf32>
    %115 = vector.extract_strided_slice %105 {offsets = [144, 0], sizes = [12, 8], strides = [1, 1]} : vector<188x8xf32> to vector<12x8xf32>
    %116 = vector.extract_strided_slice %105 {offsets = [160, 0], sizes = [12, 8], strides = [1, 1]} : vector<188x8xf32> to vector<12x8xf32>
    %117 = vector.extract_strided_slice %105 {offsets = [176, 0], sizes = [12, 8], strides = [1, 1]} : vector<188x8xf32> to vector<12x8xf32>
    %118 = tpu.concatenate %106, %107, %108, %109, %110, %111, %112, %113, %114, %115, %116, %117 in 0 : vector<12x8xf32>, vector<12x8xf32>, vector<12x8xf32>, vector<12x8xf32>, vector<12x8xf32>, vector<12x8xf32>, vector<12x8xf32>, vector<12x8xf32>, vector<12x8xf32>, vector<12x8xf32>, vector<12x8xf32>, vector<12x8xf32> -> vector<144x8xf32>
    %c0_73 = arith.constant 0 : index
    %c0_74 = arith.constant 0 : index
    %c0_75 = arith.constant 0 : index
    %119 = vector.load %arg7[%c0_73, %c0_74, %c0_75] : memref<1x144x8xf32, #tpu.memory_space<vmem>>, vector<1x144x8xf32>
    %120 = vector.shape_cast %119 : vector<1x144x8xf32> to vector<144x8xf32>
    %121 = vector.shape_cast %118 : vector<144x8xf32> to vector<1x144x8xf32>
    tpu.vector_store %arg7[%c0_73, %c0_74, %c0_75], %121 {strides = array<i32>} : memref<1x144x8xf32, #tpu.memory_space<vmem>>, vector<1x144x8xf32>,
    %122 = vector.extract_strided_slice %105 {offsets = [0, 0], sizes = [171, 8], strides = [1, 1]} : vector<188x8xf32> to vector<171x8xf32>
    %123 = vector.extract_strided_slice %105 {offsets = [1, 0], sizes = [171, 8], strides = [1, 1]} : vector<188x8xf32> to vector<171x8xf32>
    %124 = arith.maximumf %122, %123 : vector<171x8xf32>
    %125 = vector.extract_strided_slice %105 {offsets = [16, 0], sizes = [171, 8], strides = [1, 1]} : vector<188x8xf32> to vector<171x8xf32>
    %126 = arith.maximumf %124, %125 : vector<171x8xf32>
    %127 = vector.extract_strided_slice %105 {offsets = [17, 0], sizes = [171, 8], strides = [1, 1]} : vector<188x8xf32> to vector<171x8xf32>
    %128 = arith.maximumf %126, %127 : vector<171x8xf32>
    %c0_76 = arith.constant 0 : index
    %c0_77 = arith.constant 0 : index
    %129 = vector.load %arg6[%c0_76, %c0_77] : memref<36x171xf32, #tpu.memory_space<vmem>>, vector<36x171xf32>
    %cst_78 = arith.constant dense<0.000000e+00> : vector<36x8xf32>
    %130 = tpu.matmul %129, %128, %cst_78 {dimension_numbers = #tpu.dot_dimension_numbers<[1], [0], [0], [1], [0, 0, 1, 1], [], []>} : vector<36x171xf32>, vector<171x8xf32>, vector<36x8xf32> -> vector<36x8xf32>
    %131 = arith.truncf %130 : vector<36x8xf32> to vector<36x8xbf16>
    %c0_79 = arith.constant 0 : index
    %c0_80 = arith.constant 0 : index
    %c0_81 = arith.constant 0 : index
    %132 = vector.load %arg8[%c0_79, %c0_80, %c0_81] : memref<1x36x8xbf16, #tpu.memory_space<vmem>>, vector<1x36x8xbf16>
    %133 = vector.shape_cast %132 : vector<1x36x8xbf16> to vector<36x8xbf16>
    %134 = vector.shape_cast %131 : vector<36x8xbf16> to vector<1x36x8xbf16>
    tpu.vector_store %arg8[%c0_79, %c0_80, %c0_81], %134 {strides = array<i32>} : memref<1x36x8xbf16, #tpu.memory_space<vmem>>, vector<1x36x8xbf16>,
    return
  }
  func.func @transform_0(%arg0: i32) -> (i32, i32, i32) {
    %c0_i32 = arith.constant 0 : i32
    %c0_i32_0 = arith.constant 0 : i32
    %c0_i32_1 = arith.constant 0 : i32
    return %arg0, %c0_i32, %c0_i32_0 : i32, i32, i32
  }
  func.func @transform_1(%arg0: i32) -> (i32, i32, i32) {
    %c0_i32 = arith.constant 0 : i32
    %c0_i32_0 = arith.constant 0 : i32
    %c0_i32_1 = arith.constant 0 : i32
    %c0_i32_2 = arith.constant 0 : i32
    return %c0_i32, %c0_i32_0, %c0_i32_1 : i32, i32, i32
  }
  func.func @transform_2(%arg0: i32) -> (i32, i32) {
    %c0_i32 = arith.constant 0 : i32
    %c0_i32_0 = arith.constant 0 : i32
    %c0_i32_1 = arith.constant 0 : i32
    return %c0_i32, %c0_i32_0 : i32, i32
  }
  func.func @transform_3(%arg0: i32) -> (i32, i32, i32) {
    %c0_i32 = arith.constant 0 : i32
    %c0_i32_0 = arith.constant 0 : i32
    %c0_i32_1 = arith.constant 0 : i32
    %c0_i32_2 = arith.constant 0 : i32
    return %c0_i32, %c0_i32_0, %c0_i32_1 : i32, i32, i32
  }
  func.func @transform_4(%arg0: i32) -> (i32, i32) {
    %c0_i32 = arith.constant 0 : i32
    %c0_i32_0 = arith.constant 0 : i32
    %c0_i32_1 = arith.constant 0 : i32
    return %c0_i32, %c0_i32_0 : i32, i32
  }
  func.func @transform_5(%arg0: i32) -> (i32, i32) {
    %c0_i32 = arith.constant 0 : i32
    %c0_i32_0 = arith.constant 0 : i32
    %c0_i32_1 = arith.constant 0 : i32
    return %c0_i32, %c0_i32_0 : i32, i32
  }
  func.func @transform_6(%arg0: i32) -> (i32, i32, i32) {
    %c0_i32 = arith.constant 0 : i32
    %c0_i32_0 = arith.constant 0 : i32
    %c0_i32_1 = arith.constant 0 : i32
    return %arg0, %c0_i32, %c0_i32_0 : i32, i32, i32
  }
  func.func @transform_7(%arg0: i32) -> (i32, i32, i32) {
    %c0_i32 = arith.constant 0 : i32
    %c0_i32_0 = arith.constant 0 : i32
    %c0_i32_1 = arith.constant 0 : i32
    return %arg0, %c0_i32, %c0_i32_0 : i32, i32, i32
  }
}

module attributes {stable_mosaic.version = 11 : i64} {
  func.func @_block_kernel(%arg0: i32, %arg1: memref<1x36x8xbf16, #tpu.memory_space<vmem>>, %arg2: memref<9x8x16xbf16, #tpu.memory_space<vmem>>, %arg3: memref<1x16xf32, #tpu.memory_space<vmem>>, %arg4: memref<9x16x16xbf16, #tpu.memory_space<vmem>>, %arg5: memref<1x16xf32, #tpu.memory_space<vmem>>, %arg6: memref<1x1xf32, #tpu.memory_space<vmem>>, %arg7: memref<1x4x16xf32, #tpu.memory_space<vmem>>, %arg8: memref<1x1x16xbf16, #tpu.memory_space<vmem>>) attributes {dimension_semantics = [#tpu.dimension_semantics<parallel>], iteration_bounds = array<i64: 2>, scalar_prefetch = 0 : i64, scratch_operands = 0 : i64, tpu.core_type = #tpu.core_type<tc>, window_params = [{transform_indices = @transform_0, window_bounds = array<i64: 1, 36, 8>}, {pipeline_mode = #tpu.pipeline_mode<synchronous>, transform_indices = @transform_1, window_bounds = array<i64: 9, 8, 16>}, {pipeline_mode = #tpu.pipeline_mode<synchronous>, transform_indices = @transform_2, window_bounds = array<i64: 1, 16>}, {pipeline_mode = #tpu.pipeline_mode<synchronous>, transform_indices = @transform_3, window_bounds = array<i64: 9, 16, 16>}, {pipeline_mode = #tpu.pipeline_mode<synchronous>, transform_indices = @transform_4, window_bounds = array<i64: 1, 16>}, {pipeline_mode = #tpu.pipeline_mode<synchronous>, transform_indices = @transform_5, window_bounds = array<i64: 1, 1>}, {transform_indices = @transform_6, window_bounds = array<i64: 1, 4, 16>}, {transform_indices = @transform_7, window_bounds = array<i64: 1, 1, 16>}]} {
    %c0 = arith.constant 0 : index
    %c0_0 = arith.constant 0 : index
    %c0_1 = arith.constant 0 : index
    %0 = vector.load %arg1[%c0, %c0_0, %c0_1] : memref<1x36x8xbf16, #tpu.memory_space<vmem>>, vector<1x36x8xbf16>
    %1 = vector.shape_cast %0 : vector<1x36x8xbf16> to vector<36x8xbf16>
    %cst = arith.constant 0.000000e+00 : f32
    %2 = vector.broadcast %cst : f32 to vector<22x16xf32>
    %3 = vector.extract_strided_slice %1 {offsets = [0, 0], sizes = [22, 8], strides = [1, 1]} : vector<36x8xbf16> to vector<22x8xbf16>
    %c0_2 = arith.constant 0 : index
    %c0_3 = arith.constant 0 : index
    %c0_4 = arith.constant 0 : index
    %4 = vector.load %arg2[%c0_2, %c0_3, %c0_4] : memref<9x8x16xbf16, #tpu.memory_space<vmem>>, vector<1x8x16xbf16>
    %5 = vector.shape_cast %4 : vector<1x8x16xbf16> to vector<8x16xbf16>
    %cst_5 = arith.constant dense<0.000000e+00> : vector<22x16xf32>
    %6 = tpu.matmul %3, %5, %cst_5 {dimension_numbers = #tpu.dot_dimension_numbers<[1], [0], [0], [1], [0, 0, 1, 1], [], []>} : vector<22x8xbf16>, vector<8x16xbf16>, vector<22x16xf32> -> vector<22x16xf32>
    %7 = arith.addf %2, %6 : vector<22x16xf32>
    %8 = vector.extract_strided_slice %1 {offsets = [1, 0], sizes = [22, 8], strides = [1, 1]} : vector<36x8xbf16> to vector<22x8xbf16>
    %c1 = arith.constant 1 : index
    %c0_6 = arith.constant 0 : index
    %c0_7 = arith.constant 0 : index
    %9 = vector.load %arg2[%c1, %c0_6, %c0_7] : memref<9x8x16xbf16, #tpu.memory_space<vmem>>, vector<1x8x16xbf16>
    %10 = vector.shape_cast %9 : vector<1x8x16xbf16> to vector<8x16xbf16>
    %cst_8 = arith.constant dense<0.000000e+00> : vector<22x16xf32>
    %11 = tpu.matmul %8, %10, %cst_8 {dimension_numbers = #tpu.dot_dimension_numbers<[1], [0], [0], [1], [0, 0, 1, 1], [], []>} : vector<22x8xbf16>, vector<8x16xbf16>, vector<22x16xf32> -> vector<22x16xf32>
    %12 = arith.addf %7, %11 : vector<22x16xf32>
    %13 = vector.extract_strided_slice %1 {offsets = [2, 0], sizes = [22, 8], strides = [1, 1]} : vector<36x8xbf16> to vector<22x8xbf16>
    %c2 = arith.constant 2 : index
    %c0_9 = arith.constant 0 : index
    %c0_10 = arith.constant 0 : index
    %14 = vector.load %arg2[%c2, %c0_9, %c0_10] : memref<9x8x16xbf16, #tpu.memory_space<vmem>>, vector<1x8x16xbf16>
    %15 = vector.shape_cast %14 : vector<1x8x16xbf16> to vector<8x16xbf16>
    %cst_11 = arith.constant dense<0.000000e+00> : vector<22x16xf32>
    %16 = tpu.matmul %13, %15, %cst_11 {dimension_numbers = #tpu.dot_dimension_numbers<[1], [0], [0], [1], [0, 0, 1, 1], [], []>} : vector<22x8xbf16>, vector<8x16xbf16>, vector<22x16xf32> -> vector<22x16xf32>
    %17 = arith.addf %12, %16 : vector<22x16xf32>
    %18 = vector.extract_strided_slice %1 {offsets = [6, 0], sizes = [22, 8], strides = [1, 1]} : vector<36x8xbf16> to vector<22x8xbf16>
    %c3 = arith.constant 3 : index
    %c0_12 = arith.constant 0 : index
    %c0_13 = arith.constant 0 : index
    %19 = vector.load %arg2[%c3, %c0_12, %c0_13] : memref<9x8x16xbf16, #tpu.memory_space<vmem>>, vector<1x8x16xbf16>
    %20 = vector.shape_cast %19 : vector<1x8x16xbf16> to vector<8x16xbf16>
    %cst_14 = arith.constant dense<0.000000e+00> : vector<22x16xf32>
    %21 = tpu.matmul %18, %20, %cst_14 {dimension_numbers = #tpu.dot_dimension_numbers<[1], [0], [0], [1], [0, 0, 1, 1], [], []>} : vector<22x8xbf16>, vector<8x16xbf16>, vector<22x16xf32> -> vector<22x16xf32>
    %22 = arith.addf %17, %21 : vector<22x16xf32>
    %23 = vector.extract_strided_slice %1 {offsets = [7, 0], sizes = [22, 8], strides = [1, 1]} : vector<36x8xbf16> to vector<22x8xbf16>
    %c4 = arith.constant 4 : index
    %c0_15 = arith.constant 0 : index
    %c0_16 = arith.constant 0 : index
    %24 = vector.load %arg2[%c4, %c0_15, %c0_16] : memref<9x8x16xbf16, #tpu.memory_space<vmem>>, vector<1x8x16xbf16>
    %25 = vector.shape_cast %24 : vector<1x8x16xbf16> to vector<8x16xbf16>
    %cst_17 = arith.constant dense<0.000000e+00> : vector<22x16xf32>
    %26 = tpu.matmul %23, %25, %cst_17 {dimension_numbers = #tpu.dot_dimension_numbers<[1], [0], [0], [1], [0, 0, 1, 1], [], []>} : vector<22x8xbf16>, vector<8x16xbf16>, vector<22x16xf32> -> vector<22x16xf32>
    %27 = arith.addf %22, %26 : vector<22x16xf32>
    %28 = vector.extract_strided_slice %1 {offsets = [8, 0], sizes = [22, 8], strides = [1, 1]} : vector<36x8xbf16> to vector<22x8xbf16>
    %c5 = arith.constant 5 : index
    %c0_18 = arith.constant 0 : index
    %c0_19 = arith.constant 0 : index
    %29 = vector.load %arg2[%c5, %c0_18, %c0_19] : memref<9x8x16xbf16, #tpu.memory_space<vmem>>, vector<1x8x16xbf16>
    %30 = vector.shape_cast %29 : vector<1x8x16xbf16> to vector<8x16xbf16>
    %cst_20 = arith.constant dense<0.000000e+00> : vector<22x16xf32>
    %31 = tpu.matmul %28, %30, %cst_20 {dimension_numbers = #tpu.dot_dimension_numbers<[1], [0], [0], [1], [0, 0, 1, 1], [], []>} : vector<22x8xbf16>, vector<8x16xbf16>, vector<22x16xf32> -> vector<22x16xf32>
    %32 = arith.addf %27, %31 : vector<22x16xf32>
    %33 = vector.extract_strided_slice %1 {offsets = [12, 0], sizes = [22, 8], strides = [1, 1]} : vector<36x8xbf16> to vector<22x8xbf16>
    %c6 = arith.constant 6 : index
    %c0_21 = arith.constant 0 : index
    %c0_22 = arith.constant 0 : index
    %34 = vector.load %arg2[%c6, %c0_21, %c0_22] : memref<9x8x16xbf16, #tpu.memory_space<vmem>>, vector<1x8x16xbf16>
    %35 = vector.shape_cast %34 : vector<1x8x16xbf16> to vector<8x16xbf16>
    %cst_23 = arith.constant dense<0.000000e+00> : vector<22x16xf32>
    %36 = tpu.matmul %33, %35, %cst_23 {dimension_numbers = #tpu.dot_dimension_numbers<[1], [0], [0], [1], [0, 0, 1, 1], [], []>} : vector<22x8xbf16>, vector<8x16xbf16>, vector<22x16xf32> -> vector<22x16xf32>
    %37 = arith.addf %32, %36 : vector<22x16xf32>
    %38 = vector.extract_strided_slice %1 {offsets = [13, 0], sizes = [22, 8], strides = [1, 1]} : vector<36x8xbf16> to vector<22x8xbf16>
    %c7 = arith.constant 7 : index
    %c0_24 = arith.constant 0 : index
    %c0_25 = arith.constant 0 : index
    %39 = vector.load %arg2[%c7, %c0_24, %c0_25] : memref<9x8x16xbf16, #tpu.memory_space<vmem>>, vector<1x8x16xbf16>
    %40 = vector.shape_cast %39 : vector<1x8x16xbf16> to vector<8x16xbf16>
    %cst_26 = arith.constant dense<0.000000e+00> : vector<22x16xf32>
    %41 = tpu.matmul %38, %40, %cst_26 {dimension_numbers = #tpu.dot_dimension_numbers<[1], [0], [0], [1], [0, 0, 1, 1], [], []>} : vector<22x8xbf16>, vector<8x16xbf16>, vector<22x16xf32> -> vector<22x16xf32>
    %42 = arith.addf %37, %41 : vector<22x16xf32>
    %43 = vector.extract_strided_slice %1 {offsets = [14, 0], sizes = [22, 8], strides = [1, 1]} : vector<36x8xbf16> to vector<22x8xbf16>
    %c8 = arith.constant 8 : index
    %c0_27 = arith.constant 0 : index
    %c0_28 = arith.constant 0 : index
    %44 = vector.load %arg2[%c8, %c0_27, %c0_28] : memref<9x8x16xbf16, #tpu.memory_space<vmem>>, vector<1x8x16xbf16>
    %45 = vector.shape_cast %44 : vector<1x8x16xbf16> to vector<8x16xbf16>
    %cst_29 = arith.constant dense<0.000000e+00> : vector<22x16xf32>
    %46 = tpu.matmul %43, %45, %cst_29 {dimension_numbers = #tpu.dot_dimension_numbers<[1], [0], [0], [1], [0, 0, 1, 1], [], []>} : vector<22x8xbf16>, vector<8x16xbf16>, vector<22x16xf32> -> vector<22x16xf32>
    %47 = arith.addf %42, %46 : vector<22x16xf32>
    %c0_30 = arith.constant 0 : index
    %c0_31 = arith.constant 0 : index
    %48 = vector.load %arg3[%c0_30, %c0_31] : memref<1x16xf32, #tpu.memory_space<vmem>>, vector<1x16xf32>
    %49 = vector.broadcast %48 : vector<1x16xf32> to vector<22x16xf32>
    %50 = arith.addf %47, %49 : vector<22x16xf32>
    %cst_32 = arith.constant 0.000000e+00 : f32
    %51 = vector.broadcast %cst_32 : f32 to vector<22x16xf32>
    %52 = arith.maximumf %50, %51 : vector<22x16xf32>
    %53 = arith.truncf %52 : vector<22x16xf32> to vector<22x16xbf16>
    %cst_33 = arith.constant 0.000000e+00 : f32
    %54 = vector.broadcast %cst_33 : f32 to vector<8x16xf32>
    %55 = vector.extract_strided_slice %53 {offsets = [0, 0], sizes = [8, 16], strides = [1, 1]} : vector<22x16xbf16> to vector<8x16xbf16>
    %c0_34 = arith.constant 0 : index
    %c0_35 = arith.constant 0 : index
    %c0_36 = arith.constant 0 : index
    %56 = vector.load %arg4[%c0_34, %c0_35, %c0_36] : memref<9x16x16xbf16, #tpu.memory_space<vmem>>, vector<1x16x16xbf16>
    %57 = vector.shape_cast %56 : vector<1x16x16xbf16> to vector<16x16xbf16>
    %cst_37 = arith.constant dense<0.000000e+00> : vector<8x16xf32>
    %58 = tpu.matmul %55, %57, %cst_37 {dimension_numbers = #tpu.dot_dimension_numbers<[1], [0], [0], [1], [0, 0, 1, 1], [], []>} : vector<8x16xbf16>, vector<16x16xbf16>, vector<8x16xf32> -> vector<8x16xf32>
    %59 = arith.addf %54, %58 : vector<8x16xf32>
    %60 = vector.extract_strided_slice %53 {offsets = [1, 0], sizes = [8, 16], strides = [1, 1]} : vector<22x16xbf16> to vector<8x16xbf16>
    %c1_38 = arith.constant 1 : index
    %c0_39 = arith.constant 0 : index
    %c0_40 = arith.constant 0 : index
    %61 = vector.load %arg4[%c1_38, %c0_39, %c0_40] : memref<9x16x16xbf16, #tpu.memory_space<vmem>>, vector<1x16x16xbf16>
    %62 = vector.shape_cast %61 : vector<1x16x16xbf16> to vector<16x16xbf16>
    %cst_41 = arith.constant dense<0.000000e+00> : vector<8x16xf32>
    %63 = tpu.matmul %60, %62, %cst_41 {dimension_numbers = #tpu.dot_dimension_numbers<[1], [0], [0], [1], [0, 0, 1, 1], [], []>} : vector<8x16xbf16>, vector<16x16xbf16>, vector<8x16xf32> -> vector<8x16xf32>
    %64 = arith.addf %59, %63 : vector<8x16xf32>
    %65 = vector.extract_strided_slice %53 {offsets = [2, 0], sizes = [8, 16], strides = [1, 1]} : vector<22x16xbf16> to vector<8x16xbf16>
    %c2_42 = arith.constant 2 : index
    %c0_43 = arith.constant 0 : index
    %c0_44 = arith.constant 0 : index
    %66 = vector.load %arg4[%c2_42, %c0_43, %c0_44] : memref<9x16x16xbf16, #tpu.memory_space<vmem>>, vector<1x16x16xbf16>
    %67 = vector.shape_cast %66 : vector<1x16x16xbf16> to vector<16x16xbf16>
    %cst_45 = arith.constant dense<0.000000e+00> : vector<8x16xf32>
    %68 = tpu.matmul %65, %67, %cst_45 {dimension_numbers = #tpu.dot_dimension_numbers<[1], [0], [0], [1], [0, 0, 1, 1], [], []>} : vector<8x16xbf16>, vector<16x16xbf16>, vector<8x16xf32> -> vector<8x16xf32>
    %69 = arith.addf %64, %68 : vector<8x16xf32>
    %70 = vector.extract_strided_slice %53 {offsets = [6, 0], sizes = [8, 16], strides = [1, 1]} : vector<22x16xbf16> to vector<8x16xbf16>
    %c3_46 = arith.constant 3 : index
    %c0_47 = arith.constant 0 : index
    %c0_48 = arith.constant 0 : index
    %71 = vector.load %arg4[%c3_46, %c0_47, %c0_48] : memref<9x16x16xbf16, #tpu.memory_space<vmem>>, vector<1x16x16xbf16>
    %72 = vector.shape_cast %71 : vector<1x16x16xbf16> to vector<16x16xbf16>
    %cst_49 = arith.constant dense<0.000000e+00> : vector<8x16xf32>
    %73 = tpu.matmul %70, %72, %cst_49 {dimension_numbers = #tpu.dot_dimension_numbers<[1], [0], [0], [1], [0, 0, 1, 1], [], []>} : vector<8x16xbf16>, vector<16x16xbf16>, vector<8x16xf32> -> vector<8x16xf32>
    %74 = arith.addf %69, %73 : vector<8x16xf32>
    %75 = vector.extract_strided_slice %53 {offsets = [7, 0], sizes = [8, 16], strides = [1, 1]} : vector<22x16xbf16> to vector<8x16xbf16>
    %c4_50 = arith.constant 4 : index
    %c0_51 = arith.constant 0 : index
    %c0_52 = arith.constant 0 : index
    %76 = vector.load %arg4[%c4_50, %c0_51, %c0_52] : memref<9x16x16xbf16, #tpu.memory_space<vmem>>, vector<1x16x16xbf16>
    %77 = vector.shape_cast %76 : vector<1x16x16xbf16> to vector<16x16xbf16>
    %cst_53 = arith.constant dense<0.000000e+00> : vector<8x16xf32>
    %78 = tpu.matmul %75, %77, %cst_53 {dimension_numbers = #tpu.dot_dimension_numbers<[1], [0], [0], [1], [0, 0, 1, 1], [], []>} : vector<8x16xbf16>, vector<16x16xbf16>, vector<8x16xf32> -> vector<8x16xf32>
    %79 = arith.addf %74, %78 : vector<8x16xf32>
    %80 = vector.extract_strided_slice %53 {offsets = [8, 0], sizes = [8, 16], strides = [1, 1]} : vector<22x16xbf16> to vector<8x16xbf16>
    %c5_54 = arith.constant 5 : index
    %c0_55 = arith.constant 0 : index
    %c0_56 = arith.constant 0 : index
    %81 = vector.load %arg4[%c5_54, %c0_55, %c0_56] : memref<9x16x16xbf16, #tpu.memory_space<vmem>>, vector<1x16x16xbf16>
    %82 = vector.shape_cast %81 : vector<1x16x16xbf16> to vector<16x16xbf16>
    %cst_57 = arith.constant dense<0.000000e+00> : vector<8x16xf32>
    %83 = tpu.matmul %80, %82, %cst_57 {dimension_numbers = #tpu.dot_dimension_numbers<[1], [0], [0], [1], [0, 0, 1, 1], [], []>} : vector<8x16xbf16>, vector<16x16xbf16>, vector<8x16xf32> -> vector<8x16xf32>
    %84 = arith.addf %79, %83 : vector<8x16xf32>
    %85 = vector.extract_strided_slice %53 {offsets = [12, 0], sizes = [8, 16], strides = [1, 1]} : vector<22x16xbf16> to vector<8x16xbf16>
    %c6_58 = arith.constant 6 : index
    %c0_59 = arith.constant 0 : index
    %c0_60 = arith.constant 0 : index
    %86 = vector.load %arg4[%c6_58, %c0_59, %c0_60] : memref<9x16x16xbf16, #tpu.memory_space<vmem>>, vector<1x16x16xbf16>
    %87 = vector.shape_cast %86 : vector<1x16x16xbf16> to vector<16x16xbf16>
    %cst_61 = arith.constant dense<0.000000e+00> : vector<8x16xf32>
    %88 = tpu.matmul %85, %87, %cst_61 {dimension_numbers = #tpu.dot_dimension_numbers<[1], [0], [0], [1], [0, 0, 1, 1], [], []>} : vector<8x16xbf16>, vector<16x16xbf16>, vector<8x16xf32> -> vector<8x16xf32>
    %89 = arith.addf %84, %88 : vector<8x16xf32>
    %90 = vector.extract_strided_slice %53 {offsets = [13, 0], sizes = [8, 16], strides = [1, 1]} : vector<22x16xbf16> to vector<8x16xbf16>
    %c7_62 = arith.constant 7 : index
    %c0_63 = arith.constant 0 : index
    %c0_64 = arith.constant 0 : index
    %91 = vector.load %arg4[%c7_62, %c0_63, %c0_64] : memref<9x16x16xbf16, #tpu.memory_space<vmem>>, vector<1x16x16xbf16>
    %92 = vector.shape_cast %91 : vector<1x16x16xbf16> to vector<16x16xbf16>
    %cst_65 = arith.constant dense<0.000000e+00> : vector<8x16xf32>
    %93 = tpu.matmul %90, %92, %cst_65 {dimension_numbers = #tpu.dot_dimension_numbers<[1], [0], [0], [1], [0, 0, 1, 1], [], []>} : vector<8x16xbf16>, vector<16x16xbf16>, vector<8x16xf32> -> vector<8x16xf32>
    %94 = arith.addf %89, %93 : vector<8x16xf32>
    %95 = vector.extract_strided_slice %53 {offsets = [14, 0], sizes = [8, 16], strides = [1, 1]} : vector<22x16xbf16> to vector<8x16xbf16>
    %c8_66 = arith.constant 8 : index
    %c0_67 = arith.constant 0 : index
    %c0_68 = arith.constant 0 : index
    %96 = vector.load %arg4[%c8_66, %c0_67, %c0_68] : memref<9x16x16xbf16, #tpu.memory_space<vmem>>, vector<1x16x16xbf16>
    %97 = vector.shape_cast %96 : vector<1x16x16xbf16> to vector<16x16xbf16>
    %cst_69 = arith.constant dense<0.000000e+00> : vector<8x16xf32>
    %98 = tpu.matmul %95, %97, %cst_69 {dimension_numbers = #tpu.dot_dimension_numbers<[1], [0], [0], [1], [0, 0, 1, 1], [], []>} : vector<8x16xbf16>, vector<16x16xbf16>, vector<8x16xf32> -> vector<8x16xf32>
    %99 = arith.addf %94, %98 : vector<8x16xf32>
    %c0_70 = arith.constant 0 : index
    %c0_71 = arith.constant 0 : index
    %100 = vector.load %arg5[%c0_70, %c0_71] : memref<1x16xf32, #tpu.memory_space<vmem>>, vector<1x16xf32>
    %101 = vector.broadcast %100 : vector<1x16xf32> to vector<8x16xf32>
    %102 = arith.addf %99, %101 : vector<8x16xf32>
    %cst_72 = arith.constant 0.000000e+00 : f32
    %103 = vector.broadcast %cst_72 : f32 to vector<8x16xf32>
    %104 = arith.maximumf %102, %103 : vector<8x16xf32>
    %105 = vector.extract_strided_slice %104 {offsets = [0, 0], sizes = [2, 16], strides = [1, 1]} : vector<8x16xf32> to vector<2x16xf32>
    %106 = vector.extract_strided_slice %104 {offsets = [6, 0], sizes = [2, 16], strides = [1, 1]} : vector<8x16xf32> to vector<2x16xf32>
    %107 = tpu.concatenate %105, %106 in 0 : vector<2x16xf32>, vector<2x16xf32> -> vector<4x16xf32>
    %c0_73 = arith.constant 0 : index
    %c0_74 = arith.constant 0 : index
    %c0_75 = arith.constant 0 : index
    %108 = vector.load %arg7[%c0_73, %c0_74, %c0_75] : memref<1x4x16xf32, #tpu.memory_space<vmem>>, vector<1x4x16xf32>
    %109 = vector.shape_cast %108 : vector<1x4x16xf32> to vector<4x16xf32>
    %110 = vector.shape_cast %107 : vector<4x16xf32> to vector<1x4x16xf32>
    tpu.vector_store %arg7[%c0_73, %c0_74, %c0_75], %110 {strides = array<i32>} : memref<1x4x16xf32, #tpu.memory_space<vmem>>, vector<1x4x16xf32>,
    %111 = vector.extract_strided_slice %104 {offsets = [0, 0], sizes = [1, 16], strides = [1, 1]} : vector<8x16xf32> to vector<1x16xf32>
    %112 = vector.extract_strided_slice %104 {offsets = [1, 0], sizes = [1, 16], strides = [1, 1]} : vector<8x16xf32> to vector<1x16xf32>
    %113 = arith.maximumf %111, %112 : vector<1x16xf32>
    %114 = vector.extract_strided_slice %104 {offsets = [6, 0], sizes = [1, 16], strides = [1, 1]} : vector<8x16xf32> to vector<1x16xf32>
    %115 = arith.maximumf %113, %114 : vector<1x16xf32>
    %116 = vector.extract_strided_slice %104 {offsets = [7, 0], sizes = [1, 16], strides = [1, 1]} : vector<8x16xf32> to vector<1x16xf32>
    %117 = arith.maximumf %115, %116 : vector<1x16xf32>
    %c0_76 = arith.constant 0 : index
    %c0_77 = arith.constant 0 : index
    %118 = vector.load %arg6[%c0_76, %c0_77] : memref<1x1xf32, #tpu.memory_space<vmem>>, vector<1x1xf32>
    %cst_78 = arith.constant dense<0.000000e+00> : vector<1x16xf32>
    %119 = tpu.matmul %118, %117, %cst_78 {dimension_numbers = #tpu.dot_dimension_numbers<[1], [0], [0], [1], [0, 0, 1, 1], [], []>} : vector<1x1xf32>, vector<1x16xf32>, vector<1x16xf32> -> vector<1x16xf32>
    %120 = arith.truncf %119 : vector<1x16xf32> to vector<1x16xbf16>
    %c0_79 = arith.constant 0 : index
    %c0_80 = arith.constant 0 : index
    %c0_81 = arith.constant 0 : index
    %121 = vector.load %arg8[%c0_79, %c0_80, %c0_81] : memref<1x1x16xbf16, #tpu.memory_space<vmem>>, vector<1x1x16xbf16>
    %122 = vector.shape_cast %121 : vector<1x1x16xbf16> to vector<1x16xbf16>
    %123 = vector.shape_cast %120 : vector<1x16xbf16> to vector<1x1x16xbf16>
    tpu.vector_store %arg8[%c0_79, %c0_80, %c0_81], %123 {strides = array<i32>} : memref<1x1x16xbf16, #tpu.memory_space<vmem>>, vector<1x1x16xbf16>,
    return
  }
  func.func @transform_0(%arg0: i32) -> (i32, i32, i32) {
    %c0_i32 = arith.constant 0 : i32
    %c0_i32_0 = arith.constant 0 : i32
    %c0_i32_1 = arith.constant 0 : i32
    return %arg0, %c0_i32, %c0_i32_0 : i32, i32, i32
  }
  func.func @transform_1(%arg0: i32) -> (i32, i32, i32) {
    %c0_i32 = arith.constant 0 : i32
    %c0_i32_0 = arith.constant 0 : i32
    %c0_i32_1 = arith.constant 0 : i32
    %c0_i32_2 = arith.constant 0 : i32
    return %c0_i32, %c0_i32_0, %c0_i32_1 : i32, i32, i32
  }
  func.func @transform_2(%arg0: i32) -> (i32, i32) {
    %c0_i32 = arith.constant 0 : i32
    %c0_i32_0 = arith.constant 0 : i32
    %c0_i32_1 = arith.constant 0 : i32
    return %c0_i32, %c0_i32_0 : i32, i32
  }
  func.func @transform_3(%arg0: i32) -> (i32, i32, i32) {
    %c0_i32 = arith.constant 0 : i32
    %c0_i32_0 = arith.constant 0 : i32
    %c0_i32_1 = arith.constant 0 : i32
    %c0_i32_2 = arith.constant 0 : i32
    return %c0_i32, %c0_i32_0, %c0_i32_1 : i32, i32, i32
  }
  func.func @transform_4(%arg0: i32) -> (i32, i32) {
    %c0_i32 = arith.constant 0 : i32
    %c0_i32_0 = arith.constant 0 : i32
    %c0_i32_1 = arith.constant 0 : i32
    return %c0_i32, %c0_i32_0 : i32, i32
  }
  func.func @transform_5(%arg0: i32) -> (i32, i32) {
    %c0_i32 = arith.constant 0 : i32
    %c0_i32_0 = arith.constant 0 : i32
    %c0_i32_1 = arith.constant 0 : i32
    return %c0_i32, %c0_i32_0 : i32, i32
  }
  func.func @transform_6(%arg0: i32) -> (i32, i32, i32) {
    %c0_i32 = arith.constant 0 : i32
    %c0_i32_0 = arith.constant 0 : i32
    %c0_i32_1 = arith.constant 0 : i32
    return %arg0, %c0_i32, %c0_i32_0 : i32, i32, i32
  }
  func.func @transform_7(%arg0: i32) -> (i32, i32, i32) {
    %c0_i32 = arith.constant 0 : i32
    %c0_i32_0 = arith.constant 0 : i32
    %c0_i32_1 = arith.constant 0 : i32
    return %arg0, %c0_i32, %c0_i32_0 : i32, i32, i32
  }
}

</mosaic_0001>

<bundles_post_ra>
// kernel: encoder_forward.3
= control target key start
LH: loop header
LB: loop body
LE: loop exit
PB: predicated region body
PF: predicated region fallthrough
CT: control target
= control target key end

     0   :  { %s2429_s0 = inlined_call_operand.vmem [shape: bf16[2,36,8], index: 0, kind: input, shape index: {}]   ;;  %s2430_s1 = inlined_call_operand.vmem [shape: bf16[9,8,16], index: 1, kind: input, shape index: {}]   ;;  %s2431_s2 = inlined_call_operand.vmem [shape: f32[1,16], index: 2, kind: input, shape index: {}]   ;;  %s2432_s3 = inlined_call_operand.vmem [shape: bf16[9,16,16], index: 3, kind: input, shape index: {}]   ;;  %s2433_s4 = inlined_call_operand.vmem [shape: f32[1,16], index: 4, kind: input, shape index: {}]   ;;  %s2434_s5 = inlined_call_operand.<no memory space> [shape: f32[1,1], index: 5, kind: input, shape index: {}]   ;;  %s2435_s6 = inlined_call_operand.hbm [shape: f32[2,4,16], index: 6, kind: output, shape index: {0}]   ;;  %s2436_s7 = inlined_call_operand.hbm [shape: bf16[2,1,16], index: 7, kind: output, shape index: {1}]  }
   0x1   :  { %v13_v0 = vstv %s2434_s5 }
   0x2   :  { %14 = vst [vmem:[#allocation2] sm:$0x1] %v13_v0 }
   0x3   :  { %15 = vsyncpa [#allocation4], 0 }
   0x4   :  { %17 = vsyncpa [#allocation4 + $0x1], 0 }
   0x5   :  { %18 = vsyncpa [#allocation6], 0 }
   0x6   :  { %20 = vsyncpa [#allocation6 + $0x1], 0  ;;  %s2132_s26 = smov 0   ;;  %s2134_s27 = smov 0  }
   0x7   :  { %s2136_s28 = smov 0   ;;  %s2138_s29 = smov 0  }
   0x8 LB: > { %s2153_s5 = sadd.s32 4294967295, %s2083_s29   ;;  %s1677_s30 = sadd.s32 4294967294, %s2083_s29   ;;  %s2083_s29 = sphi %s2138_s29, %s2442_s29   ;;  %s2079_s28 = sphi %s2136_s28, %s2441_s28   ;;  %s2075_s27 = sphi %s2134_s27, %s2440_s27   ;;  %s2071_s26 = sphi %s2132_s26, %s2439_s26  }
   0x9   : > { %s2157_s8 = sadd.s32 1, %s2083_s29   ;;  %s164_s9 = sadd.s32 1, %s2079_s28 }
   0xa   : > { %s161_s10 = ssub.s32 %s2083_s29, %s2157_s8  ;;  %p174_p0 = scmp.ne.s32.totalorder %s2079_s28, %s2075_s27 }
   0xb   : > { %p162_p1 = scmp.eq.s32.totalorder %s161_s10, 0  ;;  %p175_p2 = scmp.eq.s32.totalorder %s2153_s5, 1 }
   0xc   : > { %p180_p3 = scmp.ne.s32.totalorder %s2075_s27, %s2071_s26  ;;  %p181_p4 = scmp.eq.s32.totalorder %s1677_s30, 1 }
   0xd   : > { %s2168_s11 = scalar_select %p162_p1, %s2079_s28, %s164_s9  }
   0xe   : > { %p2170_p5 = por %p175_p2, %p174_p0  ;;  %p2174_p6 = por %p181_p4, %p180_p3 }
   0xf   : > { %p1680_p7 = scmp.ge.s32.totalorder %s2083_s29, 1  ;;  %p248_p8 = scmp.lt.s32.totalorder %s2083_s29, 3 }
  0x11   : > { %p249_p9 = pnand %p1680_p7, %p248_p8 }
  0x12   : > { %v1683_v1 = vld [vmem:[%s2430_s1 + $0x4] sm:$0xf] (!%p249_p9)  ;;  %vm329_vm0 = vcmask (!%p249_p9), 1043456   ;;  %v295_v2 = vld [vmem:[%s2430_s1] sm:$0xf] (!%p249_p9)  ;;  %p284_p10 = scmp.lt.s32.totalorder (!%p249_p9), %s2153_s5, 1 }
  0x13   : > { %252 = sbr.rel (%p249_p9) target bundleno = 791 (0x317), region = 44  ;;  %1918 = vmatprep.subr.msk.bf16.mxu0 (!%p249_p9), %vm329_vm0, %v1683_v1  ;;  %1919 = vmatprep.subr.msk.bf16.mxu1 (!%p249_p9), %vm329_vm0, %v295_v2  ;;  %v331_v3 = vsel (!%p249_p9), %vm329_vm0, %v1683_v1, 0  ;;  %v386_v4 = vsel (!%p249_p9), %vm329_vm0, %v295_v2, 0  ;;  %v1690_v5 = vld [vmem:[%s2430_s1 + $0x8] sm:$0xf] (!%p249_p9)  ;;  %vm322_vm2 = vcmask (!%p249_p9), 64512  }
  0x14   : > { %1806 = vmatpush3.bf16.msra.mxu0 (!%p249_p9), %v331_v3  ;;  %1812 = vmatpush3.bf16.msra.mxu1 (!%p249_p9), %v386_v4  ;;  %v1693_v6 = vld [vmem:[%s2430_s1 + $0xc] sm:$0xf] (!%p249_p9)  ;;  %vm306_vm1 = vsmask.f32 (!%p249_p9), 7424  ;;  %v449_v7 = vsel (!%p249_p9), %vm329_vm0, %v1690_v5, 0  ;;  %vm438_vm3 = vcmask (!%p249_p9), 1046528  }
  0x15   : > { %1920 = vmatprep.subr.msk.bf16.mxu0 (!%p249_p9), %vm329_vm0, %v1690_v5  ;;  %1921 = vmatprep.subr.msk.bf16.mxu1 (!%p249_p9), %vm329_vm0, %v1693_v6  ;;  %v518_v8 = vsel (!%p249_p9), %vm329_vm0, %v1693_v6, 0  ;;  %vm507_vm4 = vcmask (!%p249_p9), 1044480   ;;  %v1700_v15 = vld [vmem:[%s2430_s1 + $0x14] sm:$0xf] (!%p249_p9)  ;;  %v1697_v39 = vld [vmem:[%s2430_s1 + $0x10] sm:$0xf] (!%p249_p9) }
  0x16   : > { %v657_v29 = vsel (!%p249_p9), %vm329_vm0, %v1700_v15, 0  ;;  %v1709_v47 = vld [vmem:[%s2430_s1 + $0x1c] sm:$0xf] (!%p249_p9)  ;;  %vm573_vm5 = vsmask.f32 (!%p249_p9), 4352  ;;  %v593_v56 = vsel (!%p249_p9), %vm329_vm0, %v1697_v39, 0 }
  0x17   : > { %vm781_vm6 = vsmask.f32 (!%p249_p9), 5376  ;;  %v1705_v59 = vld [vmem:[%s2430_s1 + $0x18] sm:$0xf] (!%p249_p9)  ;;  %v805_v60 = vsel (!%p249_p9), %vm329_vm0, %v1709_v47, 0  ;;  %vm715_vm7 = vcmask (!%p249_p9), 1045504  }
  0x18   : > { %v726_v0 = vsel (!%p249_p9), %vm329_vm0, %v1705_v59, 0  ;;  %v1712_v2 = vld [vmem:[%s2430_s1 + $0x20] sm:$0xf] (!%p249_p9)  ;;  %vm2086_vm8 = vmmov (!%p249_p9), 0   ;;  %vm956_vm9 = vcmask (!%p249_p9), 130048   ;;  %vm1271_vm10 = vcmask (!%p249_p9), 1041408  }
  0x19   : > { %v870_v5 = vsel (!%p249_p9), %vm329_vm0, %v1712_v2, 0  ;;  %vm1394_vm11 = vcmask (!%p249_p9), 1040384   ;;  %vm1328_vm12 = vsmask.f32 (!%p249_p9), 1280  ;;  %s2352_s14 = sand.u32 (!%p249_p9), 1, %s2075_s27   ;;  %vm1462_vm13 = vcmask (!%p249_p9), 125952  }
  0x1a   : > { %s285_s18 = scalar_select %p284_p10, %s2153_s5, 1  ;;  %vm1474_vm14 = vcmask 7168  }
  0x1b   : > { %s1681_s15 = sshll.u32 %s2352_s14, 2  ;;  %s1754_s17 = sshll.u32 %s2153_s5, 6 }
  0x1c   : > { %s1927_s23 = smul.u32 20, %s285_s18  ;;  %s277_s16 = scalar_lea.vmem [#allocation3], %s1681_s15 }
  0x1d   : > { %s2361_s20 = scalar_lea.hbm %s2435_s6, %s1754_s17  ;;  %s1577_s21 = sshll.u32 %s277_s16, 4  ;;  %s1578_s21 = int_to_ptr.vmem [resolvable:$true] %s1577_s21 }
  0x1e   : > { %s288_s30 = scalar_lea.vmem %s2429_s0, %s1927_s23  ;;  %s1560_s22 = scalar_lea.sflag [#allocation4], %s2352_s14 }
  0x1f   : > { %v290_v9 = vld [vmem:[%s288_s30] sm:$0xf]  ;;  %v291_v10 = vld [vmem:[%s288_s30 + $0x4] sm:$0xf]  ;;  %v292_v11 = vld [vmem:[%s288_s30 + $0x8] sm:$0xf] }
  0x20   : > { %v1684_v12 = vcombine.low %v290_v9, %v291_v10  ;;  %v2205_v13 = vcombine.low %v292_v11, %v292_v11  ;;  %v2207_v14 = vld [vmem:[%s288_s30 + $0xc] sm:$0xf]  ;;  %v294_v16 = vld [vmem:[%s288_s30 + $0x10] sm:$0x3]  ;;  %v2213_v18 = vcombine.low %v291_v10, %v292_v11  ;;  %s1989_s23 = scalar_lea.vmem %s1578_s21, 64  ;;  %s2087_s24 = smov [#allocation3]  }
  0x21   : > { %v1694_v17 = vcombine.low %v292_v11, %v2207_v14  ;;  %v2223_v30 = vcombine.low %v2207_v14, %v294_v16  ;;  %v1702_v58 = vcombine.low %v2207_v14, %v2207_v14  ;;  %v1981_v9 = vld [vmem:[%s2432_s3 + $0x8] sm:$0xff]   ;;  %p1990_p11 = scmp.ne.s32.totalorder %s1578_s21, %s1989_s23  ;;  %s1993_s25 = sshll.u32 %s2087_s24, 4  ;;  %s1994_s25 = int_to_ptr.vmem [resolvable:$false] %s1993_s25 }
  0x22   : > { %v308_v19 = vshrl.u32 %v1684_v12, 16  ;;  %v310_v20 = vshll.u32 %v1684_v12, 16  ;;  %v315_v21 = vshll.u32 %v2205_v13, 16  ;;  %v319_v22 = vshrl.u32 %v2205_v13, 16  ;;  %1813 = vmatprep.mubr.msk.bf16.mxu1 %vm322_vm2, %v1684_v12  ;;  %s1995_s30 = scalar_lea.vmem %s1994_s25, 128  ;;  %p1996_p0 = scmp.lt.s32.totalorder %s1578_s21, %s1994_s25 }
  0x23   : > { %1814 = vmatmul.mubr.msk.bf16.vlgmr.msra.gmra.mrb[0].mxu1 %vm322_vm2, %v2205_v13  ;;  %v439_v23 = vrot.slane %v1684_v12, 1  ;;  %v440_v24 = vrot.slane %v2205_v13, 1  ;;  %v508_v25 = vrot.slane %v1684_v12, 3  ;;  %v509_v26 = vrot.slane %v1694_v17, 3  ;;  %p1991_p12 = pnand %p1990_p11, %p2170_p5  ;;  %p1997_p1 = scmp.lt.s32.totalorder %s1995_s30, %s1989_s23 }
  0x24   : > { %v312_v27 = vrot.slane %v310_v20, 1  ;;  %v317_v28 = vrot.slane %v315_v21, 1  ;;  %1824 = vmatpush3.bf16.msra.mxu1 %v518_v8  ;;  %v578_v32 = vshrl.u32 %v1694_v17, 16  ;;  %v581_v33 = vshll.u32 %v1694_v17, 16 }
  0x25   : > { %v510_v31 = vsel %vm507_vm4, %v508_v25, %v509_v26  ;;  %1923 = vmatprep.subr.msk.bf16.mxu1 %vm329_vm0, %v1700_v15  ;;  %v574_v36 = vrot.slane %v308_v19, 3  ;;  %v575_v37 = vrot.slane %v310_v20, 4  ;;  %v441_v38 = vsel %vm438_vm3, %v439_v23, %v440_v24  ;;  %p1992_p13 = pneg %p1991_p12  ;;  %p1998_p2 = por %p1997_p1, %p1996_p0 }
  0x26   : > { %v313_v34 = vor.u32 %v312_v27, %v308_v19  ;;  %v321_v35 = vor.u32 %v319_v22, %v317_v28  ;;  %1825 = vmatprep.mubr.msk.bf16.mxu1 %vm322_vm2, %v510_v31  ;;  %v580_v40 = vrot.slane %v578_v32, 3  ;;  %v583_v41 = vrot.slane %v581_v33, 4 }
  0x27   : > { %v782_v42 = vshrl.u32 %v2213_v18, 16  ;;  %v785_v44 = vshll.u32 %v2213_v18, 16  ;;  %v790_v45 = vshrl.u32 %v2223_v30, 16  ;;  %v793_v46 = vshll.u32 %v2223_v30, 16  ;;  %p1999_p3 = pnand %p1998_p2, %p1992_p13 }
  0x28   : > { %v318_v43 = vsel %vm306_vm1, %v313_v34, %v317_v28  ;;  %v576_v52 = vor.u32 %v575_v37, %v574_v36  ;;  %v584_v53 = vor.u32 %v583_v41, %v580_v40  ;;  %v716_v62 = vrot.slane %v2213_v18, 2 }
  0x29   : > { %1807 = vmatprep.mubr.msk.bf16.mxu0 %vm322_vm2, %v318_v43  ;;  %v784_v48 = vrot.slane %v782_v42, 2  ;;  %v787_v49 = vrot.slane %v785_v44, 3  ;;  %v792_v50 = vrot.slane %v790_v45, 2  ;;  %v795_v51 = vrot.slane %v793_v46, 3 }
  0x2a   : > { %1808 = vmatmul.mubr.msk.bf16.vlgmr.msra.gmra.mrb[0].mxu0 %vm322_vm2, %v321_v35  ;;  %v585_v57 = vsel %vm573_vm5, %v576_v52, %v584_v53  ;;  %v717_v63 = vrot.slane %v2223_v30, 2  ;;  %v860_v3 = vrot.slane %v2213_v18, 3  ;;  %v861_v4 = vrot.slane %v2223_v30, 3 }
  0x2b   : > { %1818 = vmatpush3.bf16.msra.mxu0 %v449_v7  ;;  %1819 = vmatprep.mubr.msk.bf16.mxu0 %vm322_vm2, %v441_v38  ;;  %v788_v54 = vor.u32 %v787_v49, %v784_v48  ;;  %v796_v55 = vor.u32 %v795_v51, %v792_v50  ;;  %v1980_v7 = vld [vmem:[%s2432_s3] sm:$0xff]   ;;  %v2085_v8 = vmov 0.0  }
  0x2c   : > { %1826 = vmatmul.mubr.msk.bf16.vlgmr.msra.gmra.mrb[4].mxu1 %vm322_vm2, %v509_v26  ;;  %1922 = vmatprep.subr.msk.bf16.mxu0 %vm329_vm0, %v1697_v39  ;;  %v718_v1 = vsel %vm715_vm7, %v716_v62, %v717_v63  ;;  %v862_v6 = vsel %vm507_vm4, %v860_v3, %v861_v4 }
  0x2d   : > { %1836 = vmatpush3.bf16.msra.mxu1 %v657_v29  ;;  %1837 = vmatprep.mubr.msk.bf16.mxu1 %vm322_vm2, %v2213_v18  ;;  %v797_v61 = vsel %vm781_vm6, %v788_v54, %v796_v55 }
  0x2e   : > { %1925 = vmatprep.subr.msk.bf16.mxu1 %vm329_vm0, %v1709_v47 }
  0x32   : > { %1820 = vmatmul.mubr.msk.bf16.vlgmr.msra.gmra.mrb[4].mxu0 %vm322_vm2, %v440_v24 }
  0x33   : > { %1830 = vmatpush3.bf16.msra.mxu0 %v593_v56  ;;  %1831 = vmatprep.mubr.msk.bf16.mxu0 %vm322_vm2, %v585_v57 }
  0x34   : > { %1838 = vmatmul.mubr.msk.bf16.vlgmr.msra.gmra.mrb[8].mxu1 %vm322_vm2, %v1702_v58  ;;  %1924 = vmatprep.subr.msk.bf16.mxu0 %vm329_vm0, %v1705_v59 }
  0x35   : > { %1848 = vmatpush3.bf16.msra.mxu1 %v805_v60  ;;  %1849 = vmatprep.mubr.msk.bf16.mxu1 %vm322_vm2, %v797_v61 }
  0x36   : > { %1859 = vmatprep.subr.bf16.mxu1 %v2085_v8 }
  0x3a   : > { %1832 = vmatmul.mubr.msk.bf16.vlgmr.msra.gmra.mrb[8].mxu0 %vm322_vm2, %v584_v53 }
  0x3b   : > { %1842 = vmatpush3.bf16.msra.mxu0 %v726_v0  ;;  %1843 = vmatprep.mubr.msk.bf16.mxu0 %vm322_vm2, %v718_v1  ;;  %v1715_v0 = vld [vmem:[%s2431_s2] ss:$0 sm:$0xff] }
  0x3c   : > { %1850 = vmatmul.mubr.msk.bf16.vlgmr.msra.gmra.mrb[12].mxu1 %vm322_vm2, %v796_v55  ;;  %1926 = vmatprep.subr.msk.bf16.mxu0 %vm329_vm0, %v1712_v2 }
  0x3d   : > { %1861 = vmatprep.mubr.msk.bf16.mxu1 %vm2086_vm8, %v2085_v8  ;;  %1860 = vmatpush3.bf16.msra.mxu1 %v1981_v9 }
  0x3e   : > { %1871 = vmatprep.subr.bf16.mxu1 %v2085_v8 }
  0x42   : > { %1844 = vmatmul.mubr.msk.bf16.vlgmr.msra.gmra.mrb[12].mxu0 %vm322_vm2, %v717_v63 }
  0x43   : > { %1854 = vmatpush3.bf16.msra.mxu0 %v870_v5  ;;  %1855 = vmatprep.mubr.msk.bf16.mxu0 %vm322_vm2, %v862_v6 }
  0x44   : > { %1865 = vmatprep.subr.bf16.mxu0 %v2085_v8 }
  0x4a   : > { %1856 = vmatmul.mubr.msk.bf16.vlgmr.msra.gmra.mrb[16].mxu0 %vm322_vm2, %v861_v4 }
  0x4b   : > { %1866 = vmatpush3.bf16.msra.mxu0 %v1980_v7  ;;  %1867 = vmatprep.mubr.msk.bf16.mxu0 %vm2086_vm8, %v2085_v8 }
  0x4c   : > { %1877 = vmatprep.subr.bf16.mxu0 %v2085_v8 }
  0xf6   : > { %v1815_v10 = vpop.f32.mrb[0].mxu1 }
  0xf7   : > { %v422_v11 = vpop.f32.mrb[1].mxu1 }
  0xf8   : > { %v1816_v12 = vpop.f32.mrb[2].mxu1 }
  0xf9   : > { %v425_v13 = vpop.f32.mrb[3].mxu1 }
  0xfd   : > { %v1809_v14 = vpop.f32.mrb[0].mxu0 }
  0xfe   : > { %v431_v15 = vadd.f32 %v1815_v10, %v1809_v14  ;;  %v367_v16 = vpop.f32.mrb[1].mxu0 }
  0xff   : > { %v423_v17 = vadd.f32 %v422_v11, %v367_v16  ;;  %v1810_v18 = vpop.f32.mrb[2].mxu0  ;;  %v1827_v19 = vpop.f32.mrb[4].mxu1 }
 0x100   : > { %v370_v20 = vpop.f32.mrb[3].mxu0  ;;  %v554_v21 = vpop.f32.mrb[5].mxu1 }
 0x101   : > { %v426_v22 = vadd.f32 %v425_v13, %v370_v20  ;;  %v1828_v23 = vpop.f32.mrb[6].mxu1 }
 0x102   : > { %v557_v24 = vpop.f32.mrb[7].mxu1 }
 0x105   : > { %v1821_v25 = vpop.f32.mrb[4].mxu0 }
 0x106   : > { %v501_v26 = vadd.f32 %v1821_v25, %v431_v15  ;;  %v485_v27 = vpop.f32.mrb[5].mxu0 }
 0x107   : > { %v499_v28 = vadd.f32 %v485_v27, %v423_v17  ;;  %v1822_v29 = vpop.f32.mrb[6].mxu0  ;;  %v1839_v30 = vpop.f32.mrb[8].mxu1  ;;  %v1982_v17 = vld [vmem:[%s2432_s3 + $0x18] sm:$0xff]  }
 0x108   : > { %v570_v31 = vadd.f32 %v1827_v19, %v501_v26  ;;  %v488_v32 = vpop.f32.mrb[7].mxu0  ;;  %v693_v33 = vpop.f32.mrb[9].mxu1  ;;  %v1983_v29 = vld [vmem:[%s2432_s3 + $0x10] sm:$0xff]  }
 0x109   : > { %v500_v34 = vadd.f32 %v488_v32, %v426_v22  ;;  %v568_v35 = vadd.f32 %v554_v21, %v499_v28  ;;  %v1840_v36 = vpop.f32.mrb[10].mxu1 }
 0x10a   : > { %v696_v37 = vpop.f32.mrb[11].mxu1 }
 0x10b   : > { %v569_v38 = vadd.f32 %v557_v24, %v500_v34  ;;  %v1984_v34 = vld [vmem:[%s2432_s3 + $0x28] sm:$0xff]  }
 0x10d   : > { %v1833_v39 = vpop.f32.mrb[8].mxu0 }
 0x10e   : > { %v645_v40 = vadd.f32 %v1833_v39, %v570_v31  ;;  %v629_v41 = vpop.f32.mrb[9].mxu0  ;;  %v1985_v39 = vld [vmem:[%s2432_s3 + $0x20] sm:$0xff]  }
 0x10f   : > { %v643_v42 = vadd.f32 %v629_v41, %v568_v35  ;;  %v1834_v43 = vpop.f32.mrb[10].mxu0  ;;  %v1851_v44 = vpop.f32.mrb[12].mxu1  ;;  %v1986_v41 = vld [vmem:[%s2432_s3 + $0x38] sm:$0xff]  }
 0x110   : > { %v709_v45 = vadd.f32 %v1839_v30, %v645_v40  ;;  %v632_v46 = vpop.f32.mrb[11].mxu0  ;;  %v841_v47 = vpop.f32.mrb[13].mxu1 }
 0x111   : > { %v644_v48 = vadd.f32 %v632_v46, %v569_v38  ;;  %v707_v49 = vadd.f32 %v693_v33, %v643_v42  ;;  %v1852_v50 = vpop.f32.mrb[14].mxu1 }
 0x112   : > { %v844_v51 = vpop.f32.mrb[15].mxu1 }
 0x113   : > { %v708_v52 = vadd.f32 %v696_v37, %v644_v48 }
 0x115   : > { %v1845_v53 = vpop.f32.mrb[12].mxu0 }
 0x116   : > { %v778_v54 = vadd.f32 %v1845_v53, %v709_v45  ;;  %v762_v55 = vpop.f32.mrb[13].mxu0  ;;  %v1987_v45 = vld [vmem:[%s2432_s3 + $0x30] sm:$0xff]  }
 0x117   : > { %v776_v56 = vadd.f32 %v762_v55, %v707_v49  ;;  %v1846_v57 = vpop.f32.mrb[14].mxu0 }
 0x118   : > { %v857_v58 = vadd.f32 %v1851_v44, %v778_v54  ;;  %v765_v59 = vpop.f32.mrb[15].mxu0 }
 0x119   : > { %v777_v60 = vadd.f32 %v765_v59, %v708_v52  ;;  %v855_v61 = vadd.f32 %v841_v47, %v776_v56  ;;  %v1988_v47 = vld [vmem:[%s2432_s3 + $0x40] sm:$0xff]  }
 0x11b   : > { %v856_v62 = vadd.f32 %v844_v51, %v777_v60 }
 0x11d   : > { %v1857_v63 = vpop.f32.mrb[16].mxu0 }
 0x11e   : > { %v922_v1 = vadd.f32 %v1857_v63, %v857_v58  ;;  %v906_v2 = vpop.f32.mrb[17].mxu0 }
 0x11f   : > { %v920_v3 = vadd.f32 %v906_v2, %v855_v61  ;;  %v1858_v4 = vpop.f32.mrb[18].mxu0 }
 0x120   : > { %v932_v5 = vadd.f32 %v1715_v0, %v922_v1  ;;  %v909_v6 = vpop.f32.mrb[19].mxu0 }
 0x121   : > { %v930_v7 = vadd.f32 %v1715_v0, %v920_v3  ;;  %v921_v9 = vadd.f32 %v909_v6, %v856_v62 }
 0x122   : > { %v935_v10 = vmax.f32 %v932_v5, 0.0 }
 0x123   : > { %v931_v11 = vadd.f32 %v1715_v0, %v921_v9  ;;  %v933_v13 = vmax.f32 %v930_v7, 0.0 }
 0x124   : > { %v937_v12 = vpack.c.bf16 %v935_v10, %v935_v10 }
 0x125   : > { %v934_v14 = vmax.f32 %v931_v11, 0.0 }
 0x126   : > { %v1333_v15 = vshrl.u32 %v937_v12, 16  ;;  %v1336_v16 = vshll.u32 %v937_v12, 16  ;;  %v1273_v21 = vrot.slane %v937_v12, 6  ;;  %v1396_v22 = vrot.slane %v937_v12, 7 }
 0x127   : > { %v936_v18 = vpack.c.bf16 %v934_v14, %v933_v13 }
 0x128   : > { %v1335_v23 = vrot.slane %v1333_v15, 6  ;;  %v1338_v24 = vrot.slane %v1336_v16, 7 }
 0x129   : > { %1868 = vmatmul.mubr.msk.bf16.vlgmr.msra.gmra.mrb[20].mxu0 %vm956_vm9, %v936_v18  ;;  %v944_v19 = vshrl.u32 %v936_v18, 16  ;;  %v946_v20 = vshll.u32 %v936_v18, 16  ;;  %v1272_v25 = vrot.slane %v936_v18, 6  ;;  %v1395_v26 = vrot.slane %v936_v18, 7 }
 0x12a   : > { %1878 = vmatpush3.bf16.msra.mxu0 %v1982_v17  ;;  %1879 = vmatprep.mubr.msk.bf16.mxu0 %vm2086_vm8, %v2085_v8  ;;  %v1339_v36 = vor.u32 %v1338_v24, %v1335_v23  ;;  %v1106_v37 = vrot.slane %v936_v18, 3  ;;  %v1052_v40 = vrot.slane %v936_v18, 1  ;;  %v1216_v42 = vrot.slane %v936_v18, 4  ;;  %v1750_v24 = vld [vmem:[%s2433_s4] ss:$0 sm:$0xff] }
 0x12b   : > { %v948_v27 = vrot.slane %v946_v20, 1  ;;  %1889 = vmatprep.subr.bf16.mxu0 %v2085_v8  ;;  %v1329_v28 = vrot.slane %v944_v19, 6  ;;  %v1330_v30 = vrot.slane %v946_v20, 7  ;;  %v1274_v31 = vsel %vm1271_vm10, %v1272_v25, %v1273_v21 }
 0x12c   : > { %v1397_v32 = vsel %vm1394_vm11, %v1395_v26, %v1396_v22  ;;  %v1160_v43 = vrot.slane %v944_v19, 3  ;;  %v1161_v44 = vrot.slane %v946_v20, 4 }
 0x12d   : > { %v949_v33 = vor.u32 %v948_v27, %v944_v19  ;;  %v1331_v35 = vor.u32 %v1330_v30, %v1329_v28 }
 0x12e   : > { %v1162_v46 = vor.u32 %v1161_v44, %v1160_v43 }
 0x12f   : > { %1862 = vmatmul.mubr.msk.bf16.vlgmr.msra.gmra.mrb[16].mxu1 %vm956_vm9, %v949_v33  ;;  %v1340_v38 = vsel %vm1328_vm12, %v1331_v35, %v1339_v36 }
 0x130   : > { %1872 = vmatpush3.bf16.msra.mxu1 %v1983_v29  ;;  %1873 = vmatprep.mubr.msk.bf16.mxu1 %vm2086_vm8, %v2085_v8 }
 0x131   : > { %1880 = vmatmul.mubr.msk.bf16.vlgmr.msra.gmra.mrb[24].mxu0 %vm956_vm9, %v1106_v37  ;;  %1883 = vmatprep.subr.bf16.mxu1 %v2085_v8 }
 0x132   : > { %1890 = vmatpush3.bf16.msra.mxu0 %v1984_v34  ;;  %1891 = vmatprep.mubr.msk.bf16.mxu0 %vm2086_vm8, %v2085_v8 }
 0x133   : > { %1901 = vmatprep.subr.bf16.mxu0 %v2085_v8 }
 0x137   : > { %1874 = vmatmul.mubr.msk.bf16.vlgmr.msra.gmra.mrb[20].mxu1 %vm956_vm9, %v1052_v40 }
 0x138   : > { %1884 = vmatpush3.bf16.msra.mxu1 %v1985_v39  ;;  %1885 = vmatprep.mubr.msk.bf16.mxu1 %vm2086_vm8, %v2085_v8  ;;  %v1473_v39 = vld [vmem:[#allocation2] sm:$0x1] }
 0x139   : > { %1892 = vmatmul.mubr.msk.bf16.vlgmr.msra.gmra.mrb[28].mxu0 %vm956_vm9, %v1216_v42  ;;  %1895 = vmatprep.subr.bf16.mxu1 %v2085_v8 }
 0x13a   : > { %1902 = vmatpush3.bf16.msra.mxu0 %v1986_v41  ;;  %1903 = vmatprep.mubr.msk.bf16.mxu0 %vm2086_vm8, %v2085_v8 }
 0x13b   : > { %1913 = vmatprep.subr.mxu0 %v2085_v8 }
 0x13f   : > { %1886 = vmatmul.mubr.msk.bf16.vlgmr.msra.gmra.mrb[24].mxu1 %vm956_vm9, %v1162_v46 }
 0x140   : > { %1896 = vmatpush3.bf16.msra.mxu1 %v1987_v45  ;;  %1897 = vmatprep.mubr.msk.bf16.mxu1 %vm2086_vm8, %v2085_v8 }
 0x141   : > { %1904 = vmatmul.mubr.msk.bf16.vlgmr.msra.gmra.mrb[32].mxu0 %vm956_vm9, %v1340_v38  ;;  %1907 = vmatprep.subr.bf16.mxu1 %v2085_v8 }
 0x142   : > { %1915 = vmatprep.mubr.msk.f32.mxu0 %vm2086_vm8, %v2085_v8 }
 0x147   : > { %1898 = vmatmul.mubr.msk.bf16.vlgmr.msra.gmra.mrb[28].mxu1 %vm956_vm9, %v1274_v31 }
 0x148   : > { %1908 = vmatpush3.bf16.msra.mxu1 %v1988_v47  ;;  %1909 = vmatprep.mubr.msk.bf16.mxu1 %vm2086_vm8, %v2085_v8 }
 0x14f   : > { %1910 = vmatmul.mubr.msk.bf16.vlgmr.msra.gmra.mrb[32].mxu1 %vm956_vm9, %v1397_v32 }
 0x1fc   : > { %v1042_v48 = vpop.f32.mrb[20].mxu0 }
 0x1fd   : > { %v1869_v49 = vpop.f32.mrb[21].mxu0 }
 0x1fe   : > { %v1045_v50 = vpop.f32.mrb[22].mxu0 }
 0x1ff   : > { %v1870_v51 = vpop.f32.mrb[23].mxu0 }
 0x202   : > { %v994_v52 = vpop.f32.mrb[16].mxu1 }
 0x203   : > { %v1043_v53 = vadd.f32 %v1042_v48, %v994_v52  ;;  %v1863_v54 = vpop.f32.mrb[17].mxu1 }
 0x204   : > { %v997_v55 = vpop.f32.mrb[18].mxu1  ;;  %v1150_v56 = vpop.f32.mrb[24].mxu0 }
 0x205   : > { %v1864_v57 = vpop.f32.mrb[19].mxu1  ;;  %v1881_v58 = vpop.f32.mrb[25].mxu0 }
 0x206   : > { %v1153_v59 = vpop.f32.mrb[26].mxu0 }
 0x207   : > { %v1882_v60 = vpop.f32.mrb[27].mxu0 }
 0x20a   : > { %v1096_v61 = vpop.f32.mrb[20].mxu1 }
 0x20b   : > { %v1102_v62 = vadd.f32 %v1096_v61, %v1043_v53  ;;  %v1875_v63 = vpop.f32.mrb[21].mxu1 }
 0x20c   : > { %v1099_v0 = vpop.f32.mrb[22].mxu1  ;;  %v1260_v8 = vpop.f32.mrb[28].mxu0 }
 0x20d   : > { %v1876_v1 = vpop.f32.mrb[23].mxu1  ;;  %v1893_v2 = vpop.f32.mrb[29].mxu0  ;;  %v1156_v3 = vadd.f32 %v1150_v56, %v1102_v62 }
 0x20e   : > { %v1263_v4 = vpop.f32.mrb[30].mxu0 }
 0x20f   : > { %v1894_v5 = vpop.f32.mrb[31].mxu0 }
 0x212   : > { %v1206_v6 = vpop.f32.mrb[24].mxu1 }
 0x213   : > { %v1212_v7 = vadd.f32 %v1206_v6, %v1156_v3  ;;  %v1887_v9 = vpop.f32.mrb[25].mxu1 }
 0x214   : > { %v1209_v10 = vpop.f32.mrb[26].mxu1  ;;  %v1384_v11 = vpop.f32.mrb[32].mxu0 }
 0x215   : > { %v1888_v12 = vpop.f32.mrb[27].mxu1  ;;  %v1905_v13 = vpop.f32.mrb[33].mxu0  ;;  %v1266_v14 = vadd.f32 %v1260_v8, %v1212_v7 }
 0x216   : > { %v1387_v15 = vpop.f32.mrb[34].mxu0 }
 0x217   : > { %v1906_v16 = vpop.f32.mrb[35].mxu0 }
 0x21a   : > { %v1318_v17 = vpop.f32.mrb[28].mxu1 }
 0x21b   : > { %v1324_v18 = vadd.f32 %v1318_v17, %v1266_v14  ;;  %v1899_v19 = vpop.f32.mrb[29].mxu1 }
 0x21c   : > { %v1321_v20 = vpop.f32.mrb[30].mxu1 }
 0x21d   : > { %v1900_v21 = vpop.f32.mrb[31].mxu1  ;;  %v1390_v22 = vadd.f32 %v1384_v11, %v1324_v18 }
 0x222   : > { %v1441_v23 = vpop.f32.mrb[32].mxu1 }
 0x223   : > { %v1447_v25 = vadd.f32 %v1441_v23, %v1390_v22  ;;  %v1911_v26 = vpop.f32.mrb[33].mxu1 }
 0x224   : > { %v1444_v27 = vpop.f32.mrb[34].mxu1 }
 0x225   : > { %v1455_v28 = vadd.f32 %v1750_v24, %v1447_v25  ;;  %v1912_v29 = vpop.f32.mrb[35].mxu1 }
 0x227   : > { %v1456_v30 = vmax.f32 %v1455_v28, 0.0 }
 0x229   : > { %v1464_v31 = vrot.slane %v1456_v30, 1  ;;  %v1458_v32 = vrot.slane %v1456_v30, 4  ;;  %v1467_v34 = vrot.slane %v1456_v30, 6  ;;  %v1470_v37 = vrot.slane %v1456_v30, 7 }
 0x22b   : > { %v1466_v33 = vmax.f32 %v1456_v30, %v1464_v31  ;;  %v1461_v35 = vsel %vm1271_vm10, %v1456_v30, %v1458_v32 }
 0x22c   : > { %1463 = vst.msk [vmem:[%s277_s16] sm:$0xf] %vm1462_vm13, %v1461_v35 }
 0x22d   : > { %v1469_v36 = vmax.f32 %v1466_v33, %v1467_v34 }
 0x22f   : > { %v1472_v38 = vmax.f32 %v1469_v36, %v1470_v37 }
 0x231   : > { %1914 = vmatpush3.msk.msra.mxu0 %vm1394_vm11, %v1472_v38 }
 0x232   : > { %1916 = vmatmul.mubr.msk.f32.vlgmr.msra.gmra.mrb[36].mxu0 %vm1474_vm14, %v1473_v39 }
 0x233   : > { %2002 = shalt.err (!%p1999_p3)
}
 0x234   : > { %s2003_s9 = scalar_lea.hbm %s2361_s20, 64  ;;  %s2007_s16 = scalar_lea.hbm %s2435_s6, 128 }
 0x235   : > { %p2004_p4 = scmp.ne.s32.totalorder %s2361_s20, %s2003_s9  ;;  %p2008_p9 = scmp.lt.u32.totalorder %s2361_s20, %s2435_s6 }
 0x236   : > { %p2009_p10 = scmp.lt.u32.totalorder %s2007_s16, %s2003_s9  ;;  %p2011_p12 = scmp.lt.u32.totalorder %s2003_s9, %s2361_s20 }
 0x237   : > { %p2005_p7 = pnand %p2004_p4, %p2170_p5 }
 0x238   : > { %p2010_p11 = por %p2009_p10, %p2008_p9 }
 0x239   : > { %p2006_p8 = pneg %p2005_p7 }
 0x23a   : > { %p2012_p13 = por %p2011_p12, %p2010_p11 }
 0x23c   : > { %p2013_p0 = pnand %p2012_p13, %p2006_p8 }
 0x23e   : > { %2016 = shalt.err (!%p2013_p0)
}
 0x23f   : > { %1928 = dma.vmem_to_hbm [thread:$0]  (%p2170_p5), %s1578_s21, 64, %s2361_s20, %s1560_s22   ;;  %vm1553_vm15 = vcmask 122880   ;;  %vm1554_vm0 = vsmask.f32 256 }
 0x240   : > { %s1755_s19 = sshll.u32 %s2153_s5, 4  ;;  %s283_s23 = scalar_lea.vmem [#allocation5], %s2352_s14  ;;  %vm1555_vm1 = vmand %vm1553_vm15, %vm1554_vm0 }
 0x241   : > { %s1590_s24 = sshll.u32 %s283_s23, 4  ;;  %v1556_v41 = vld [vmem:[%s283_s23] sm:$0x1]  ;;  %s2386_s9 = scalar_lea.hbm %s2436_s7, %s1755_s19  ;;  %s2388_s24 = int_to_ptr.vmem [resolvable:$true] %s1590_s24 }
 0x242   : > { %s1565_s5 = scalar_lea.sflag [#allocation6], %s2352_s14  ;;  %s2017_s20 = scalar_lea.vmem %s2388_s24, 16 }
 0x243   : > { %p2018_p1 = scmp.ne.s32.totalorder %s2388_s24, %s2017_s20  ;;  %s2088_s21 = smov [#allocation5]  }
 0x244   : > { %s2021_s22 = sshll.u32 %s2088_s21, 4  ;;  %s2022_s22 = int_to_ptr.vmem [resolvable:$false] %s2021_s22 }
 0x245   : > { %p2019_p2 = pnand %p2018_p1, %p2170_p5  ;;  %s2023_s10 = scalar_lea.vmem %s2022_s22, 32 }
 0x246   : > { %p2024_p4 = scmp.lt.s32.totalorder %s2388_s24, %s2022_s22  ;;  %p2025_p7 = scmp.lt.s32.totalorder %s2023_s10, %s2017_s20 }
 0x247   : > { %p2020_p3 = pneg %p2019_p2 }
 0x248   : > { %p2026_p8 = por %p2025_p7, %p2024_p4 }
 0x24a   : > { %p2027_p9 = pnand %p2026_p8, %p2020_p3 }
 0x305   : > { %v1548_v40 = vpop.f32.mrb[36].mxu0 }
 0x306   : > { %v1552_v42 = vpack.c.bf16 %v1548_v40, %v1548_v40  ;;  %v1917_v43 = vpop.f32.mrb[37].mxu0 }
 0x308   : > { %v1557_v44 = vsel %vm1555_vm1, %v1552_v42, %v1556_v41 }
 0x309   : > { %1558 = vst [vmem:[%s283_s23] sm:$0x1] %v1557_v44 }
 0x30a   : > { %2030 = shalt.err (!%p2027_p9)
}
 0x30b   : > { %s2031_s14 = scalar_lea.hbm %s2386_s9, 16  ;;  %s2035_s17 = scalar_lea.hbm %s2436_s7, 32 }
 0x30c   : > { %p2032_p10 = scmp.ne.s32.totalorder %s2386_s9, %s2031_s14  ;;  %p2036_p13 = scmp.lt.u32.totalorder %s2386_s9, %s2436_s7 }
 0x30d   : > { %p2037_p0 = scmp.lt.u32.totalorder %s2035_s17, %s2031_s14  ;;  %p2039_p2 = scmp.lt.u32.totalorder %s2031_s14, %s2386_s9 }
 0x30e   : > { %p2033_p11 = pnand %p2032_p10, %p2170_p5 }
 0x30f   : > { %p2038_p1 = por %p2037_p0, %p2036_p13 }
 0x310   : > { %p2034_p12 = pneg %p2033_p11 }
 0x311   : > { %p2040_p3 = por %p2039_p2, %p2038_p1 }
 0x313   : > { %p2041_p4 = pnand %p2040_p3, %p2034_p12 }
 0x315   : > { %2044 = shalt.err (!%p2041_p4)
}
 0x316   : > { %1929 = dma.vmem_to_hbm [thread:$0]  (%p2170_p5), %s2388_s24, 16, %s2386_s9, %s1565_s5  }
 0x317 PF: > { %p1939_p7 = scmp.ge.s32.totalorder %s2083_s29, 2  ;;  %s1602_s23 = sand.u32 1, %s2071_s26  }
 0x318   : > { %s1603_s25 = scalar_lea.sflag [#allocation4], %s1602_s23 }
 0x319   : > { %p1933_p8 = pnand %p1939_p7, %p2174_p6 }
 0x31b   : > { %2062 = dma.done.wait (!%p1933_p8), %s1603_s25, 64  }
 0x31c   : > { %2064 = vsyncadd (!%p1933_p8), %s1603_s25, 4294967232  ;;  %s1612_s30 = scalar_lea.sflag [#allocation6], %s1602_s23 }
 0x31d   : > { %2066 = dma.done.wait (!%p1933_p8), %s1612_s30, 16  }
 0x31e   : > { %2068 = vsyncadd (!%p1933_p8), %s1612_s30, 4294967280  ;;  %p23_p5 = scmp.ge.s32.totalorder %s2157_s8, 4   ;;  %s2439_s26 = smov %s2075_s27 }
 0x31f   : > { %s2440_s27 = smov %s2079_s28  ;;  %s2441_s28 = smov %s2168_s11 }
 0x320   : > { %s2442_s29 = smov %s2157_s8  ;;  %25 = sbr.rel (!%p23_p5) target bundleno = 8 (0x8), region = 112 }
 0x327   :  { %1616 = vsyncpa [#allocation4], 1 }
 0x328   :  { %1618 = vsyncpa [#allocation4 + $0x1], 1 }
 0x329   :  { %1619 = vsyncpa [#allocation6], 1 }
 0x32a   :  { %1621 = vsyncpa [#allocation6 + $0x1], 1 }

// kernel: encoder_forward.2
= control target key start
LH: loop header
LB: loop body
LE: loop exit
PB: predicated region body
PF: predicated region fallthrough
CT: control target
= control target key end

     0   :  { %s6009_s24 = smov 0   ;;  %s7216_s0 = inlined_call_operand.vmem [shape: f32[2,256,4], index: 0, kind: input, shape index: {}]   ;;  %s7217_s1 = inlined_call_operand.vmem [shape: bf16[9,4,8], index: 1, kind: input, shape index: {}]   ;;  %s7218_s2 = inlined_call_operand.vmem [shape: f32[1,8], index: 2, kind: input, shape index: {}]   ;;  %s7219_s3 = inlined_call_operand.vmem [shape: bf16[9,8,8], index: 3, kind: input, shape index: {}]   ;;  %s7220_s4 = inlined_call_operand.vmem [shape: f32[1,8], index: 4, kind: input, shape index: {}]   ;;  %s7221_s5 = inlined_call_operand.vmem [shape: f32[36,171], index: 5, kind: input, shape index: {}]   ;;  %s7222_s6 = inlined_call_operand.vmem [shape: f32[2,144,8], index: 6, kind: output, shape index: {0}]   ;;  %s7223_s7 = inlined_call_operand.vmem [shape: bf16[2,36,8], index: 7, kind: output, shape index: {1}]  }
   0x1 LB: > { %s4440_s25 = sadd.s32 4294967295, %s5965_s24   ;;  %p4444_p0 = scmp.ge.s32.totalorder %s5965_s24, 1  ;;  %s5965_s24 = sphi %s6009_s24, %s18_s24  }
   0x2   : > { %p240_p1 = scmp.lt.s32.totalorder %s5965_s24, 3 }
   0x4   : > { %p241_p2 = pnand %p4444_p0, %p240_p1 }
   0x5   : > { %v4449_v0 = vld [vmem:[%s7217_s1 + $0x2] sm:$0x3] (!%p241_p2)  ;;  %vm499_vm0 = vcmask (!%p241_p2), 1041408   ;;  %p277_p3 = scmp.lt.s32.totalorder (!%p241_p2), %s4440_s25, 1  ;;  %v341_v2 = vld [vmem:[%s7217_s1] sm:$0x3] (!%p241_p2) }
   0x6   : > { %244 = sbr.rel (%p241_p2) target bundleno = 1585 (0x631), region = 44  ;;  %5928 = vmatprep.subr.msk.bf16.mxu0 (!%p241_p2), %vm499_vm0, %v4449_v0  ;;  %v501_v1 = vsel (!%p241_p2), %vm499_vm0, %v4449_v0, 0  ;;  %5929 = vmatprep.subr.msk.bf16.mxu1 (!%p241_p2), %vm499_vm0, %v4449_v0  ;;  %vm344_vm1 = vsmask.f32 (!%p241_p2), 7424  ;;  %vm456_vm2 = vcmask (!%p241_p2), 31744   ;;  %v677_v40 = vsel (!%p241_p2), %vm499_vm0, %v341_v2, 0 }
   0x7   : > { %4973 = vmatpush3.bf16.msra.mxu0 (!%p241_p2), %v501_v1  ;;  %5511 = vmatpush3.bf16.msra.mxu1 (!%p241_p2), %v501_v1  ;;  %v4478_v47 = vld [vmem:[%s7217_s1 + $0x4] sm:$0x3] (!%p241_p2)  ;;  %vm840_vm3 = vcmask (!%p241_p2), 1046528   ;;  %vm2416_vm4 = vcmask (!%p241_p2), 1043456   ;;  %vm2379_vm5 = vcmask (!%p241_p2), 64512   ;;  %vm4214_vm6 = vcmask (!%p241_p2), 351232  }
   0x8   : > { %5930 = vmatprep.subr.msk.bf16.mxu0 (!%p241_p2), %vm499_vm0, %v341_v2  ;;  %vm4230_vm7 = vcmask (!%p241_p2), 1042432   ;;  %vm5968_vm8 = vmmov (!%p241_p2), 1   ;;  %vm4345_vm10 = vcmask (!%p241_p2), 60416   ;;  %vm4350_vm11 = vcmask (!%p241_p2), 58368  }
   0x9   : > { %vm5508_vm9 = vmpackc.low (!%p241_p2), %vm4230_vm7, %vm5968_vm8 }
   0xd   : > { %s7225_s25 = smov (!%p277_p3, %s4440_s25), 1 }
   0xe   : > { %s4714_s30 = sshll.u32 %s7225_s25, 8  ;;  %s5948_s8 = smul.u32 20, %s7225_s25 }
   0xf   : > { %s6033_s10 = scalar_lea.vmem %s7216_s0, %s4714_s30  ;;  %s5947_s30 = smul.u32 144, %s7225_s25 }
  0x10   : > { %v293_v3 = vld [vmem:[%s6033_s10] sm:$0xff]  ;;  %v294_v4 = vld [vmem:[%s6033_s10 + $0x8] sm:$0xff]  ;;  %v295_v5 = vld [vmem:[%s6033_s10 + $0x10] sm:$0xff]  ;;  %s291_s11 = scalar_lea.vmem %s7223_s7, %s5948_s8 }
  0x11   : > { %v296_v6 = vld [vmem:[%s6033_s10 + $0x18] sm:$0xff]  ;;  %v6039_v7 = vpack.c.bf16 %v294_v4, %v293_v3  ;;  %v297_v8 = vld [vmem:[%s6033_s10 + $0x20] sm:$0xff]  ;;  %v298_v9 = vld [vmem:[%s6033_s10 + $0x28] sm:$0xff] }
  0x12   : > { %v6043_v10 = vpack.c.bf16 %v296_v6, %v295_v5  ;;  %v6045_v11 = vpack.c.bf16 %v298_v9, %v297_v8  ;;  %v299_v12 = vld [vmem:[%s6033_s10 + $0x30] sm:$0xff]  ;;  %v300_v13 = vld [vmem:[%s6033_s10 + $0x38] sm:$0xff]  ;;  %v301_v14 = vld [vmem:[%s6033_s10 + $0x40] sm:$0xff] }
  0x13   : > { %v346_v15 = vshrl.u32 %v6039_v7, 16  ;;  %v348_v16 = vshll.u32 %v6039_v7, 16  ;;  %v6052_v17 = vpack.c.bf16 %v300_v13, %v299_v12  ;;  %v302_v18 = vld [vmem:[%s6033_s10 + $0x48] sm:$0xff]  ;;  %v303_v19 = vld [vmem:[%s6033_s10 + $0x50] sm:$0xff]  ;;  %v304_v20 = vld [vmem:[%s6033_s10 + $0x58] sm:$0xff]  ;;  %v911_v13 = vsel %vm499_vm0, %v4478_v47, 0 }
  0x14   : > { %v353_v21 = vshll.u32 %v6043_v10, 16  ;;  %v357_v22 = vshrl.u32 %v6043_v10, 16  ;;  %v361_v23 = vshll.u32 %v6045_v11, 16  ;;  %v365_v24 = vshrl.u32 %v6045_v11, 16  ;;  %v305_v37 = vld [vmem:[%s6033_s10 + $0x60] sm:$0xff]  ;;  %v306_v38 = vld [vmem:[%s6033_s10 + $0x68] sm:$0xff] }
  0x15   : > { %v350_v25 = vrot.slane %v348_v16, 1  ;;  %v369_v26 = vshll.u32 %v6052_v17, 16  ;;  %v6062_v27 = vpack.c.bf16 %v302_v18, %v301_v14  ;;  %v6064_v30 = vpack.c.bf16 %v304_v20, %v303_v19  ;;  %v307_v45 = vld [vmem:[%s6033_s10 + $0x70] sm:$0xff]  ;;  %v308_v46 = vld [vmem:[%s6033_s10 + $0x78] sm:$0xff]  ;;  %v309_v60 = vld [vmem:[%s6033_s10 + $0x80] sm:$0xff] }
  0x16   : > { %v355_v28 = vrot.slane %v353_v21, 1  ;;  %v363_v29 = vrot.slane %v361_v23, 1  ;;  %v373_v36 = vshrl.u32 %v6052_v17, 16  ;;  %v6088_v49 = vpack.c.bf16 %v306_v38, %v305_v37  ;;  %v310_v61 = vld [vmem:[%s6033_s10 + $0x88] sm:$0xff]  ;;  %v4493_v14 = vld [vmem:[%s7217_s1 + $0x6] sm:$0x3] }
  0x17   : > { %v351_v31 = vor.u32 %v350_v25, %v346_v15  ;;  %v371_v32 = vrot.slane %v369_v26, 1  ;;  %v377_v33 = vshll.u32 %v6062_v27, 16  ;;  %v381_v41 = vshrl.u32 %v6062_v27, 16  ;;  %v311_v15 = vld [vmem:[%s6033_s10 + $0x90] sm:$0xff]  ;;  %v312_v16 = vld [vmem:[%s6033_s10 + $0x98] sm:$0xff]  ;;  %v313_v18 = vld [vmem:[%s6033_s10 + $0xa0] sm:$0xff] }
  0x18   : > { %v359_v34 = vor.u32 %v357_v22, %v355_v28  ;;  %v367_v35 = vor.u32 %v365_v24, %v363_v29  ;;  %v385_v42 = vshll.u32 %v6064_v30, 16  ;;  %v6092_v53 = vpack.c.bf16 %v308_v46, %v307_v45  ;;  %v314_v19 = vld [vmem:[%s6033_s10 + $0xa8] sm:$0xff]  ;;  %v315_v22 = vld [vmem:[%s6033_s10 + $0xb0] sm:$0xff]  ;;  %v316_v23 = vld [vmem:[%s6033_s10 + $0xb8] sm:$0xff] }
  0x19   : > { %v356_v39 = vsel %vm344_vm1, %v351_v31, %v355_v28  ;;  %v379_v48 = vrot.slane %v377_v33, 1  ;;  %v375_v50 = vor.u32 %v373_v36, %v371_v32  ;;  %v393_v54 = vshll.u32 %v6088_v49, 16  ;;  %v317_v24 = vld [vmem:[%s6033_s10 + $0xc0] sm:$0xff]  ;;  %v318_v25 = vld [vmem:[%s6033_s10 + $0xc8] sm:$0xff]  ;;  %v320_v31 = vld [vmem:[%s6033_s10 + $0xd8] sm:$0xff] }
  0x1a   : > { %4974 = vmatprep.mubr.msk.bf16.mxu0 %vm456_vm2, %v356_v39  ;;  %v6076_v43 = vsel %vm344_vm1, %v359_v34, %v363_v29  ;;  %v6079_v44 = vsel %vm344_vm1, %v367_v35, %v371_v32  ;;  %v387_v52 = vrot.slane %v385_v42, 1  ;;  %v389_v56 = vshrl.u32 %v6064_v30, 16  ;;  %v319_v29 = vld [vmem:[%s6033_s10 + $0xd0] sm:$0xff] }
  0x1b   : > { %4975 = vmatmul.mubr.msk.bf16.vlgmr.msra.gmra.mrb[0].mxu0 %vm456_vm2, %v6076_v43  ;;  %v383_v51 = vor.u32 %v381_v41, %v379_v48  ;;  %v6097_v55 = vsel %vm344_vm1, %v375_v50, %v379_v48  ;;  %v397_v58 = vshrl.u32 %v6088_v49, 16  ;;  %v401_v59 = vshll.u32 %v6092_v53, 16 }
  0x1c   : > { %5003 = vmatpush3.bf16.msra.mxu0 %v677_v40  ;;  %4978 = vmatprep.mubr.msk.bf16.mxu0 %vm456_vm2, %v6079_v44  ;;  %v395_v62 = vrot.slane %v393_v54, 1  ;;  %v391_v63 = vor.u32 %v389_v56, %v387_v52  ;;  %v6111_v0 = vpack.c.bf16 %v310_v61, %v309_v60  ;;  %v405_v4 = vshrl.u32 %v6092_v53, 16  ;;  %v6199_v40 = vld [vmem:[%s7217_s1 + $0x8] sm:$0x3] }
  0x1d   : > { %5931 = vmatprep.subr.msk.bf16.mxu0 %vm499_vm0, %v4478_v47  ;;  %v6101_v57 = vsel %vm344_vm1, %v383_v51, %v387_v52  ;;  %v403_v2 = vrot.slane %v401_v59, 1  ;;  %v6157_v20 = vpack.c.bf16 %v312_v16, %v311_v15  ;;  %v6159_v21 = vpack.c.bf16 %v314_v19, %v313_v18 }
  0x1e   : > { %v399_v1 = vor.u32 %v397_v58, %v395_v62  ;;  %v6114_v3 = vsel %vm344_vm1, %v391_v63, %v395_v62  ;;  %v409_v5 = vshll.u32 %v6111_v0, 16  ;;  %v6169_v26 = vpack.c.bf16 %v316_v23, %v315_v22 }
  0x1f   : > { %v407_v8 = vor.u32 %v405_v4, %v403_v2  ;;  %v6171_v28 = vpack.c.bf16 %v318_v25, %v317_v24  ;;  %v841_v32 = vrot.slane %v6039_v7, 1  ;;  %v842_v33 = vrot.slane %v6043_v10, 1 }
  0x20   : > { %v6119_v6 = vsel %vm344_vm1, %v399_v1, %v403_v2  ;;  %v411_v9 = vrot.slane %v409_v5, 1  ;;  %v6181_v34 = vpack.c.bf16 %v320_v31, %v319_v29  ;;  %v844_v36 = vrot.slane %v6045_v11, 1 }
  0x21   : > { %v843_v35 = vsel %vm840_vm3, %v841_v32, %v842_v33  ;;  %v846_v37 = vrot.slane %v6052_v17, 1  ;;  %v848_v41 = vrot.slane %v6062_v27, 1  ;;  %v413_v42 = vshrl.u32 %v6111_v0, 16 }
  0x22   : > { %v6126_v12 = vsel %vm344_vm1, %v407_v8, %v411_v9  ;;  %v6190_v38 = vsel %vm840_vm3, %v842_v33, %v844_v36  ;;  %v417_v45 = vshll.u32 %v6157_v20, 16  ;;  %v850_v46 = vrot.slane %v6064_v30, 1 }
  0x23   : > { %4979 = vmatmul.mubr.msk.bf16.gmra.mrb[4].mxu0 %vm456_vm2, %v6097_v55  ;;  %v6194_v39 = vsel %vm840_vm3, %v844_v36, %v846_v37  ;;  %v415_v47 = vor.u32 %v413_v42, %v411_v9  ;;  %v6212_v50 = vsel %vm840_vm3, %v846_v37, %v848_v41  ;;  %v421_v54 = vshrl.u32 %v6157_v20, 16 }
  0x24   : > { %4982 = vmatprep.mubr.msk.bf16.mxu0 %vm456_vm2, %v6101_v57  ;;  %v419_v48 = vrot.slane %v417_v45, 1  ;;  %v6218_v52 = vsel %vm840_vm3, %v848_v41, %v850_v46  ;;  %v425_v56 = vshll.u32 %v6159_v21, 16  ;;  %v852_v58 = vrot.slane %v6088_v49, 1 }
  0x25   : > { %v429_v59 = vshrl.u32 %v6159_v21, 16  ;;  %v433_v60 = vshll.u32 %v6169_v26, 16  ;;  %v854_v61 = vrot.slane %v6092_v53, 1  ;;  %v856_v15 = vrot.slane %v6111_v0, 1 }
  0x26   : > { %v6215_v51 = vsel %vm344_vm1, %v415_v47, %v419_v48  ;;  %v423_v62 = vor.u32 %v421_v54, %v419_v48  ;;  %v427_v63 = vrot.slane %v425_v56, 1  ;;  %v6236_v5 = vsel %vm840_vm3, %v850_v46, %v852_v58  ;;  %v4523_v56 = vld [vmem:[%s7217_s1 + $0xa] sm:$0x3] }
  0x27   : > { %4990 = vmatprep.mubr.msk.bf16.mxu1 %vm456_vm2, %v6215_v51  ;;  %v435_v1 = vrot.slane %v433_v60, 1  ;;  %v6241_v8 = vsel %vm840_vm3, %v852_v58, %v854_v61  ;;  %v445_v16 = vshrl.u32 %v6171_v28, 16  ;;  %v449_v18 = vshll.u32 %v6181_v34, 16  ;;  %v4538_v60 = vld [vmem:[%s7217_s1 + $0xc] sm:$0x3] }
  0x28   : > { %v6233_v2 = vsel %vm344_vm1, %v423_v62, %v427_v63  ;;  %v431_v4 = vor.u32 %v429_v59, %v427_v63  ;;  %v858_v19 = vrot.slane %v6157_v20, 1  ;;  %v6262_v31 = vsel %vm840_vm3, %v854_v61, %v856_v15 }
  0x29   : > { %4991 = vmatmul.mubr.msk.bf16.vlgmr.msra.gmra.mrb[0].mxu1 %vm456_vm2, %v6233_v2  ;;  %v451_v24 = vrot.slane %v449_v18, 1  ;;  %v860_v36 = vrot.slane %v6159_v21, 1  ;;  %v862_v37 = vrot.slane %v6169_v26, 1  ;;  %v864_v45 = vrot.slane %v6171_v28, 1  ;;  %v6538_v18 = vld [vmem:[%s7218_s2] ss:$0 sm:$0xff] }
  0x2a   : > { %v6244_v9 = vsel %vm344_vm1, %v431_v4, %v435_v1  ;;  %v6267_v32 = vsel %vm840_vm3, %v856_v15, %v858_v19  ;;  %v6294_v46 = vrot.slane %v6181_v34, 1  ;;  %v1283_v54 = vsel %vm499_vm0, %v6199_v40, 0 }
  0x2b   : > { %4983 = vmatmul.mubr.msk.bf16.gmra.mrb[8].mxu0 %vm456_vm2, %v6114_v3  ;;  %4994 = vmatprep.mubr.msk.bf16.mxu1 %vm456_vm2, %v6244_v9  ;;  %v6282_v41 = vsel %vm840_vm3, %v858_v19, %v860_v36  ;;  %v6286_v42 = vsel %vm840_vm3, %v860_v36, %v862_v37  ;;  %v6297_v47 = vsel %vm840_vm3, %v862_v37, %v864_v45  ;;  %v1470_v59 = vsel %vm499_vm0, %v4523_v56, 0 }
  0x2c   : > { %4986 = vmatprep.mubr.msk.bf16.mxu0 %vm456_vm2, %v6119_v6  ;;  %v6301_v48 = vsel %vm840_vm3, %v864_v45, %v6294_v46  ;;  %v1651_v4 = vsel %vm499_vm0, %v4538_v60, 0 }
  0x33   : > { %4987 = vmatmul.mubr.msk.bf16.gmra.mrb[12].mxu0 %vm456_vm2, %v6126_v12 }
  0x34   : > { %5004 = vmatprep.mubr.msk.bf16.mxu0 %vm456_vm2, %v6039_v7  ;;  %v1092_v7 = vsel %vm499_vm0, %v4493_v14, 0 }
  0x3b   : > { %5005 = vmatmul.mubr.msk.bf16.vlgmr.msra.gmra.mrb[0].mxu0 %vm456_vm2, %v6043_v10 }
  0x3c   : > { %5033 = vmatpush3.bf16.msra.mxu0 %v911_v13  ;;  %5008 = vmatprep.mubr.msk.bf16.mxu0 %vm456_vm2, %v6045_v11  ;;  %v437_v13 = vshrl.u32 %v6169_v26, 16 }
  0x3d   : > { %5932 = vmatprep.subr.msk.bf16.mxu0 %vm499_vm0, %v4493_v14  ;;  %v441_v14 = vshll.u32 %v6171_v28, 16 }
  0x3e   : > { %v439_v22 = vor.u32 %v437_v13, %v435_v1  ;;  %v4553_v13 = vld [vmem:[%s7217_s1 + $0xe] sm:$0x3] }
  0x3f   : > { %v443_v23 = vrot.slane %v441_v14, 1  ;;  %v1842_v15 = vsel %vm499_vm0, %v4553_v13, 0 }
  0x41   : > { %v6259_v25 = vsel %vm344_vm1, %v439_v22, %v443_v23  ;;  %v447_v29 = vor.u32 %v445_v16, %v443_v23  ;;  %v4568_v16 = vld [vmem:[%s7217_s1 + $0x10] sm:$0x3] }
  0x42   : > { %4995 = vmatmul.mubr.msk.bf16.gmra.mrb[4].mxu1 %vm456_vm2, %v6259_v25 }
  0x43   : > { %5009 = vmatmul.mubr.msk.bf16.gmra.mrb[4].mxu0 %vm456_vm2, %v6052_v17  ;;  %v6270_v33 = vsel %vm344_vm1, %v447_v29, %v451_v24 }
  0x44   : > { %5012 = vmatprep.mubr.msk.bf16.mxu0 %vm456_vm2, %v6062_v27  ;;  %4998 = vmatprep.mubr.msk.bf16.mxu1 %vm456_vm2, %v6270_v33 }
  0x4b   : > { %5013 = vmatmul.mubr.msk.bf16.gmra.mrb[8].mxu0 %vm456_vm2, %v6064_v30 }
  0x4c   : > { %5016 = vmatprep.mubr.msk.bf16.mxu0 %vm456_vm2, %v6088_v49 }
  0x53   : > { %5017 = vmatmul.mubr.msk.bf16.gmra.mrb[12].mxu0 %vm456_vm2, %v6092_v53 }
  0x54   : > { %5020 = vmatprep.mubr.msk.bf16.mxu0 %vm456_vm2, %v6111_v0 }
  0x5b   : > { %5021 = vmatmul.mubr.msk.bf16.gmra.mrb[16].mxu0 %vm456_vm2, %v6157_v20 }
  0x5c   : > { %5024 = vmatprep.mubr.msk.bf16.mxu0 %vm456_vm2, %v6159_v21 }
  0x63   : > { %5025 = vmatmul.mubr.msk.bf16.gmra.mrb[20].mxu0 %vm456_vm2, %v6169_v26 }
  0x64   : > { %5028 = vmatprep.mubr.msk.bf16.mxu0 %vm456_vm2, %v6171_v28 }
  0x6b   : > { %5029 = vmatmul.mubr.msk.bf16.gmra.mrb[24].mxu0 %vm456_vm2, %v6181_v34 }
  0x6c   : > { %5034 = vmatprep.mubr.msk.bf16.mxu0 %vm456_vm2, %v843_v35  ;;  %v453_v35 = vshrl.u32 %v6181_v34, 16 }
  0x73   : > { %5035 = vmatmul.mubr.msk.bf16.vlgmr.msra.gmra.mrb[0].mxu0 %vm456_vm2, %v6190_v38 }
  0x74   : > { %5063 = vmatpush3.bf16.msra.mxu0 %v1092_v7  ;;  %5038 = vmatprep.mubr.msk.bf16.mxu0 %vm456_vm2, %v6194_v39  ;;  %v455_v7 = vor.u32 %v453_v35, %v451_v24 }
  0x75   : > { %5933 = vmatprep.subr.msk.bf16.mxu0 %vm499_vm0, %v6199_v40  ;;  %v322_v40 = vld [vmem:[%s6033_s10 + $0xe8] sm:$0xff] }
  0x76   : > { %4999 = vmatmul.mubr.msk.bf16.gmra.mrb[8].mxu1 %vm456_vm2, %v455_v7 }
  0x7b   : > { %5039 = vmatmul.mubr.msk.bf16.gmra.mrb[4].mxu0 %vm456_vm2, %v6212_v50 }
  0x7c   : > { %5042 = vmatprep.mubr.msk.bf16.mxu0 %vm456_vm2, %v6218_v52 }
  0x83   : > { %5043 = vmatmul.mubr.msk.bf16.gmra.mrb[8].mxu0 %vm456_vm2, %v6236_v5 }
  0x84   : > { %5046 = vmatprep.mubr.msk.bf16.mxu0 %vm456_vm2, %v6241_v8 }
  0x8b   : > { %5047 = vmatmul.mubr.msk.bf16.gmra.mrb[12].mxu0 %vm456_vm2, %v6262_v31 }
  0x8c   : > { %5050 = vmatprep.mubr.msk.bf16.mxu0 %vm456_vm2, %v6267_v32 }
  0x93   : > { %5051 = vmatmul.mubr.msk.bf16.gmra.mrb[16].mxu0 %vm456_vm2, %v6282_v41 }
  0x94   : > { %5054 = vmatprep.mubr.msk.bf16.mxu0 %vm456_vm2, %v6286_v42 }
  0x9b   : > { %5055 = vmatmul.mubr.msk.bf16.gmra.mrb[20].mxu0 %vm456_vm2, %v6297_v47 }
  0x9c   : > { %5058 = vmatprep.mubr.msk.bf16.mxu0 %vm456_vm2, %v6301_v48 }
  0xa3   : > { %5059 = vmatmul.mubr.msk.bf16.gmra.mrb[24].mxu0 %vm456_vm2, %v6294_v46 }
  0xa4   : > { %5064 = vmatprep.mubr.msk.bf16.mxu0 %vm456_vm2, %v6043_v10  ;;  %v321_v10 = vld [vmem:[%s6033_s10 + $0xe0] sm:$0xff] }
  0xa5   : > { %v339_v58 = vpack.c.bf16 %v322_v40, %v321_v10 }
  0xa7   : > { %v1273_v63 = vshrl.u32 %v339_v58, 16 }
  0xab   : > { %5065 = vmatmul.mubr.msk.bf16.vlgmr.msra.gmra.mrb[0].mxu0 %vm456_vm2, %v6045_v11 }
  0xac   : > { %5093 = vmatpush3.bf16.msra.mxu0 %v1283_v54  ;;  %5068 = vmatprep.mubr.msk.bf16.mxu0 %vm456_vm2, %v6052_v17 }
  0xad   : > { %5934 = vmatprep.subr.msk.bf16.mxu0 %vm499_vm0, %v4523_v56 }
  0xb3   : > { %5069 = vmatmul.mubr.msk.bf16.gmra.mrb[4].mxu0 %vm456_vm2, %v6062_v27 }
  0xb4   : > { %5072 = vmatprep.mubr.msk.bf16.mxu0 %vm456_vm2, %v6064_v30 }
  0xbb   : > { %5073 = vmatmul.mubr.msk.bf16.gmra.mrb[8].mxu0 %vm456_vm2, %v6088_v49 }
  0xbc   : > { %5076 = vmatprep.mubr.msk.bf16.mxu0 %vm456_vm2, %v6092_v53 }
  0xc3   : > { %5077 = vmatmul.mubr.msk.bf16.gmra.mrb[12].mxu0 %vm456_vm2, %v6111_v0 }
  0xc4   : > { %5080 = vmatprep.mubr.msk.bf16.mxu0 %vm456_vm2, %v6157_v20 }
  0xcb   : > { %5081 = vmatmul.mubr.msk.bf16.gmra.mrb[16].mxu0 %vm456_vm2, %v6159_v21 }
  0xcc   : > { %5084 = vmatprep.mubr.msk.bf16.mxu0 %vm456_vm2, %v6169_v26 }
  0xd3   : > { %5085 = vmatmul.mubr.msk.bf16.gmra.mrb[20].mxu0 %vm456_vm2, %v6171_v28 }
  0xd4   : > { %5088 = vmatprep.mubr.msk.bf16.mxu0 %vm456_vm2, %v6181_v34 }
  0xdb   : > { %5089 = vmatmul.mubr.msk.bf16.gmra.mrb[24].mxu0 %vm456_vm2, %v339_v58 }
  0xdc   : > { %5094 = vmatprep.mubr.msk.bf16.mxu0 %vm456_vm2, %v6076_v43  ;;  %v1269_v43 = vshll.u32 %v339_v58, 16 }
  0xde   : > { %v1271_v61 = vrot.slane %v1269_v43, 1 }
  0xe0   : > { %v6372_v62 = vsel %vm344_vm1, %v455_v7, %v1271_v61  ;;  %v1275_v1 = vor.u32 %v1273_v63, %v1271_v61 }
  0xe3   : > { %5095 = vmatmul.mubr.msk.bf16.vlgmr.msra.gmra.mrb[0].mxu0 %vm456_vm2, %v6079_v44 }
  0xe4   : > { %5123 = vmatpush3.bf16.msra.mxu0 %v1470_v59  ;;  %5098 = vmatprep.mubr.msk.bf16.mxu0 %vm456_vm2, %v6097_v55 }
  0xe5   : > { %5935 = vmatprep.subr.msk.bf16.mxu0 %vm499_vm0, %v4538_v60 }
  0xeb   : > { %5099 = vmatmul.mubr.msk.bf16.gmra.mrb[4].mxu0 %vm456_vm2, %v6101_v57 }
  0xec   : > { %5102 = vmatprep.mubr.msk.bf16.mxu0 %vm456_vm2, %v6114_v3 }
  0xf3   : > { %5103 = vmatmul.mubr.msk.bf16.gmra.mrb[8].mxu0 %vm456_vm2, %v6119_v6 }
  0xf4   : > { %5106 = vmatprep.mubr.msk.bf16.mxu0 %vm456_vm2, %v6126_v12 }
  0xfb   : > { %5107 = vmatmul.mubr.msk.bf16.gmra.mrb[12].mxu0 %vm456_vm2, %v6215_v51 }
  0xfc   : > { %5110 = vmatprep.mubr.msk.bf16.mxu0 %vm456_vm2, %v6233_v2 }
 0x103   : > { %5111 = vmatmul.mubr.msk.bf16.gmra.mrb[16].mxu0 %vm456_vm2, %v6244_v9 }
 0x104   : > { %5114 = vmatprep.mubr.msk.bf16.mxu0 %vm456_vm2, %v6259_v25 }
 0x10b   : > { %5115 = vmatmul.mubr.msk.bf16.gmra.mrb[20].mxu0 %vm456_vm2, %v6270_v33 }
 0x10c   : > { %5118 = vmatprep.mubr.msk.bf16.mxu0 %vm456_vm2, %v6372_v62 }
 0x113   : > { %5119 = vmatmul.mubr.msk.bf16.gmra.mrb[24].mxu0 %vm456_vm2, %v1275_v1 }
 0x114   : > { %5124 = vmatprep.mubr.msk.bf16.mxu0 %vm456_vm2, %v6190_v38  ;;  %v1461_v38 = vrot.slane %v339_v58, 1 }
 0x116   : > { %v1462_v14 = vsel %vm840_vm3, %v6294_v46, %v1461_v38 }
 0x11b   : > { %5125 = vmatmul.mubr.msk.bf16.vlgmr.msra.gmra.mrb[0].mxu0 %vm456_vm2, %v6194_v39 }
 0x11c   : > { %5153 = vmatpush3.bf16.msra.mxu0 %v1651_v4  ;;  %5128 = vmatprep.mubr.msk.bf16.mxu0 %vm456_vm2, %v6212_v50 }
 0x11d   : > { %5936 = vmatprep.subr.msk.bf16.mxu0 %vm499_vm0, %v4553_v13 }
 0x123   : > { %5129 = vmatmul.mubr.msk.bf16.gmra.mrb[4].mxu0 %vm456_vm2, %v6218_v52 }
 0x124   : > { %5132 = vmatprep.mubr.msk.bf16.mxu0 %vm456_vm2, %v6236_v5 }
 0x12b   : > { %5133 = vmatmul.mubr.msk.bf16.gmra.mrb[8].mxu0 %vm456_vm2, %v6241_v8 }
 0x12c   : > { %5136 = vmatprep.mubr.msk.bf16.mxu0 %vm456_vm2, %v6262_v31 }
 0x133   : > { %5137 = vmatmul.mubr.msk.bf16.gmra.mrb[12].mxu0 %vm456_vm2, %v6267_v32 }
 0x134   : > { %5140 = vmatprep.mubr.msk.bf16.mxu0 %vm456_vm2, %v6282_v41 }
 0x13b   : > { %5141 = vmatmul.mubr.msk.bf16.gmra.mrb[16].mxu0 %vm456_vm2, %v6286_v42 }
 0x13c   : > { %5144 = vmatprep.mubr.msk.bf16.mxu0 %vm456_vm2, %v6297_v47 }
 0x143   : > { %5145 = vmatmul.mubr.msk.bf16.gmra.mrb[20].mxu0 %vm456_vm2, %v6301_v48 }
 0x144   : > { %5148 = vmatprep.mubr.msk.bf16.mxu0 %vm456_vm2, %v1462_v14 }
 0x14b   : > { %5149 = vmatmul.mubr.msk.bf16.gmra.mrb[24].mxu0 %vm456_vm2, %v1461_v38 }
 0x14c   : > { %5154 = vmatprep.mubr.msk.bf16.mxu0 %vm456_vm2, %v6045_v11  ;;  %v323_v11 = vld [vmem:[%s6033_s10 + $0xf0] sm:$0xff] }
 0x153   : > { %5155 = vmatmul.mubr.msk.bf16.vlgmr.msra.gmra.mrb[0].mxu0 %vm456_vm2, %v6052_v17  ;;  %v324_v17 = vld [vmem:[%s6033_s10 + $0xf8] sm:$0xff]  ;;  %s6979_s10 = scalar_lea.vmem %s7222_s6, %s5947_s30 }
 0x154   : > { %5183 = vmatpush3.bf16.msra.mxu0 %v1842_v15  ;;  %5158 = vmatprep.mubr.msk.bf16.mxu0 %vm456_vm2, %v6062_v27  ;;  %v340_v27 = vpack.c.bf16 %v324_v17, %v323_v11 }
 0x155   : > { %5937 = vmatprep.subr.msk.bf16.mxu0 %vm499_vm0, %v4568_v16 }
 0x15b   : > { %5159 = vmatmul.mubr.msk.bf16.gmra.mrb[4].mxu0 %vm456_vm2, %v6064_v30  ;;  %v2029_v30 = vsel %vm499_vm0, %v4568_v16, 0 }
 0x15c   : > { %5162 = vmatprep.mubr.msk.bf16.mxu0 %vm456_vm2, %v6088_v49 }
 0x163   : > { %5163 = vmatmul.mubr.msk.bf16.gmra.mrb[8].mxu0 %vm456_vm2, %v6092_v53 }
 0x164   : > { %5166 = vmatprep.mubr.msk.bf16.mxu0 %vm456_vm2, %v6111_v0  ;;  %v2020_v0 = vrot.slane %v340_v27, 1 }
 0x16b   : > { %5167 = vmatmul.mubr.msk.bf16.gmra.mrb[12].mxu0 %vm456_vm2, %v6157_v20  ;;  %v6504_v20 = vpop.f32.mrb[0].mxu1 }
 0x16c   : > { %5170 = vmatprep.mubr.msk.bf16.mxu0 %vm456_vm2, %v6159_v21  ;;  %v6506_v21 = vpop.f32.mrb[1].mxu1 }
 0x173   : > { %5171 = vmatmul.mubr.msk.bf16.gmra.mrb[16].mxu0 %vm456_vm2, %v6169_v26  ;;  %v6508_v26 = vpop.f32.mrb[2].mxu1 }
 0x174   : > { %5174 = vmatprep.mubr.msk.bf16.mxu0 %vm456_vm2, %v6171_v28  ;;  %v6513_v28 = vld [vmem:[%s7219_s3] sm:$0xf] }
 0x17b   : > { %5175 = vmatmul.mubr.msk.bf16.gmra.mrb[20].mxu0 %vm456_vm2, %v6181_v34  ;;  %v6515_v34 = vpop.f32.mrb[3].mxu1 }
 0x17c   : > { %5178 = vmatprep.mubr.msk.bf16.mxu0 %vm456_vm2, %v339_v58 }
 0x183   : > { %5179 = vmatmul.mubr.msk.bf16.gmra.mrb[24].mxu0 %vm456_vm2, %v340_v27 }
 0x184   : > { %5184 = vmatprep.mubr.msk.bf16.mxu0 %vm456_vm2, %v6079_v44  ;;  %v1828_v44 = vshll.u32 %v340_v27, 16 }
 0x186   : > { %v1830_v49 = vrot.slane %v1828_v44, 1 }
 0x188   : > { %v1831_v53 = vsel %vm344_vm1, %v1275_v1, %v1830_v49 }
 0x18b   : > { %5185 = vmatmul.mubr.msk.bf16.vlgmr.msra.gmra.mrb[0].mxu0 %vm456_vm2, %v6097_v55  ;;  %v1832_v55 = vshrl.u32 %v340_v27, 16 }
 0x18c   : > { %5213 = vmatpush3.bf16.msra.mxu0 %v2029_v30  ;;  %5188 = vmatprep.mubr.msk.bf16.mxu0 %vm456_vm2, %v6101_v57 }
 0x18d   : > { %v1834_v57 = vor.u32 %v1832_v55, %v1830_v49 }
 0x193   : > { %5189 = vmatmul.mubr.msk.bf16.gmra.mrb[4].mxu0 %vm456_vm2, %v6114_v3  ;;  %v2021_v3 = vsel %vm840_vm3, %v1461_v38, %v2020_v0 }
 0x194   : > { %5192 = vmatprep.mubr.msk.bf16.mxu0 %vm456_vm2, %v6119_v6  ;;  %v4584_v6 = vld [vmem:[%s7219_s3 + $0x4] sm:$0xf] }
 0x195   : > { %5938 = vmatprep.subr.msk.bf16.mxu1 %vm2416_vm4, %v4584_v6 }
 0x19b   : > { %5193 = vmatmul.mubr.msk.bf16.gmra.mrb[8].mxu0 %vm456_vm2, %v6126_v12  ;;  %v2418_v12 = vsel %vm2416_vm4, %v4584_v6, 0 }
 0x19c   : > { %5196 = vmatprep.mubr.msk.bf16.mxu0 %vm456_vm2, %v6215_v51  ;;  %5243 = vmatpush3.bf16.msra.mxu1 %v2418_v12 }
 0x19d   : > { %5939 = vmatprep.subr.msk.bf16.mxu1 %vm2416_vm4, %v6513_v28 }
 0x1a3   : > { %5197 = vmatmul.mubr.msk.bf16.gmra.mrb[12].mxu0 %vm456_vm2, %v6233_v2 }
 0x1a4   : > { %5200 = vmatprep.mubr.msk.bf16.mxu0 %vm456_vm2, %v6244_v9 }
 0x1ab   : > { %5201 = vmatmul.mubr.msk.bf16.gmra.mrb[16].mxu0 %vm456_vm2, %v6259_v25 }
 0x1ac   : > { %5204 = vmatprep.mubr.msk.bf16.mxu0 %vm456_vm2, %v6270_v33 }
 0x1b3   : > { %5205 = vmatmul.mubr.msk.bf16.gmra.mrb[20].mxu0 %vm456_vm2, %v6372_v62 }
 0x1b4   : > { %5208 = vmatprep.mubr.msk.bf16.mxu0 %vm456_vm2, %v1831_v53 }
 0x1bb   : > { %5209 = vmatmul.mubr.msk.bf16.gmra.mrb[24].mxu0 %vm456_vm2, %v1834_v57 }
 0x1bc   : > { %5214 = vmatprep.mubr.msk.bf16.mxu0 %vm456_vm2, %v6194_v39  ;;  %v6519_v39 = vpop.f32.mrb[4].mxu1 }
 0x1c3   : > { %5215 = vmatmul.mubr.msk.bf16.vlgmr.msra.gmra.mrb[0].mxu0 %vm456_vm2, %v6212_v50  ;;  %v6521_v50 = vpop.f32.mrb[5].mxu1 }
 0x1c4   : > { %5218 = vmatprep.mubr.msk.bf16.mxu0 %vm456_vm2, %v6218_v52  ;;  %v6523_v51 = vpop.f32.mrb[6].mxu1 }
 0x1c5   : > { %v6525_v52 = vpop.f32.mrb[7].mxu1 }
 0x1c6   : > { %v6527_v2 = vpop.f32.mrb[8].mxu1 }
 0x1cb   : > { %5219 = vmatmul.mubr.msk.bf16.gmra.mrb[4].mxu0 %vm456_vm2, %v6236_v5  ;;  %v6529_v5 = vpop.f32.mrb[9].mxu1 }
 0x1cc   : > { %5222 = vmatprep.mubr.msk.bf16.mxu0 %vm456_vm2, %v6241_v8  ;;  %v6531_v8 = vpop.f32.mrb[10].mxu1 }
 0x1cd   : > { %v6533_v9 = vpop.f32.mrb[11].mxu1 }
 0x1d3   : > { %5223 = vmatmul.mubr.msk.bf16.gmra.mrb[8].mxu0 %vm456_vm2, %v6262_v31 }
 0x1d4   : > { %5226 = vmatprep.mubr.msk.bf16.mxu0 %vm456_vm2, %v6267_v32 }
 0x1db   : > { %5227 = vmatmul.mubr.msk.bf16.gmra.mrb[12].mxu0 %vm456_vm2, %v6282_v41 }
 0x1dc   : > { %5230 = vmatprep.mubr.msk.bf16.mxu0 %vm456_vm2, %v6286_v42 }
 0x1e3   : > { %5231 = vmatmul.mubr.msk.bf16.gmra.mrb[16].mxu0 %vm456_vm2, %v6297_v47 }
 0x1e4   : > { %5234 = vmatprep.mubr.msk.bf16.mxu0 %vm456_vm2, %v6301_v48 }
 0x1eb   : > { %5235 = vmatmul.mubr.msk.bf16.gmra.mrb[20].mxu0 %vm456_vm2, %v1462_v14 }
 0x1ec   : > { %5238 = vmatprep.mubr.msk.bf16.mxu0 %vm456_vm2, %v2021_v3 }
 0x1f3   : > { %5239 = vmatmul.mubr.msk.bf16.gmra.mrb[24].mxu0 %vm456_vm2, %v2020_v0 }
 0x296   : > { %v5216_v19 = vpop.f32.mrb[0].mxu0 }
 0x297   : > { %v2213_v22 = vadd.f32 %v5216_v19, %v6538_v18  ;;  %v2065_v23 = vpop.f32.mrb[1].mxu0 }
 0x298   : > { %v2211_v24 = vadd.f32 %v6538_v18, %v2065_v23  ;;  %v5217_v25 = vpop.f32.mrb[2].mxu0  ;;  %v2574_v23 = vsel %vm2416_vm4, %v6513_v28, 0 }
 0x299   : > { %v2214_v29 = vadd.f32 %v5217_v25, %v6538_v18  ;;  %v2068_v31 = vpop.f32.mrb[3].mxu0  ;;  %v2241_v33 = vmax.f32 %v2213_v22, 0.0 }
 0x29a   : > { %v2212_v32 = vadd.f32 %v6538_v18, %v2068_v31  ;;  %v2239_v36 = vmax.f32 %v2211_v24, 0.0 }
 0x29b   : > { %v2242_v35 = vmax.f32 %v2214_v29, 0.0 }
 0x29c   : > { %v2240_v37 = vmax.f32 %v2212_v32, 0.0  ;;  %v6577_v32 = vld [vmem:[%s7219_s3 + $0x8] sm:$0xf] }
 0x29d   : > { %v6544_v7 = vpack.c.bf16 %v2242_v35, %v2241_v33 }
 0x29e   : > { %v6546_v41 = vpack.c.bf16 %v2240_v37, %v2239_v36  ;;  %v5220_v42 = vpop.f32.mrb[4].mxu0 }
 0x29f   : > { %v2217_v45 = vadd.f32 %v5220_v42, %v6538_v18  ;;  %v2081_v46 = vpop.f32.mrb[5].mxu0  ;;  %v2292_v56 = vshll.u32 %v6544_v7, 16  ;;  %v2296_v30 = vshrl.u32 %v6544_v7, 16 }
 0x2a0   : > { %v2215_v47 = vadd.f32 %v6538_v18, %v2081_v46  ;;  %v5221_v48 = vpop.f32.mrb[6].mxu0  ;;  %v2287_v54 = vshll.u32 %v6546_v41, 16  ;;  %v2285_v59 = vshrl.u32 %v6546_v41, 16 }
 0x2a1   : > { %v2218_v10 = vadd.f32 %v5221_v48, %v6538_v18  ;;  %v2084_v40 = vpop.f32.mrb[7].mxu0  ;;  %v2245_v43 = vmax.f32 %v2217_v45, 0.0  ;;  %v2294_v4 = vrot.slane %v2292_v56, 1 }
 0x2a2   : > { %v2216_v58 = vadd.f32 %v6538_v18, %v2084_v40  ;;  %v2289_v60 = vrot.slane %v2287_v54, 1  ;;  %v2243_v62 = vmax.f32 %v2215_v47, 0.0 }
 0x2a3   : > { %v2246_v61 = vmax.f32 %v2218_v10, 0.0  ;;  %v2298_v57 = vor.u32 %v2296_v30, %v2294_v4 }
 0x2a4   : > { %v2244_v63 = vmax.f32 %v2216_v58, 0.0  ;;  %v2290_v1 = vor.u32 %v2289_v60, %v2285_v59 }
 0x2a5   : > { %v6555_v13 = vpack.c.bf16 %v2246_v61, %v2245_v43 }
 0x2a6   : > { %v6557_v38 = vpack.c.bf16 %v2244_v63, %v2243_v62  ;;  %v5224_v14 = vpop.f32.mrb[8].mxu0  ;;  %v2295_v15 = vsel %vm344_vm1, %v2290_v1, %v2294_v4 }
 0x2a7   : > { %v2221_v16 = vadd.f32 %v5224_v14, %v6538_v18  ;;  %v2097_v11 = vpop.f32.mrb[9].mxu0  ;;  %5244 = vmatprep.mubr.msk.bf16.mxu1 %vm2379_vm5, %v2295_v15  ;;  %v2308_v17 = vshll.u32 %v6555_v13, 16  ;;  %v2312_v48 = vshrl.u32 %v6555_v13, 16 }
 0x2a8   : > { %v2219_v27 = vadd.f32 %v6538_v18, %v2097_v11  ;;  %v5225_v44 = vpop.f32.mrb[10].mxu0  ;;  %v2300_v49 = vshll.u32 %v6557_v38, 16  ;;  %v2304_v6 = vshrl.u32 %v6557_v38, 16 }
 0x2a9   : > { %v2222_v53 = vadd.f32 %v5225_v44, %v6538_v18  ;;  %v2100_v55 = vpop.f32.mrb[11].mxu0  ;;  %v2249_v12 = vmax.f32 %v2221_v16, 0.0  ;;  %v2310_v22 = vrot.slane %v2308_v17, 1 }
 0x2aa   : > { %v2220_v0 = vadd.f32 %v6538_v18, %v2100_v55  ;;  %v2302_v3 = vrot.slane %v2300_v49, 1  ;;  %v2247_v24 = vmax.f32 %v2219_v27, 0.0 }
 0x2ab   : > { %v2250_v19 = vmax.f32 %v2222_v53, 0.0  ;;  %v2314_v58 = vor.u32 %v2312_v48, %v2310_v22 }
 0x2ac   : > { %v2248_v25 = vmax.f32 %v2220_v0, 0.0  ;;  %v6572_v29 = vsel %vm344_vm1, %v2298_v57, %v2302_v3  ;;  %v2306_v31 = vor.u32 %v2304_v6, %v2302_v3 }
 0x2ad   : > { %v6579_v33 = vpack.c.bf16 %v2250_v19, %v2249_v12  ;;  %5245 = vmatmul.mubr.msk.bf16.vlgmr.msra.gmra.mrb[12].mxu1 %vm2379_vm5, %v6572_v29 }
 0x2ae   : > { %v6583_v35 = vpack.c.bf16 %v2248_v25, %v2247_v24  ;;  %v5228_v36 = vpop.f32.mrb[12].mxu0  ;;  %v6586_v28 = vsel %vm344_vm1, %v2306_v31, %v2310_v22  ;;  %5269 = vmatpush3.bf16.msra.mxu1 %v2574_v23 }
 0x2af   : > { %v2225_v37 = vadd.f32 %v5228_v36, %v6538_v18  ;;  %v2113_v42 = vpop.f32.mrb[13].mxu0  ;;  %5248 = vmatprep.mubr.msk.bf16.mxu1 %vm2379_vm5, %v6586_v28  ;;  %v2324_v45 = vshll.u32 %v6579_v33, 16  ;;  %5940 = vmatprep.subr.msk.bf16.mxu1 %vm2416_vm4, %v6577_v32  ;;  %v2328_v44 = vshrl.u32 %v6579_v33, 16 }
 0x2b0   : > { %v2223_v46 = vadd.f32 %v6538_v18, %v2113_v42  ;;  %v5229_v47 = vpop.f32.mrb[14].mxu0  ;;  %v2316_v54 = vshll.u32 %v6583_v35, 16  ;;  %v2320_v60 = vshrl.u32 %v6583_v35, 16 }
 0x2b1   : > { %v2226_v56 = vadd.f32 %v5229_v47, %v6538_v18  ;;  %v2116_v10 = vpop.f32.mrb[15].mxu0  ;;  %v2253_v43 = vmax.f32 %v2225_v37, 0.0  ;;  %v2326_v62 = vrot.slane %v2324_v45, 1 }
 0x2b2   : > { %v2224_v40 = vadd.f32 %v6538_v18, %v2116_v10  ;;  %v2318_v59 = vrot.slane %v2316_v54, 1  ;;  %v2251_v63 = vmax.f32 %v2223_v46, 0.0 }
 0x2b3   : > { %v2254_v61 = vmax.f32 %v2226_v56, 0.0  ;;  %v2330_v12 = vor.u32 %v2328_v44, %v2326_v62 }
 0x2b4   : > { %v2252_v1 = vmax.f32 %v2224_v40, 0.0  ;;  %v6601_v4 = vsel %vm344_vm1, %v2314_v58, %v2318_v59  ;;  %v2322_v14 = vor.u32 %v2320_v60, %v2318_v59 }
 0x2b5   : > { %v6603_v15 = vpack.c.bf16 %v2254_v61, %v2253_v43  ;;  %5249 = vmatmul.mubr.msk.bf16.gmra.mrb[16].mxu1 %vm2379_vm5, %v6601_v4 }
 0x2b6   : > { %v6607_v16 = vpack.c.bf16 %v2252_v1, %v2251_v63  ;;  %v5232_v11 = vpop.f32.mrb[16].mxu0  ;;  %v6610_v17 = vsel %vm344_vm1, %v2322_v14, %v2326_v62 }
 0x2b7   : > { %v5512_v27 = vadd.f32 %v5232_v11, %v6504_v20  ;;  %v2129_v30 = vpop.f32.mrb[17].mxu0  ;;  %5252 = vmatprep.mubr.msk.bf16.mxu1 %vm2379_vm5, %v6610_v17  ;;  %v2340_v57 = vshll.u32 %v6603_v15, 16  ;;  %v2344_v62 = vshrl.u32 %v6603_v15, 16 }
 0x2b8   : > { %v5513_v49 = vadd.f32 %v2129_v30, %v6506_v21  ;;  %v5233_v53 = vpop.f32.mrb[18].mxu0  ;;  %v2332_v55 = vshll.u32 %v6607_v16, 16  ;;  %v2336_v23 = vshrl.u32 %v6607_v16, 16 }
 0x2b9   : > { %v2229_v0 = vadd.f32 %v5512_v27, %v6538_v18  ;;  %v5514_v3 = vadd.f32 %v5233_v53, %v6508_v26  ;;  %v2132_v6 = vpop.f32.mrb[19].mxu0  ;;  %v2342_v36 = vrot.slane %v2340_v57, 1 }
 0x2ba   : > { %v2227_v20 = vadd.f32 %v5513_v49, %v6538_v18  ;;  %v5515_v19 = vadd.f32 %v2132_v6, %v6515_v34  ;;  %v2334_v22 = vrot.slane %v2332_v55, 1 }
 0x2bb   : > { %v2230_v21 = vadd.f32 %v5514_v3, %v6538_v18  ;;  %v2257_v37 = vmax.f32 %v2229_v0, 0.0  ;;  %v2346_v14 = vor.u32 %v2344_v62, %v2342_v36  ;;  %v2779_v62 = vsel %vm2416_vm4, %v6577_v32, 0 }
 0x2bc   : > { %v2228_v24 = vadd.f32 %v5515_v19, %v6538_v18  ;;  %v6627_v25 = vsel %vm344_vm1, %v2330_v12, %v2334_v22  ;;  %v2338_v31 = vor.u32 %v2336_v23, %v2334_v22  ;;  %v2255_v42 = vmax.f32 %v2227_v20, 0.0 }
 0x2bd   : > { %v2258_v26 = vmax.f32 %v2230_v21, 0.0  ;;  %5253 = vmatmul.mubr.msk.bf16.gmra.mrb[20].mxu1 %vm2379_vm5, %v6627_v25  ;;  %v2719_v32 = vrot.slane %v6546_v41, 1 }
 0x2be   : > { %v2256_v45 = vmax.f32 %v2228_v24, 0.0  ;;  %v5236_v34 = vpop.f32.mrb[20].mxu0  ;;  %v6632_v46 = vsel %vm344_vm1, %v2338_v31, %v2342_v36 }
 0x2bf   : > { %v6634_v47 = vpack.c.bf16 %v2258_v26, %v2257_v37  ;;  %v5516_v48 = vadd.f32 %v5236_v34, %v6519_v39  ;;  %v2145_v54 = vpop.f32.mrb[21].mxu0  ;;  %5256 = vmatprep.mubr.msk.bf16.mxu1 %vm2379_vm5, %v6632_v46 }
 0x2c0   : > { %v6639_v56 = vpack.c.bf16 %v2256_v45, %v2255_v42  ;;  %v5517_v10 = vadd.f32 %v2145_v54, %v6521_v50  ;;  %v5237_v40 = vpop.f32.mrb[22].mxu0 }
 0x2c1   : > { %v2233_v58 = vadd.f32 %v5516_v48, %v6538_v18  ;;  %v5518_v59 = vadd.f32 %v5237_v40, %v6523_v51  ;;  %v2148_v60 = vpop.f32.mrb[23].mxu0  ;;  %v2356_v43 = vshll.u32 %v6634_v47, 16 }
 0x2c2   : > { %v2231_v61 = vadd.f32 %v5517_v10, %v6538_v18  ;;  %v5519_v39 = vadd.f32 %v2148_v60, %v6525_v52  ;;  %v2348_v63 = vshll.u32 %v6639_v56, 16  ;;  %v2352_v27 = vshrl.u32 %v6639_v56, 16 }
 0x2c3   : > { %v2234_v1 = vadd.f32 %v5518_v59, %v6538_v18  ;;  %v2261_v51 = vmax.f32 %v2233_v58, 0.0  ;;  %v2358_v44 = vrot.slane %v2356_v43, 1 }
 0x2c4   : > { %v2232_v50 = vadd.f32 %v5519_v39, %v6538_v18  ;;  %v2350_v11 = vrot.slane %v2348_v63, 1  ;;  %v2259_v49 = vmax.f32 %v2231_v61, 0.0  ;;  %v4622_v63 = vld [vmem:[%s7219_s3 + $0xc] sm:$0xf] }
 0x2c5   : > { %v2262_v30 = vmax.f32 %v2234_v1, 0.0  ;;  %v2720_v1 = vrot.slane %v6544_v7, 1 }
 0x2c6   : > { %v2260_v53 = vmax.f32 %v2232_v50, 0.0  ;;  %v5240_v55 = vpop.f32.mrb[24].mxu0  ;;  %v6653_v52 = vsel %vm344_vm1, %v2346_v14, %v2350_v11  ;;  %v2354_v57 = vor.u32 %v2352_v27, %v2350_v11  ;;  %v2722_v14 = vrot.slane %v6557_v38, 1 }
 0x2c7   : > { %v6655_v0 = vpack.c.bf16 %v2262_v30, %v2261_v51  ;;  %v5520_v3 = vadd.f32 %v5240_v55, %v6527_v2  ;;  %v2161_v6 = vpop.f32.mrb[25].mxu0  ;;  %5257 = vmatmul.mubr.msk.bf16.gmra.mrb[24].mxu1 %vm2379_vm5, %v6653_v52  ;;  %v2721_v50 = vsel %vm840_vm3, %v2719_v32, %v2720_v1  ;;  %v2724_v11 = vrot.slane %v6555_v13, 1 }
 0x2c8   : > { %v6660_v12 = vpack.c.bf16 %v2260_v53, %v2259_v49  ;;  %v5521_v20 = vadd.f32 %v2161_v6, %v6529_v5  ;;  %v5241_v19 = vpop.f32.mrb[26].mxu0  ;;  %v6664_v22 = vsel %vm344_vm1, %v2354_v57, %v2358_v44  ;;  %v2360_v5 = vshrl.u32 %v6634_v47, 16 }
 0x2c9   : > { %v2237_v23 = vadd.f32 %v5520_v3, %v6538_v18  ;;  %v5522_v21 = vadd.f32 %v5241_v19, %v6531_v8  ;;  %v2164_v24 = vpop.f32.mrb[27].mxu0  ;;  %5260 = vmatprep.mubr.msk.bf16.mxu1 %vm2379_vm5, %v6664_v22  ;;  %v2372_v2 = vshll.u32 %v6655_v0, 16  ;;  %v2376_v61 = vshrl.u32 %v6655_v0, 16 }
 0x2ca   : > { %v2235_v31 = vadd.f32 %v5521_v20, %v6538_v18  ;;  %v5523_v36 = vadd.f32 %v2164_v24, %v6533_v9  ;;  %v2364_v37 = vshll.u32 %v6660_v12, 16  ;;  %v2362_v45 = vor.u32 %v2360_v5, %v2358_v44 }
 0x2cb   : > { %v2238_v26 = vadd.f32 %v5522_v21, %v6538_v18  ;;  %v2368_v34 = vshrl.u32 %v6660_v12, 16  ;;  %v2265_v48 = vmax.f32 %v2237_v23, 0.0  ;;  %v2374_v10 = vrot.slane %v2372_v2, 1 }
 0x2cc   : > { %v2236_v42 = vadd.f32 %v5523_v36, %v6538_v18  ;;  %v2366_v8 = vrot.slane %v2364_v37, 1  ;;  %v2263_v40 = vmax.f32 %v2235_v31, 0.0  ;;  %v2940_v27 = vsel %vm2416_vm4, %v4622_v63, 0 }
 0x2cd   : > { %v2266_v54 = vmax.f32 %v2238_v26, 0.0  ;;  %v6693_v39 = vor.u32 %v2376_v61, %v2374_v10  ;;  %v6735_v51 = vsel %vm840_vm3, %v2720_v1, %v2722_v14  ;;  %v6743_v30 = vsel %vm840_vm3, %v2722_v14, %v2724_v11  ;;  %v4648_v26 = vld [vmem:[%s7219_s3 + $0x14] sm:$0xf]  ;;  %v4687_v61 = vld [vmem:[%s7219_s3 + $0x20] sm:$0xf] }
 0x2ce   : > { %v2264_v58 = vmax.f32 %v2236_v42, 0.0  ;;  %v6679_v59 = vsel %vm344_vm1, %v2362_v45, %v2366_v8  ;;  %v2370_v9 = vor.u32 %v2368_v34, %v2366_v8  ;;  %v2726_v44 = vrot.slane %v6583_v35, 1  ;;  %v4661_v42 = vld [vmem:[%s7219_s3 + $0x18] sm:$0xf] }
 0x2cf   : > { %v6681_v60 = vpack.c.bf16 %v2266_v54, %v2265_v48  ;;  %5261 = vmatmul.mubr.msk.bf16.gmra.mrb[28].mxu1 %vm2379_vm5, %v6679_v59  ;;  %v2728_v49 = vrot.slane %v6579_v33, 1  ;;  %v2730_v57 = vrot.slane %v6607_v16, 1  ;;  %v2732_v3 = vrot.slane %v6603_v15, 1 }
 0x2d0   : > { %v6685_v43 = vpack.c.bf16 %v2264_v58, %v2263_v40  ;;  %v6688_v18 = vsel %vm344_vm1, %v2370_v9, %v2374_v10  ;;  %v6751_v53 = vsel %vm840_vm3, %v2724_v11, %v2726_v44  ;;  %v2734_v19 = vrot.slane %v6639_v56, 1  ;;  %v4674_v10 = vld [vmem:[%s7219_s3 + $0x1c] sm:$0xf] }
 0x2d1   : > { %5264 = vmatprep.mubr.msk.bf16.mxu1 %vm2379_vm5, %v6688_v18  ;;  %v6756_v55 = vsel %vm840_vm3, %v2726_v44, %v2728_v49  ;;  %v6763_v6 = vsel %vm840_vm3, %v2728_v49, %v2730_v57  ;;  %v6768_v20 = vsel %vm840_vm3, %v2730_v57, %v2732_v3  ;;  %v2736_v23 = vrot.slane %v6634_v47, 1 }
 0x2d2   : > { %v6775_v21 = vsel %vm840_vm3, %v2732_v3, %v2734_v19  ;;  %v2738_v2 = vrot.slane %v6660_v12, 1  ;;  %v2740_v31 = vrot.slane %v6655_v0, 1  ;;  %v3101_v34 = vshrl.u32 %v6685_v43, 16 }
 0x2d3   : > { %v6780_v24 = vsel %vm840_vm3, %v2734_v19, %v2736_v23  ;;  %v3439_v54 = vsel %vm2416_vm4, %v4661_v42, 0  ;;  %v3269_v40 = vrot.slane %v6685_v43, 1  ;;  %v3610_v9 = vsel %vm2416_vm4, %v4674_v10, 0 }
 0x2d4   : > { %v6787_v36 = vsel %vm840_vm3, %v2736_v23, %v2738_v2  ;;  %v6792_v5 = vsel %vm840_vm3, %v2738_v2, %v2740_v31 }
 0x2d5   : > { %v3270_v58 = vsel %vm840_vm3, %v2740_v31, %v3269_v40 }
 0x2d7   : > { %5265 = vmatmul.mubr.msk.bf16.gmra.mrb[32].mxu1 %vm2379_vm5, %v6693_v39 }
 0x2d8   : > { %5270 = vmatprep.mubr.msk.bf16.mxu1 %vm2379_vm5, %v6546_v41  ;;  %v4635_v41 = vld [vmem:[%s7219_s3 + $0x10] sm:$0xf] }
 0x2d9   : > { %v3111_v37 = vsel %vm2416_vm4, %v4635_v41, 0 }
 0x2df   : > { %5271 = vmatmul.mubr.msk.bf16.vlgmr.msra.gmra.mrb[12].mxu1 %vm2379_vm5, %v6544_v7 }
 0x2e0   : > { %5274 = vmatprep.mubr.msk.bf16.mxu1 %vm2379_vm5, %v6557_v38  ;;  %5295 = vmatpush3.bf16.msra.mxu1 %v2779_v62 }
 0x2e1   : > { %5941 = vmatprep.subr.msk.bf16.mxu1 %vm2416_vm4, %v4622_v63 }
 0x2e7   : > { %5275 = vmatmul.mubr.msk.bf16.gmra.mrb[16].mxu1 %vm2379_vm5, %v6555_v13 }
 0x2e8   : > { %5278 = vmatprep.mubr.msk.bf16.mxu1 %vm2379_vm5, %v6583_v35 }
 0x2ef   : > { %5279 = vmatmul.mubr.msk.bf16.gmra.mrb[20].mxu1 %vm2379_vm5, %v6579_v33 }
 0x2f0   : > { %5282 = vmatprep.mubr.msk.bf16.mxu1 %vm2379_vm5, %v6607_v16 }
 0x2f7   : > { %5283 = vmatmul.mubr.msk.bf16.gmra.mrb[24].mxu1 %vm2379_vm5, %v6603_v15 }
 0x2f8   : > { %5286 = vmatprep.mubr.msk.bf16.mxu1 %vm2379_vm5, %v6639_v56 }
 0x2ff   : > { %5287 = vmatmul.mubr.msk.bf16.gmra.mrb[28].mxu1 %vm2379_vm5, %v6634_v47 }
 0x300   : > { %5290 = vmatprep.mubr.msk.bf16.mxu1 %vm2379_vm5, %v6660_v12 }
 0x307   : > { %5291 = vmatmul.mubr.msk.bf16.gmra.mrb[32].mxu1 %vm2379_vm5, %v6655_v0 }
 0x308   : > { %5296 = vmatprep.mubr.msk.bf16.mxu1 %vm2379_vm5, %v2721_v50 }
 0x30f   : > { %5297 = vmatmul.mubr.msk.bf16.vlgmr.msra.gmra.mrb[12].mxu1 %vm2379_vm5, %v6735_v51 }
 0x310   : > { %5300 = vmatprep.mubr.msk.bf16.mxu1 %vm2379_vm5, %v6743_v30  ;;  %5321 = vmatpush3.bf16.msra.mxu1 %v2940_v27 }
 0x311   : > { %5942 = vmatprep.subr.msk.bf16.mxu1 %vm2416_vm4, %v4635_v41 }
 0x317   : > { %5301 = vmatmul.mubr.msk.bf16.gmra.mrb[16].mxu1 %vm2379_vm5, %v6751_v53 }
 0x318   : > { %5304 = vmatprep.mubr.msk.bf16.mxu1 %vm2379_vm5, %v6756_v55 }
 0x31f   : > { %5305 = vmatmul.mubr.msk.bf16.gmra.mrb[20].mxu1 %vm2379_vm5, %v6763_v6 }
 0x320   : > { %5308 = vmatprep.mubr.msk.bf16.mxu1 %vm2379_vm5, %v6768_v20 }
 0x327   : > { %5309 = vmatmul.mubr.msk.bf16.gmra.mrb[24].mxu1 %vm2379_vm5, %v6775_v21 }
 0x328   : > { %5312 = vmatprep.mubr.msk.bf16.mxu1 %vm2379_vm5, %v6780_v24 }
 0x32f   : > { %5313 = vmatmul.mubr.msk.bf16.gmra.mrb[28].mxu1 %vm2379_vm5, %v6787_v36 }
 0x330   : > { %5316 = vmatprep.mubr.msk.bf16.mxu1 %vm2379_vm5, %v6792_v5 }
 0x337   : > { %5317 = vmatmul.mubr.msk.bf16.gmra.mrb[32].mxu1 %vm2379_vm5, %v2740_v31 }
 0x338   : > { %5322 = vmatprep.mubr.msk.bf16.mxu1 %vm2379_vm5, %v6544_v7  ;;  %v3278_v7 = vsel %vm2416_vm4, %v4648_v26, 0 }
 0x33f   : > { %5323 = vmatmul.mubr.msk.bf16.vlgmr.msra.gmra.mrb[12].mxu1 %vm2379_vm5, %v6557_v38 }
 0x340   : > { %5326 = vmatprep.mubr.msk.bf16.mxu1 %vm2379_vm5, %v6555_v13  ;;  %5347 = vmatpush3.bf16.msra.mxu1 %v3111_v37 }
 0x341   : > { %5943 = vmatprep.subr.msk.bf16.mxu1 %vm2416_vm4, %v4648_v26 }
 0x347   : > { %5327 = vmatmul.mubr.msk.bf16.gmra.mrb[16].mxu1 %vm2379_vm5, %v6583_v35 }
 0x348   : > { %5330 = vmatprep.mubr.msk.bf16.mxu1 %vm2379_vm5, %v6579_v33 }
 0x34f   : > { %5331 = vmatmul.mubr.msk.bf16.gmra.mrb[20].mxu1 %vm2379_vm5, %v6607_v16 }
 0x350   : > { %5334 = vmatprep.mubr.msk.bf16.mxu1 %vm2379_vm5, %v6603_v15 }
 0x357   : > { %5335 = vmatmul.mubr.msk.bf16.gmra.mrb[24].mxu1 %vm2379_vm5, %v6639_v56 }
 0x358   : > { %5338 = vmatprep.mubr.msk.bf16.mxu1 %vm2379_vm5, %v6634_v47 }
 0x35f   : > { %5339 = vmatmul.mubr.msk.bf16.gmra.mrb[28].mxu1 %vm2379_vm5, %v6660_v12 }
 0x360   : > { %5342 = vmatprep.mubr.msk.bf16.mxu1 %vm2379_vm5, %v6655_v0 }
 0x367   : > { %5343 = vmatmul.mubr.msk.bf16.gmra.mrb[32].mxu1 %vm2379_vm5, %v6685_v43 }
 0x368   : > { %5348 = vmatprep.mubr.msk.bf16.mxu1 %vm2379_vm5, %v6572_v29  ;;  %v3097_v29 = vshll.u32 %v6685_v43, 16 }
 0x36a   : > { %v3099_v45 = vrot.slane %v3097_v29, 1 }
 0x36c   : > { %v3100_v8 = vsel %vm344_vm1, %v6693_v39, %v3099_v45  ;;  %v3103_v48 = vor.u32 %v3101_v34, %v3099_v45 }
 0x36f   : > { %5349 = vmatmul.mubr.msk.bf16.vlgmr.msra.gmra.mrb[12].mxu1 %vm2379_vm5, %v6586_v28 }
 0x370   : > { %5352 = vmatprep.mubr.msk.bf16.mxu1 %vm2379_vm5, %v6601_v4  ;;  %5373 = vmatpush3.bf16.msra.mxu1 %v3278_v7 }
 0x371   : > { %5944 = vmatprep.subr.msk.bf16.mxu1 %vm2416_vm4, %v4661_v42 }
 0x377   : > { %5353 = vmatmul.mubr.msk.bf16.gmra.mrb[16].mxu1 %vm2379_vm5, %v6610_v17 }
 0x378   : > { %5356 = vmatprep.mubr.msk.bf16.mxu1 %vm2379_vm5, %v6627_v25 }
 0x37f   : > { %5357 = vmatmul.mubr.msk.bf16.gmra.mrb[20].mxu1 %vm2379_vm5, %v6632_v46 }
 0x380   : > { %5360 = vmatprep.mubr.msk.bf16.mxu1 %vm2379_vm5, %v6653_v52 }
 0x387   : > { %5361 = vmatmul.mubr.msk.bf16.gmra.mrb[24].mxu1 %vm2379_vm5, %v6664_v22 }
 0x388   : > { %5364 = vmatprep.mubr.msk.bf16.mxu1 %vm2379_vm5, %v6679_v59 }
 0x38f   : > { %5365 = vmatmul.mubr.msk.bf16.gmra.mrb[28].mxu1 %vm2379_vm5, %v6688_v18 }
 0x390   : > { %5368 = vmatprep.mubr.msk.bf16.mxu1 %vm2379_vm5, %v3100_v8 }
 0x397   : > { %5369 = vmatmul.mubr.msk.bf16.gmra.mrb[32].mxu1 %vm2379_vm5, %v3103_v48 }
 0x398   : > { %5374 = vmatprep.mubr.msk.bf16.mxu1 %vm2379_vm5, %v6735_v51 }
 0x39f   : > { %5375 = vmatmul.mubr.msk.bf16.vlgmr.msra.gmra.mrb[12].mxu1 %vm2379_vm5, %v6743_v30 }
 0x3a0   : > { %5378 = vmatprep.mubr.msk.bf16.mxu1 %vm2379_vm5, %v6751_v53  ;;  %5399 = vmatpush3.bf16.msra.mxu1 %v3439_v54 }
 0x3a1   : > { %5945 = vmatprep.subr.msk.bf16.mxu1 %vm2416_vm4, %v4674_v10 }
 0x3a7   : > { %5379 = vmatmul.mubr.msk.bf16.gmra.mrb[16].mxu1 %vm2379_vm5, %v6756_v55 }
 0x3a8   : > { %5382 = vmatprep.mubr.msk.bf16.mxu1 %vm2379_vm5, %v6763_v6 }
 0x3af   : > { %5383 = vmatmul.mubr.msk.bf16.gmra.mrb[20].mxu1 %vm2379_vm5, %v6768_v20 }
 0x3b0   : > { %5386 = vmatprep.mubr.msk.bf16.mxu1 %vm2379_vm5, %v6775_v21 }
 0x3b7   : > { %5387 = vmatmul.mubr.msk.bf16.gmra.mrb[24].mxu1 %vm2379_vm5, %v6780_v24 }
 0x3b8   : > { %5390 = vmatprep.mubr.msk.bf16.mxu1 %vm2379_vm5, %v6787_v36 }
 0x3bf   : > { %5391 = vmatmul.mubr.msk.bf16.gmra.mrb[28].mxu1 %vm2379_vm5, %v6792_v5 }
 0x3c0   : > { %5394 = vmatprep.mubr.msk.bf16.mxu1 %vm2379_vm5, %v3270_v58 }
 0x3c7   : > { %5395 = vmatmul.mubr.msk.bf16.gmra.mrb[32].mxu1 %vm2379_vm5, %v3269_v40 }
 0x3c8   : > { %5400 = vmatprep.mubr.msk.bf16.mxu1 %vm2379_vm5, %v6557_v38  ;;  %v3596_v38 = vshll.u32 %v6681_v60, 16 }
 0x3cf   : > { %5401 = vmatmul.mubr.msk.bf16.vlgmr.msra.gmra.mrb[12].mxu1 %vm2379_vm5, %v6555_v13  ;;  %v3777_v13 = vsel %vm2416_vm4, %v4687_v61, 0 }
 0x3d0   : > { %5404 = vmatprep.mubr.msk.bf16.mxu1 %vm2379_vm5, %v6583_v35  ;;  %5425 = vmatpush3.bf16.msra.mxu1 %v3610_v9 }
 0x3d1   : > { %5946 = vmatprep.subr.msk.bf16.mxu1 %vm2416_vm4, %v4687_v61 }
 0x3d7   : > { %5405 = vmatmul.mubr.msk.bf16.gmra.mrb[16].mxu1 %vm2379_vm5, %v6579_v33  ;;  %v3598_v33 = vrot.slane %v3596_v38, 1 }
 0x3d8   : > { %5408 = vmatprep.mubr.msk.bf16.mxu1 %vm2379_vm5, %v6607_v16 }
 0x3d9   : > { %v3599_v35 = vsel %vm344_vm1, %v3103_v48, %v3598_v33 }
 0x3df   : > { %5409 = vmatmul.mubr.msk.bf16.gmra.mrb[20].mxu1 %vm2379_vm5, %v6603_v15  ;;  %v3768_v15 = vrot.slane %v6681_v60, 1 }
 0x3e0   : > { %5412 = vmatprep.mubr.msk.bf16.mxu1 %vm2379_vm5, %v6639_v56 }
 0x3e1   : > { %v3769_v16 = vsel %vm840_vm3, %v3269_v40, %v3768_v15 }
 0x3e7   : > { %5413 = vmatmul.mubr.msk.bf16.gmra.mrb[24].mxu1 %vm2379_vm5, %v6634_v47 }
 0x3e8   : > { %5416 = vmatprep.mubr.msk.bf16.mxu1 %vm2379_vm5, %v6660_v12 }
 0x3ef   : > { %5417 = vmatmul.mubr.msk.bf16.gmra.mrb[28].mxu1 %vm2379_vm5, %v6655_v0 }
 0x3f0   : > { %5420 = vmatprep.mubr.msk.bf16.mxu1 %vm2379_vm5, %v6685_v43 }
 0x3f7   : > { %5421 = vmatmul.mubr.msk.bf16.gmra.mrb[32].mxu1 %vm2379_vm5, %v6681_v60 }
 0x3f8   : > { %5426 = vmatprep.mubr.msk.bf16.mxu1 %vm2379_vm5, %v6586_v28  ;;  %v3600_v28 = vshrl.u32 %v6681_v60, 16 }
 0x3ff   : > { %5427 = vmatmul.mubr.msk.bf16.vlgmr.msra.gmra.mrb[12].mxu1 %vm2379_vm5, %v6601_v4  ;;  %v3602_v4 = vor.u32 %v3600_v28, %v3598_v33 }
 0x400   : > { %5430 = vmatprep.mubr.msk.bf16.mxu1 %vm2379_vm5, %v6610_v17  ;;  %5451 = vmatpush3.bf16.msra.mxu1 %v3777_v13  ;;  %v5967_v17 = vmov 0.0|0.0  }
 0x401   : > { %5476 = vmatprep.subr.bf16.mxu1 %v5967_v17 }
 0x407   : > { %5431 = vmatmul.mubr.msk.bf16.gmra.mrb[16].mxu1 %vm2379_vm5, %v6627_v25  ;;  %v4205_v25 = vld [vmem:[%s7221_s5 + $0x8] sm:$0xff] }
 0x408   : > { %5434 = vmatprep.mubr.msk.bf16.mxu1 %vm2379_vm5, %v6632_v46  ;;  %v6971_v46 = vld [vmem:[%s7220_s4] ss:$0 sm:$0xff] }
 0x40f   : > { %5435 = vmatmul.mubr.msk.bf16.gmra.mrb[20].mxu1 %vm2379_vm5, %v6653_v52 }
 0x410   : > { %5438 = vmatprep.mubr.msk.bf16.mxu1 %vm2379_vm5, %v6664_v22 }
 0x417   : > { %5439 = vmatmul.mubr.msk.bf16.gmra.mrb[24].mxu1 %vm2379_vm5, %v6679_v59 }
 0x418   : > { %5442 = vmatprep.mubr.msk.bf16.mxu1 %vm2379_vm5, %v6688_v18 }
 0x41f   : > { %5443 = vmatmul.mubr.msk.bf16.gmra.mrb[28].mxu1 %vm2379_vm5, %v3100_v8 }
 0x420   : > { %5446 = vmatprep.mubr.msk.bf16.mxu1 %vm2379_vm5, %v3599_v35 }
 0x427   : > { %5447 = vmatmul.mubr.msk.bf16.gmra.mrb[32].mxu1 %vm2379_vm5, %v3602_v4 }
 0x428   : > { %5452 = vmatprep.mubr.msk.bf16.mxu1 %vm2379_vm5, %v6743_v30 }
 0x42f   : > { %5453 = vmatmul.mubr.msk.bf16.vlgmr.msra.gmra.mrb[12].mxu1 %vm2379_vm5, %v6751_v53 }
 0x430   : > { %5456 = vmatprep.mubr.msk.bf16.mxu1 %vm2379_vm5, %v6756_v55 }
 0x437   : > { %5457 = vmatmul.mubr.msk.bf16.gmra.mrb[16].mxu1 %vm2379_vm5, %v6763_v6 }
 0x438   : > { %5460 = vmatprep.mubr.msk.bf16.mxu1 %vm2379_vm5, %v6768_v20 }
 0x43f   : > { %5461 = vmatmul.mubr.msk.bf16.gmra.mrb[20].mxu1 %vm2379_vm5, %v6775_v21 }
 0x440   : > { %5464 = vmatprep.mubr.msk.bf16.mxu1 %vm2379_vm5, %v6780_v24 }
 0x447   : > { %5465 = vmatmul.mubr.msk.bf16.gmra.mrb[24].mxu1 %vm2379_vm5, %v6787_v36 }
 0x448   : > { %5468 = vmatprep.mubr.msk.bf16.mxu1 %vm2379_vm5, %v6792_v5 }
 0x44f   : > { %5469 = vmatmul.mubr.msk.bf16.gmra.mrb[28].mxu1 %vm2379_vm5, %v3270_v58 }
 0x450   : > { %5472 = vmatprep.mubr.msk.bf16.mxu1 %vm2379_vm5, %v3769_v16 }
 0x457   : > { %5473 = vmatmul.mubr.msk.bf16.gmra.mrb[32].mxu1 %vm2379_vm5, %v3768_v15 }
 0x458   : > { %4702 = vmatprep.mubr.msk.f32.mxu1 %vm4214_vm6, %v4205_v25 }
 0x502   : > { %v5454_v47 = vpop.f32.mrb[12].mxu1 }
 0x503   : > { %v3941_v56 = vadd.f32 %v5454_v47, %v6971_v46  ;;  %v3813_v52 = vpop.f32.mrb[13].mxu1 }
 0x504   : > { %v3939_v0 = vadd.f32 %v6971_v46, %v3813_v52  ;;  %v5455_v12 = vpop.f32.mrb[14].mxu1 }
 0x505   : > { %v3965_v22 = vmax.f32 %v3941_v56, 0.0  ;;  %v3942_v59 = vadd.f32 %v5455_v12, %v6971_v46  ;;  %v3816_v60 = vpop.f32.mrb[15].mxu1 }
 0x506   : > { %v3963_v43 = vmax.f32 %v3939_v0, 0.0  ;;  %v3940_v18 = vadd.f32 %v6971_v46, %v3816_v60 }
 0x507   : > { %v3989_v39 = vrot.slane %v3965_v22, 4  ;;  %v3966_v62 = vmax.f32 %v3942_v59, 0.0  ;;  %v4069_v32 = vrot.slane %v3965_v22, 1 }
 0x508   : > { %4035 = vst.msk [vmem:[%s6979_s10] sm:$0xff] %vm2379_vm5, %v3963_v43  ;;  %v3964_v63 = vmax.f32 %v3940_v18, 0.0  ;;  %v4066_v14 = vrot.slane %v3963_v43, 1 }
 0x509   : > { %v3990_v1 = vrot.slane %v3966_v62, 4  ;;  %v4071_v50 = vrot.slane %v3966_v62, 1 }
 0x50a   : > { %v4029_v11 = vsel %vm2416_vm4, %v3964_v63, %v3989_v39  ;;  %v4067_v27 = vrot.slane %v3964_v63, 1  ;;  %v5458_v51 = vpop.f32.mrb[16].mxu1 }
 0x50b   : > { %v3991_v41 = vsel %vm2416_vm4, %v3989_v39, %v3990_v1  ;;  %4036 = vst.msk [vmem:[%s6979_s10 + $0x8] sm:$0xff] %vm2379_vm5, %v4029_v11  ;;  %v3945_v30 = vadd.f32 %v5458_v51, %v6971_v46  ;;  %v3829_v44 = vpop.f32.mrb[17].mxu1  ;;  %v4072_v49 = vsel %vm840_vm3, %v4069_v32, %v4071_v50 }
 0x50c   : > { %4037 = vst.msk [vmem:[%s6979_s10 + $0x10] sm:$0xff] %vm2379_vm5, %v3991_v41  ;;  %v4068_v53 = vsel %vm840_vm3, %v4066_v14, %v4067_v27  ;;  %v4070_v55 = vsel %vm840_vm3, %v4067_v27, %v4069_v32  ;;  %v3943_v57 = vadd.f32 %v6971_v46, %v3829_v44  ;;  %v4133_v3 = vmax.f32 %v3965_v22, %v4072_v49  ;;  %v5459_v6 = vpop.f32.mrb[18].mxu1 }
 0x50d   : > { %v4131_v20 = vmax.f32 %v3963_v43, %v4068_v53  ;;  %v4132_v19 = vmax.f32 %v3964_v63, %v4070_v55  ;;  %v3969_v23 = vmax.f32 %v3945_v30, 0.0  ;;  %v3946_v21 = vadd.f32 %v5459_v6, %v6971_v46  ;;  %v3832_v24 = vpop.f32.mrb[19].mxu1 }
 0x50e   : > { %v3967_v2 = vmax.f32 %v3943_v57, 0.0  ;;  %v3944_v31 = vadd.f32 %v6971_v46, %v3832_v24 }
 0x50f   : > { %v4154_v36 = vmax.f32 %v4132_v19, %v3966_v62  ;;  %v3996_v5 = vrot.slane %v3969_v23, 4  ;;  %v6998_v37 = vmax.f32 %v3946_v21, 0.0  ;;  %v4153_v29 = vmax.f32 %v4131_v20, %v3965_v22 }
 0x510   : > { %4038 = vst.msk [vmem:[%s6979_s10 + $0x18] sm:$0xff] %vm2379_vm5, %v3967_v2  ;;  %v4073_v26 = vrot.slane %v3967_v2, 1  ;;  %v7002_v7 = vmax.f32 %v4133_v3, %v3967_v2  ;;  %v3968_v42 = vmax.f32 %v3944_v31, 0.0  ;;  %v4077_v45 = vrot.slane %v3969_v23, 1 }
 0x511   : > { %v3997_v8 = vrot.slane %v6998_v37, 4  ;;  %v4079_v34 = vrot.slane %v6998_v37, 1  ;;  %v4182_v58 = vmax.f32 %v4153_v29, %v4072_v49 }
 0x512   : > { %v4030_v48 = vsel %vm2416_vm4, %v3968_v42, %v3996_v5  ;;  %v4074_v54 = vsel %vm840_vm3, %v4071_v50, %v4073_v26  ;;  %v4075_v10 = vrot.slane %v3968_v42, 1  ;;  %v5462_v40 = vpop.f32.mrb[20].mxu1 }
 0x513   : > { %v3998_v9 = vsel %vm2416_vm4, %v3996_v5, %v3997_v8  ;;  %4039 = vst.msk [vmem:[%s6979_s10 + $0x20] sm:$0xff] %vm2379_vm5, %v4030_v48  ;;  %v4134_v61 = vmax.f32 %v3966_v62, %v4074_v54  ;;  %v3949_v13 = vadd.f32 %v5462_v40, %v6971_v46  ;;  %v3845_v38 = vpop.f32.mrb[21].mxu1  ;;  %v7013_v33 = vsel %vm840_vm3, %v4077_v45, %v4079_v34 }
 0x514   : > { %4040 = vst.msk [vmem:[%s6979_s10 + $0x28] sm:$0xff] %vm2379_vm5, %v3998_v9  ;;  %v4078_v35 = vsel %vm840_vm3, %v4075_v10, %v4077_v45  ;;  %v3947_v28 = vadd.f32 %v6971_v46, %v3845_v38  ;;  %v4137_v4 = vmax.f32 %v3969_v23, %v7013_v33  ;;  %v5463_v15 = vpop.f32.mrb[22].mxu1  ;;  %v4183_v16 = vmax.f32 %v4154_v36, %v4074_v54 }
 0x515   : > { %v4136_v25 = vmax.f32 %v3968_v42, %v4078_v35  ;;  %v4156_v47 = vmax.f32 %v4134_v61, %v3968_v42  ;;  %v7020_v56 = vmax.f32 %v3949_v13, 0.0  ;;  %v3950_v52 = vadd.f32 %v5463_v15, %v6971_v46  ;;  %v3848_v0 = vpop.f32.mrb[23].mxu1 }
 0x516   : > { %v7023_v12 = vmax.f32 %v3947_v28, 0.0  ;;  %v3948_v22 = vadd.f32 %v6971_v46, %v3848_v0  ;;  %v5477_v59 = vpack.c.bf16 %v4183_v16, %v4182_v58  ;;  %v4076_v60 = vsel %vm840_vm3, %v4073_v26, %v4075_v10 }
 0x517   : > { %v4158_v43 = vmax.f32 %v4136_v25, %v6998_v37  ;;  %v4003_v18 = vrot.slane %v7020_v56, 4  ;;  %v4085_v39 = vrot.slane %v7020_v56, 1  ;;  %v7030_v62 = vmax.f32 %v3950_v52, 0.0 }
 0x518   : > { %4041 = vst.msk [vmem:[%s6979_s10 + $0x30] sm:$0xff] %vm2379_vm5, %v7023_v12  ;;  %v4081_v63 = vrot.slane %v7023_v12, 1  ;;  %v7037_v32 = vmax.f32 %v4137_v4, %v7023_v12  ;;  %v3972_v1 = vmax.f32 %v3948_v22, 0.0  ;;  %5478 = vmatpush1.bf16.msra.mxu1 %v5477_v59  ;;  %v4135_v50 = vmax.f32 %v3967_v2, %v4076_v60 }
 0x519   : > { %v4004_v14 = vrot.slane %v7030_v62, 4  ;;  %v4087_v11 = vrot.slane %v7030_v62, 1  ;;  %5479 = vmatprep.subr.bf16.mxu1 %v5967_v17  ;;  %v4184_v27 = vmax.f32 %v7002_v7, %v4076_v60  ;;  %v4185_v51 = vmax.f32 %v4156_v47, %v4078_v35 }
 0x51a   : > { %v4031_v41 = vsel %vm2416_vm4, %v3972_v1, %v4003_v18  ;;  %v4082_v30 = vsel %vm840_vm3, %v4079_v34, %v4081_v63  ;;  %v4083_v44 = vrot.slane %v3972_v1, 1  ;;  %v5466_v49 = vpop.f32.mrb[24].mxu1  ;;  %v4157_v53 = vmax.f32 %v4135_v50, %v3969_v23 }
 0x51b   : > { %v4005_v55 = vsel %vm2416_vm4, %v4003_v18, %v4004_v14  ;;  %4042 = vst.msk [vmem:[%s6979_s10 + $0x38] sm:$0xff] %vm2379_vm5, %v4031_v41  ;;  %v4138_v57 = vmax.f32 %v6998_v37, %v4082_v30  ;;  %v3953_v3 = vadd.f32 %v5466_v49, %v6971_v46  ;;  %v3861_v6 = vpop.f32.mrb[25].mxu1  ;;  %v7051_v20 = vsel %vm840_vm3, %v4085_v39, %v4087_v11 }
 0x51c   : > { %4043 = vst.msk [vmem:[%s6979_s10 + $0x40] sm:$0xff] %vm2379_vm5, %v4005_v55  ;;  %v4086_v19 = vsel %vm840_vm3, %v4083_v44, %v4085_v39  ;;  %v3951_v21 = vadd.f32 %v6971_v46, %v3861_v6  ;;  %v4141_v23 = vmax.f32 %v7020_v56, %v7051_v20  ;;  %v5480_v24 = vpack.c.bf16 %v4185_v51, %v4184_v27  ;;  %v5467_v2 = vpop.f32.mrb[26].mxu1 }
 0x51d   : > { %v4140_v31 = vmax.f32 %v3972_v1, %v4086_v19  ;;  %v4160_v36 = vmax.f32 %v4138_v57, %v3972_v1  ;;  %v7059_v5 = vmax.f32 %v3953_v3, 0.0  ;;  %v3954_v37 = vadd.f32 %v5467_v2, %v6971_v46  ;;  %v3864_v26 = vpop.f32.mrb[27].mxu1 }
 0x51e   : > { %v7062_v7 = vmax.f32 %v3951_v21, 0.0  ;;  %5481 = vmatpush1.bf16.msra.mxu1 %v5480_v24  ;;  %v3952_v42 = vadd.f32 %v6971_v46, %v3864_v26  ;;  %v4186_v29 = vmax.f32 %v4157_v53, %v7013_v33  ;;  %v4187_v45 = vmax.f32 %v4158_v43, %v4082_v30 }
 0x51f   : > { %v7067_v8 = vmax.f32 %v4140_v31, %v7030_v62  ;;  %v4010_v34 = vrot.slane %v7059_v5, 4  ;;  %v4093_v48 = vrot.slane %v7059_v5, 1  ;;  %v7071_v54 = vmax.f32 %v3954_v37, 0.0  ;;  %5482 = vmatprep.subr.bf16.mxu1 %v5967_v17 }
 0x520   : > { %4044 = vst.msk [vmem:[%s6979_s10 + $0x48] sm:$0xff] %vm2379_vm5, %v7062_v7  ;;  %v4089_v10 = vrot.slane %v7062_v7, 1  ;;  %v7079_v40 = vmax.f32 %v4141_v23, %v7062_v7  ;;  %v3976_v58 = vmax.f32 %v3952_v42, 0.0  ;;  %v5483_v9 = vpack.c.bf16 %v4187_v45, %v4186_v29 }
 0x521   : > { %v4011_v61 = vrot.slane %v7071_v54, 4  ;;  %v4095_v13 = vrot.slane %v7071_v54, 1  ;;  %v4084_v38 = vsel %vm840_vm3, %v4081_v63, %v4083_v44  ;;  %v4189_v33 = vmax.f32 %v4160_v36, %v4086_v19 }
 0x522   : > { %v4032_v35 = vsel %vm2416_vm4, %v3976_v58, %v4010_v34  ;;  %v4090_v28 = vsel %vm840_vm3, %v4087_v11, %v4089_v10  ;;  %v4091_v4 = vrot.slane %v3976_v58, 1  ;;  %5484 = vmatpush1.bf16.msra.mxu1 %v5483_v9  ;;  %v5470_v15 = vpop.f32.mrb[28].mxu1  ;;  %v4139_v16 = vmax.f32 %v7023_v12, %v4084_v38 }
 0x523   : > { %v4012_v25 = vsel %vm2416_vm4, %v4010_v34, %v4011_v61  ;;  %4045 = vst.msk [vmem:[%s6979_s10 + $0x50] sm:$0xff] %vm2379_vm5, %v4032_v35  ;;  %v4142_v47 = vmax.f32 %v7030_v62, %v4090_v28  ;;  %v3957_v52 = vadd.f32 %v5470_v15, %v6971_v46  ;;  %5485 = vmatprep.subr.bf16.mxu1 %v5967_v17  ;;  %v3877_v0 = vpop.f32.mrb[29].mxu1 }
 0x524   : > { %v7094_v22 = vsel %vm840_vm3, %v4093_v48, %v4095_v13  ;;  %4046 = vst.msk [vmem:[%s6979_s10 + $0x58] sm:$0xff] %vm2379_vm5, %v4012_v25  ;;  %v7099_v59 = vsel %vm840_vm3, %v4091_v4, %v4093_v48  ;;  %v3955_v12 = vadd.f32 %v6971_v46, %v3877_v0  ;;  %v4188_v43 = vmax.f32 %v7037_v32, %v4084_v38  ;;  %v5471_v18 = vpop.f32.mrb[30].mxu1 }
 0x525   : > { %v4145_v60 = vmax.f32 %v7059_v5, %v7094_v22  ;;  %v4144_v39 = vmax.f32 %v3976_v58, %v7099_v59  ;;  %v4164_v62 = vmax.f32 %v4142_v47, %v3976_v58  ;;  %v7106_v63 = vmax.f32 %v3957_v52, 0.0  ;;  %v3880_v50 = vpop.f32.mrb[31].mxu1 }
 0x526   : > { %v3958_v1 = vadd.f32 %v5471_v18, %v6971_v46  ;;  %v7109_v14 = vmax.f32 %v3955_v12, 0.0  ;;  %v5486_v11 = vpack.c.bf16 %v4189_v33, %v4188_v43  ;;  %v3956_v27 = vadd.f32 %v6971_v46, %v3880_v50 }
 0x527   : > { %v4161_v51 = vmax.f32 %v4139_v16, %v7020_v56  ;;  %v7114_v41 = vmax.f32 %v4144_v39, %v7071_v54  ;;  %v4017_v32 = vrot.slane %v7106_v63, 4  ;;  %v4101_v30 = vrot.slane %v7106_v63, 1 }
 0x528   : > { %v7118_v44 = vmax.f32 %v3958_v1, 0.0  ;;  %4047 = vst.msk [vmem:[%s6979_s10 + $0x60] sm:$0xff] %vm2379_vm5, %v7109_v14  ;;  %v4097_v49 = vrot.slane %v7109_v14, 1  ;;  %v7125_v53 = vmax.f32 %v4145_v60, %v7109_v14  ;;  %5487 = vmatpush1.bf16.msra.mxu1 %v5486_v11  ;;  %v3980_v56 = vmax.f32 %v3956_v27, 0.0 }
 0x529   : > { %v4190_v55 = vmax.f32 %v4161_v51, %v7051_v20  ;;  %5488 = vmatprep.subr.bf16.mxu1 %v5967_v17  ;;  %v4191_v6 = vmax.f32 %v7067_v8, %v4090_v28  ;;  %v4092_v19 = vsel %vm840_vm3, %v4089_v10, %v4091_v4 }
 0x52a   : > { %v4018_v57 = vrot.slane %v7118_v44, 4  ;;  %v4103_v3 = vrot.slane %v7118_v44, 1  ;;  %v4033_v21 = vsel %vm2416_vm4, %v3980_v56, %v4017_v32  ;;  %v4098_v23 = vsel %vm840_vm3, %v4095_v13, %v4097_v49  ;;  %v5474_v2 = vpop.f32.mrb[32].mxu1 }
 0x52b   : > { %v4099_v24 = vrot.slane %v3980_v56, 1  ;;  %v4143_v31 = vmax.f32 %v7062_v7, %v4092_v19  ;;  %4048 = vst.msk [vmem:[%s6979_s10 + $0x68] sm:$0xff] %vm2379_vm5, %v4033_v21  ;;  %v4146_v36 = vmax.f32 %v7071_v54, %v4098_v23  ;;  %v5489_v37 = vpack.c.bf16 %v4191_v6, %v4190_v55  ;;  %v3893_v42 = vpop.f32.mrb[33].mxu1 }
 0x52c   : > { %v4019_v20 = vsel %vm2416_vm4, %v4017_v32, %v4018_v57  ;;  %v3961_v26 = vadd.f32 %v5474_v2, %v6971_v46  ;;  %v3959_v45 = vadd.f32 %v6971_v46, %v3893_v42  ;;  %v4104_v8 = vsel %vm840_vm3, %v4101_v30, %v4103_v3  ;;  %v5475_v34 = vpop.f32.mrb[34].mxu1  ;;  %v4204_v2 = vld [vmem:[%s7221_s5] sm:$0xff]  ;;  %v4213_v42 = vld [vmem:[%s7221_s5 + $0x48] sm:$0xf] }
 0x52d   : > { %4049 = vst.msk [vmem:[%s6979_s10 + $0x70] sm:$0xff] %vm2379_vm5, %v4019_v20  ;;  %v4102_v29 = vsel %vm840_vm3, %v4099_v24, %v4101_v30  ;;  %v4192_v7 = vmax.f32 %v7079_v40, %v4092_v19  ;;  %v4168_v10 = vmax.f32 %v4146_v36, %v3980_v56  ;;  %5490 = vmatpush1.bf16.msra.mxu1 %v5489_v37  ;;  %v3896_v9 = vpop.f32.mrb[35].mxu1  ;;  %v4206_v20 = vld [vmem:[%s7221_s5 + $0x10] sm:$0xff]  ;;  %v4208_v36 = vld [vmem:[%s7221_s5 + $0x20] sm:$0xff]  ;;  %v4211_v37 = vld [vmem:[%s7221_s5 + $0x38] sm:$0xff] }
 0x52e   : > { %v4148_v48 = vmax.f32 %v3980_v56, %v4102_v29  ;;  %v3985_v54 = vmax.f32 %v3961_v26, 0.0  ;;  %v4149_v58 = vmax.f32 %v7106_v63, %v4104_v8  ;;  %5491 = vmatprep.subr.bf16.mxu1 %v5967_v17  ;;  %v3983_v61 = vmax.f32 %v3959_v45, 0.0  ;;  %v4210_v26 = vld [vmem:[%s7221_s5 + $0x30] sm:$0xff] }
 0x52f   : > { %v4193_v13 = vmax.f32 %v4164_v62, %v7099_v59  ;;  %v3962_v38 = vadd.f32 %v5475_v34, %v6971_v46  ;;  %v3960_v33 = vadd.f32 %v6971_v46, %v3896_v9  ;;  %v4165_v4 = vmax.f32 %v4143_v31, %v7059_v5  ;;  %v4207_v31 = vld [vmem:[%s7221_s5 + $0x18] sm:$0xff] }
 0x530   : > { %v4170_v40 = vmax.f32 %v4148_v48, %v7118_v44  ;;  %v4024_v35 = vrot.slane %v3985_v54, 4  ;;  %v4175_v28 = vrot.slane %v3985_v54, 1  ;;  %4050 = vst.msk [vmem:[%s6979_s10 + $0x78] sm:$0xff] %vm2379_vm5, %v3983_v61  ;;  %v4105_v15 = vrot.slane %v3983_v61, 1 }
 0x531   : > { %v4171_v16 = vmax.f32 %v4149_v58, %v3983_v61  ;;  %v5492_v25 = vpack.c.bf16 %v4193_v13, %v4192_v7  ;;  %v3986_v47 = vmax.f32 %v3962_v38, 0.0  ;;  %v3984_v52 = vmax.f32 %v3960_v33, 0.0 }
 0x532   : > { %v4194_v0 = vmax.f32 %v4165_v4, %v7094_v22  ;;  %v4195_v59 = vmax.f32 %v7114_v41, %v4098_v23  ;;  %v4100_v46 = vsel %vm840_vm3, %v4097_v49, %v4099_v24  ;;  %v4106_v5 = vsel %vm840_vm3, %v4103_v3, %v4105_v15 }
 0x533   : > { %5493 = vmatpush1.bf16.msra.mxu1 %v5492_v25  ;;  %v4025_v12 = vrot.slane %v3986_v47, 4  ;;  %v4177_v60 = vrot.slane %v3986_v47, 1  ;;  %v4147_v43 = vmax.f32 %v7109_v14, %v4100_v46  ;;  %v4034_v18 = vsel %vm2416_vm4, %v3984_v52, %v4024_v35 }
 0x534   : > { %v4107_v39 = vrot.slane %v3984_v52, 1  ;;  %v4150_v62 = vmax.f32 %v7118_v44, %v4106_v5  ;;  %5494 = vmatprep.subr.bf16.mxu1 %v5967_v17  ;;  %v5495_v22 = vpack.c.bf16 %v4195_v59, %v4194_v0  ;;  %4051 = vst.msk [vmem:[%s6979_s10 + $0x80] sm:$0xff] %vm2379_vm5, %v4034_v18  ;;  %v4196_v11 = vmax.f32 %v7125_v53, %v4100_v46 }
 0x535   : > { %v4026_v1 = vsel %vm2416_vm4, %v4024_v35, %v4025_v12  ;;  %v4178_v50 = vsel %vm840_vm3, %v4175_v28, %v4177_v60  ;;  %v4197_v27 = vmax.f32 %v4168_v10, %v4102_v29  ;;  %v4169_v41 = vmax.f32 %v4147_v43, %v7106_v63  ;;  %v4212_v29 = vld [vmem:[%s7221_s5 + $0x40] sm:$0xf] }
 0x536   : > { %4052 = vst.msk [vmem:[%s6979_s10 + $0x88] sm:$0xff] %vm2379_vm5, %v4026_v1  ;;  %v4152_v14 = vmax.f32 %v3984_v52, %v4107_v39  ;;  %v4172_v51 = vmax.f32 %v4150_v62, %v3984_v52  ;;  %v4199_v32 = vmax.f32 %v4170_v40, %v4106_v5  ;;  %v4108_v44 = vsel %vm840_vm3, %v4105_v15, %v4107_v39 }
 0x537   : > { %5496 = vmatpush1.bf16.msra.mxu1 %v5495_v22  ;;  %v5498_v30 = vpack.c.bf16 %v4197_v27, %v4196_v11  ;;  %v4176_v49 = vsel %vm840_vm3, %v4107_v39, %v4175_v28  ;;  %v4198_v55 = vmax.f32 %v4169_v41, %v4104_v8  ;;  %v4151_v57 = vmax.f32 %v3983_v61, %v4108_v44 }
 0x538   : > { %v4174_v56 = vmax.f32 %v4152_v14, %v3986_v47  ;;  %5497 = vmatprep.subr.bf16.mxu1 %v5967_v17  ;;  %v4200_v53 = vmax.f32 %v4171_v16, %v4108_v44  ;;  %v4201_v3 = vmax.f32 %v4172_v51, %v4176_v49 }
 0x539   : > { %v5501_v19 = vpack.c.bf16 %v4199_v32, %v4198_v55  ;;  %v4173_v21 = vmax.f32 %v4151_v57, %v3985_v54 }
 0x53a   : > { %v4203_v6 = vmax.f32 %v4174_v56, %v4177_v60  ;;  %v5504_v23 = vpack.c.bf16 %v4201_v3, %v4200_v53 }
 0x53b   : > { %5499 = vmatpush1.bf16.msra.mxu1 %v5498_v30  ;;  %v4202_v63 = vmax.f32 %v4173_v21, %v4178_v50 }
 0x53c   : > { %5500 = vmatprep.subr.bf16.mxu1 %v5967_v17 }
 0x53d   : > { %v5507_v24 = vpack.c.bf16 %v4203_v6, %v4202_v63 }
 0x53f   : > { %5502 = vmatpush1.bf16.msra.mxu1 %v5501_v19 }
 0x540   : > { %5503 = vmatprep.subr.bf16.mxu1 %v5967_v17 }
 0x543   : > { %5505 = vmatpush1.bf16.msra.mxu1 %v5504_v23 }
 0x544   : > { %5506 = vmatprep.subr.bf16.mxu1 %v5967_v17  ;;  %v4209_v17 = vld [vmem:[%s7221_s5 + $0x28] sm:$0xff] }
 0x547   : > { %5509 = vmatpush1.bf16.msk.msra.mxu1 %vm5508_vm9, %v5507_v24 }
 0x54a   : > { %4299 = vmatmul.mubr.f32.vlgmr.msra.gmra.mrb[36].mxu1 %v4204_v2 }
 0x54b   : > { %4703 = vmatprep.mubr.msk.f32.mxu1 %vm4214_vm6, %v4207_v31 }
 0x54e   : > { %4304 = vmatmul.mubr.f32.gmra.mrb[38].mxu1 %v4206_v20 }
 0x54f   : > { %4704 = vmatprep.mubr.msk.f32.mxu1 %vm4214_vm6, %v4209_v17 }
 0x552   : > { %4309 = vmatmul.mubr.f32.gmra.mrb[40].mxu1 %v4208_v36 }
 0x553   : > { %4705 = vmatprep.mubr.msk.f32.mxu1 %vm4214_vm6, %v4211_v37 }
 0x556   : > { %4314 = vmatmul.mubr.f32.gmra.mrb[42].mxu1 %v4210_v26 }
 0x557   : > { %4706 = vmatprep.mubr.msk.f32.mxu1 %vm4214_vm6, %v4213_v42 }
 0x55a   : > { %4319 = vmatmul.mubr.f32.gmra.mrb[44].mxu1 %v4212_v29 }
 0x61d   : > { %v4300_v45 = vpop.f32.mrb[36].mxu1 }
 0x61e   : > { %v4715_v8 = vpack.c.bf16 %v4300_v45, %v4300_v45  ;;  %v4302_v7 = vpop.f32.mrb[37].mxu1 }
 0x620   : > { %4346 = vst.msk [vmem:[%s291_s11] sm:$0xf] %vm4345_vm10, %v4715_v8 }
 0x621   : > { %v4305_v34 = vpop.f32.mrb[38].mxu1 }
 0x622   : > { %v4716_v48 = vpack.c.bf16 %v4305_v34, %v4305_v34  ;;  %v4307_v10 = vpop.f32.mrb[39].mxu1 }
 0x624   : > { %4347 = vst.msk [vmem:[%s291_s11 + $0x4] sm:$0xf] %vm4345_vm10, %v4716_v48 }
 0x625   : > { %v4310_v54 = vpop.f32.mrb[40].mxu1 }
 0x626   : > { %v4717_v58 = vpack.c.bf16 %v4310_v54, %v4310_v54  ;;  %v4312_v9 = vpop.f32.mrb[41].mxu1 }
 0x628   : > { %4348 = vst.msk [vmem:[%s291_s11 + $0x8] sm:$0xf] %vm4345_vm10, %v4717_v58 }
 0x629   : > { %v4315_v61 = vpop.f32.mrb[42].mxu1 }
 0x62a   : > { %v4718_v13 = vpack.c.bf16 %v4315_v61, %v4315_v61  ;;  %v4317_v38 = vpop.f32.mrb[43].mxu1 }
 0x62c   : > { %4349 = vst.msk [vmem:[%s291_s11 + $0xc] sm:$0xf] %vm4345_vm10, %v4718_v13 }
 0x62d   : > { %v4320_v33 = vpop.f32.mrb[44].mxu1 }
 0x62e   : > { %v4719_v40 = vpack.c.bf16 %v4320_v33, %v4320_v33  ;;  %v4322_v35 = vpop.f32.mrb[45].mxu1 }
 0x630   : > { %4351 = vst.msk [vmem:[%s291_s11 + $0x10] sm:$0x3] %vm4350_vm11, %v4719_v40 }
 0x631 PF: > { %s18_s24 = sadd.s32 1, %s5965_s24  }
 0x632   : > { %p15_p4 = scmp.ge.s32.totalorder %s18_s24, 4  }
 0x634   :  { %17 = sbr.rel (!%p15_p4) target bundleno = 1 (0x1), region = 102 }

</bundles_post_ra>
